<compile_context>
chip_gen: v7x
topology: tpu7x:2x2x1
jax: 0.10.0
libtpu: 0.0.40
codegen_flags: <defaults>
</compile_context>

<pallas_src>
import math
import jax
import jax.numpy as jnp
from jax.experimental import pallas as pl
from jax.experimental.pallas import tpu as pltpu

# Shapes from the original module spec.
BLOCK_SIZE = 256   # sequence length T (the registered causal mask requires T == block_size)
N_EMBD = 256
HEAD_SIZE = 256
BATCH = 2


def head_kernel(x_ref, w_ref, b_ref, o_ref):
    # x_ref : (1, T, E)   bf16 input block (one batch element per grid step)
    # w_ref : (E, 3H)     bf16 fused [Wk | Wq/sqrt(H) | Wv]
    # b_ref : (1, 3H)     f32  fused [bk | bq/sqrt(H) | bv]
    # o_ref : (1, T, H)   f32 output block
    H = HEAD_SIZE
    x = x_ref[0]                                                      # (T, E) bf16

    # Single fused QKV projection: bf16 operands, f32 accumulation, f32 bias add.
    qkv = jnp.dot(x, w_ref[...], preferred_element_type=jnp.float32) + b_ref[...]
    qkv = qkv.astype(jnp.bfloat16)                                    # (T, 3H) bf16
    K = qkv[:, 0 * H:1 * H]      # 128-aligned slices -> no relayout cost
    Q = qkv[:, 1 * H:2 * H]      # already pre-scaled by 1/sqrt(H) (folded into W/b)
    V = qkv[:, 2 * H:3 * H]

    # Score[i, j] = K[i] . Q[j]  (matches torch.matmul(K, Q.transpose(1, 2))).
    # Contract the last dim of both operands -> no explicit transpose emitted.
    score = jax.lax.dot_general(
        K, Q, dimension_numbers=(((1,), (1,)), ((), ())),
        preferred_element_type=jnp.float32)                           # (T, T) f32

    # Causal mask: positions where tril == 0 (i.e. col > row) get -1e9.
    T = score.shape[0]
    row = jax.lax.broadcasted_iota(jnp.int32, (T, T), 0)
    col = jax.lax.broadcasted_iota(jnp.int32, (T, T), 1)
    score = jnp.where(col > row, jnp.float32(-1e9), score)

    # Softmax (f32 elementwise math). Post-scale: normalize AFTER the e @ V matmul so no
    # separate f32 `attn` temp is materialized; reciprocal goes to the EUP slot (~free).
    m = jnp.max(score, axis=-1, keepdims=True)
    e = jnp.exp(score - m)                                            # (T, T) f32
    inv = pl.reciprocal(jnp.sum(e, axis=-1, keepdims=True), approx=True)  # (T, 1) f32

    out = jnp.dot(e.astype(jnp.bfloat16), V, preferred_element_type=jnp.float32)
    o_ref[0] = (out * inv).astype(o_ref.dtype)


def fuse_head_params(wk, bk, wq, bq, wv, bv):
    """One-time parameter prep: fuse the three projections and fold in 1/sqrt(head_size)."""
    inv_sqrt = 1.0 / math.sqrt(wq.shape[1])
    w_qkv = jnp.concatenate([wk, wq * inv_sqrt, wv], axis=1).astype(jnp.bfloat16)   # (E, 3H)
    b_qkv = jnp.concatenate([bk, bq * inv_sqrt, bv], axis=1).astype(jnp.float32)    # (1, 3H)
    return w_qkv, b_qkv


def head_forward(x, w_qkv, b_qkv):
    B, T, E = x.shape
    H = w_qkv.shape[1] // 3
    assert T == BLOCK_SIZE, "causal mask buffer is sized for T == block_size"

    x_bf = x.astype(jnp.bfloat16)   # halve the input DMA; MXU is bf16-native everywhere

    return pl.pallas_call(
        head_kernel,
        out_shape=jax.ShapeDtypeStruct((B, T, H), jnp.float32),
        grid_spec=pltpu.PrefetchScalarGridSpec(
            num_scalar_prefetch=0,
            grid=(B,),   # one batch element per step; "parallel" keeps both v7x TCs busy
            in_specs=[
                pl.BlockSpec((1, T, E), lambda b: (b, 0, 0)),        # x (bf16)
                pl.BlockSpec((E, 3 * H), lambda b: (0, 0)),          # fused W (bf16)
                pl.BlockSpec((1, 3 * H), lambda b: (0, 0)),          # fused b (f32)
            ],
            out_specs=pl.BlockSpec((1, T, H), lambda b: (b, 0, 0)),
        ),
        compiler_params=pltpu.CompilerParams(
            dimension_semantics=("parallel",),
        ),
    )(x_bf, w_qkv, b_qkv)


def reference_forward(x, wk, bk, wq, bq, wv, bv):
    K = x @ wk + bk
    Q = x @ wq + bq
    V = x @ wv + bv
    score = jnp.einsum("bid,bjd->bij", K, Q) / math.sqrt(HEAD_SIZE)
    T = x.shape[1]
    tril = jnp.tril(jnp.ones((T, T)))
    score = jnp.where(tril == 0, -1e9, score)
    attn = jax.nn.softmax(score, axis=-1)
    return attn @ V


if __name__ == "__main__":
    key = jax.random.PRNGKey(0)
    kx, kk, kq, kv, kbk, kbq, kbv = jax.random.split(key, 7)

    # Deterministic synthetic parameters (nn.Linear(n_embd, head_size) with bias).
    scale = 1.0 / math.sqrt(N_EMBD)
    x = jax.random.normal(kx, (BATCH, BLOCK_SIZE, N_EMBD), dtype=jnp.float32)
    wk = jax.random.uniform(kk, (N_EMBD, HEAD_SIZE), jnp.float32, -scale, scale)
    wq = jax.random.uniform(kq, (N_EMBD, HEAD_SIZE), jnp.float32, -scale, scale)
    wv = jax.random.uniform(kv, (N_EMBD, HEAD_SIZE), jnp.float32, -scale, scale)
    bk = jax.random.uniform(kbk, (1, HEAD_SIZE), jnp.float32, -scale, scale)
    bq = jax.random.uniform(kbq, (1, HEAD_SIZE), jnp.float32, -scale, scale)
    bv = jax.random.uniform(kbv, (1, HEAD_SIZE), jnp.float32, -scale, scale)

    # One-time parameter fusion (hoisted out of the per-forward hot path).
    w_qkv, b_qkv = fuse_head_params(wk, bk, wq, bq, wv, bv)

    out = head_forward(x, w_qkv, b_qkv)
    out = jax.block_until_ready(out)

    ref = reference_forward(x, wk, bk, wq, bq, wv, bv)
    assert out.shape == (BATCH, BLOCK_SIZE, HEAD_SIZE)
    # Tolerance absorbs bf16 MXU operands + the approximate EUP reciprocal in the softmax.
    assert jnp.allclose(out, ref, atol=2e-2, rtol=2e-2), float(jnp.max(jnp.abs(out - ref)))

    print("KERNEL_OK")
</pallas_src>

<mosaic_0001>
module attributes {stable_mosaic.version = 11 : i64} {
  func.func @head_kernel(%arg0: i32, %arg1: memref<1x256x256xbf16, #tpu.memory_space<vmem>>, %arg2: memref<256x768xbf16, #tpu.memory_space<vmem>>, %arg3: memref<1x768xf32, #tpu.memory_space<vmem>>, %arg4: memref<1x256x256xf32, #tpu.memory_space<vmem>>) attributes {dimension_semantics = [#tpu.dimension_semantics<parallel>], iteration_bounds = array<i64: 2>, scalar_prefetch = 0 : i64, scratch_operands = 0 : i64, tpu.core_type = #tpu.core_type<tc>, window_params = [{transform_indices = @transform_0, window_bounds = array<i64: 1, 256, 256>}, {pipeline_mode = #tpu.pipeline_mode<synchronous>, transform_indices = @transform_1, window_bounds = array<i64: 256, 768>}, {pipeline_mode = #tpu.pipeline_mode<synchronous>, transform_indices = @transform_2, window_bounds = array<i64: 1, 768>}, {transform_indices = @transform_3, window_bounds = array<i64: 1, 256, 256>}]} {
    %c0 = arith.constant 0 : index
    %c0_0 = arith.constant 0 : index
    %c0_1 = arith.constant 0 : index
    %0 = vector.load %arg1[%c0, %c0_0, %c0_1] : memref<1x256x256xbf16, #tpu.memory_space<vmem>>, vector<1x256x256xbf16>
    %1 = vector.shape_cast %0 : vector<1x256x256xbf16> to vector<256x256xbf16>
    %c0_2 = arith.constant 0 : index
    %c0_3 = arith.constant 0 : index
    %2 = vector.load %arg2[%c0_2, %c0_3] : memref<256x768xbf16, #tpu.memory_space<vmem>>, vector<256x768xbf16>
    %cst = arith.constant dense<0.000000e+00> : vector<256x768xf32>
    %3 = tpu.matmul %1, %2, %cst {dimension_numbers = #tpu.dot_dimension_numbers<[1], [0], [0], [1], [0, 0, 1, 1], [], []>} : vector<256x256xbf16>, vector<256x768xbf16>, vector<256x768xf32> -> vector<256x768xf32>
    %c0_4 = arith.constant 0 : index
    %c0_5 = arith.constant 0 : index
    %4 = vector.load %arg3[%c0_4, %c0_5] : memref<1x768xf32, #tpu.memory_space<vmem>>, vector<1x768xf32>
    %5 = vector.broadcast %4 : vector<1x768xf32> to vector<256x768xf32>
    %6 = arith.addf %3, %5 : vector<256x768xf32>
    %7 = arith.truncf %6 : vector<256x768xf32> to vector<256x768xbf16>
    %8 = vector.extract_strided_slice %7 {offsets = [0, 0], sizes = [256, 256], strides = [1, 1]} : vector<256x768xbf16> to vector<256x256xbf16>
    %9 = vector.extract_strided_slice %7 {offsets = [0, 256], sizes = [256, 256], strides = [1, 1]} : vector<256x768xbf16> to vector<256x256xbf16>
    %10 = vector.extract_strided_slice %7 {offsets = [0, 512], sizes = [256, 256], strides = [1, 1]} : vector<256x768xbf16> to vector<256x256xbf16>
    %cst_6 = arith.constant dense<0.000000e+00> : vector<256x256xf32>
    %11 = tpu.matmul %8, %9, %cst_6 {dimension_numbers = #tpu.dot_dimension_numbers<[1], [1], [0], [0], [0, 0, 1, 0], [], []>} : vector<256x256xbf16>, vector<256x256xbf16>, vector<256x256xf32> -> vector<256x256xf32>
    %12 = tpu.iota {dimensions = array<i32: 0>} : vector<256x256xi32>
    %13 = tpu.iota {dimensions = array<i32: 1>} : vector<256x256xi32>
    %14 = arith.cmpi sgt, %13, %12 : vector<256x256xi32>
    %cst_7 = arith.constant -1.000000e+09 : f32
    %15 = vector.broadcast %cst_7 : f32 to vector<256x256xf32>
    %16 = arith.select %14, %15, %11 : vector<256x256xi1>, vector<256x256xf32>
    %cst_8 = arith.constant dense<0xFF800000> : vector<256xf32>
    %17 = vector.multi_reduction <maximumf>, %16, %cst_8 [1] : vector<256x256xf32> to vector<256xf32>
    %18 = vector.shape_cast %17 : vector<256xf32> to vector<256x1xf32>
    %19 = vector.broadcast %18 : vector<256x1xf32> to vector<256x256xf32>
    %20 = arith.subf %16, %19 : vector<256x256xf32>
    %21 = math.exp %20 : vector<256x256xf32>
    %cst_9 = arith.constant dense<0.000000e+00> : vector<256xf32>
    %22 = vector.multi_reduction <add>, %21, %cst_9 [1] : vector<256x256xf32> to vector<256xf32>
    %23 = vector.shape_cast %22 : vector<256xf32> to vector<256x1xf32>
    %24 = tpu.reciprocal %23 {approx = true} : vector<256x1xf32> -> vector<256x1xf32>
    %25 = arith.truncf %21 : vector<256x256xf32> to vector<256x256xbf16>
    %cst_10 = arith.constant dense<0.000000e+00> : vector<256x256xf32>
    %26 = tpu.matmul %25, %10, %cst_10 {dimension_numbers = #tpu.dot_dimension_numbers<[1], [0], [0], [1], [0, 0, 1, 1], [], []>} : vector<256x256xbf16>, vector<256x256xbf16>, vector<256x256xf32> -> vector<256x256xf32>
    %27 = vector.broadcast %24 : vector<256x1xf32> to vector<256x256xf32>
    %28 = arith.mulf %26, %27 : vector<256x256xf32>
    %c0_11 = arith.constant 0 : index
    %c0_12 = arith.constant 0 : index
    %c0_13 = arith.constant 0 : index
    %29 = vector.load %arg4[%c0_11, %c0_12, %c0_13] : memref<1x256x256xf32, #tpu.memory_space<vmem>>, vector<1x256x256xf32>
    %30 = vector.shape_cast %29 : vector<1x256x256xf32> to vector<256x256xf32>
    %31 = vector.shape_cast %28 : vector<256x256xf32> to vector<1x256x256xf32>
    tpu.vector_store %arg4[%c0_11, %c0_12, %c0_13], %31 {strides = array<i32>} : memref<1x256x256xf32, #tpu.memory_space<vmem>>, vector<1x256x256xf32>,
    return
  }
  func.func @transform_0(%arg0: i32) -> (i32, i32, i32) {
    %c0_i32 = arith.constant 0 : i32
    %c0_i32_0 = arith.constant 0 : i32
    %c0_i32_1 = arith.constant 0 : i32
    return %arg0, %c0_i32, %c0_i32_0 : i32, i32, i32
  }
  func.func @transform_1(%arg0: i32) -> (i32, i32) {
    %c0_i32 = arith.constant 0 : i32
    %c0_i32_0 = arith.constant 0 : i32
    %c0_i32_1 = arith.constant 0 : i32
    return %c0_i32, %c0_i32_0 : i32, i32
  }
  func.func @transform_2(%arg0: i32) -> (i32, i32) {
    %c0_i32 = arith.constant 0 : i32
    %c0_i32_0 = arith.constant 0 : i32
    %c0_i32_1 = arith.constant 0 : i32
    return %c0_i32, %c0_i32_0 : i32, i32
  }
  func.func @transform_3(%arg0: i32) -> (i32, i32, i32) {
    %c0_i32 = arith.constant 0 : i32
    %c0_i32_0 = arith.constant 0 : i32
    %c0_i32_1 = arith.constant 0 : i32
    return %arg0, %c0_i32, %c0_i32_0 : i32, i32, i32
  }
}

</mosaic_0001>

<bundles_post_ra>
// kernel: tpu_custom_call.1
= control target key start
LH: loop header
LB: loop body
LE: loop exit
PB: predicated region body
PF: predicated region fallthrough
CT: control target
= control target key end

     0   :  { %8 = vsyncpa [#allocation3], 0  ;;  %s4921_s0 = inlined_call_operand.hbm [shape: bf16[2,256,256], index: 0, kind: input, shape index: {}]   ;;  %s4922_s1 = inlined_call_operand.hbm [shape: bf16[256,768], index: 1, kind: input, shape index: {}]   ;;  %s4923_s2 = inlined_call_operand.vmem [shape: f32[1,768], index: 2, kind: input, shape index: {}]   ;;  %s4924_s3 = inlined_call_operand.hbm [shape: f32[2,256,256], index: 3, kind: output, shape index: {}]  }
   0x1   :  { %10 = vsyncpa [#allocation3 + $0x1], 0 }
   0x2   :  { %11 = vsyncpa [#allocation6], 0 }
   0x3   :  { %12 = vsyncpa [#allocation4], 0 }
   0x4   :  { %14 = vsyncpa [#allocation4 + $0x1], 0  ;;  %s3701_s12 = smov 0   ;;  %s3703_s13 = smov 0  }
   0x5   :  { %s3705_s14 = smov 0   ;;  %s3707_s15 = smov 0  }
   0x6 LB: > { %s3722_s16 = sadd.s32 4294967295, %s3670_s15   ;;  %s2902_s17 = sadd.s32 4294967294, %s3670_s15   ;;  %s3670_s15 = sphi %s3707_s15, %s5064_s15   ;;  %s3666_s14 = sphi %s3705_s14, %s5063_s14   ;;  %s3662_s13 = sphi %s3703_s13, %s5062_s13   ;;  %s3658_s12 = sphi %s3701_s12, %s5061_s12  }
   0x7   : > { %p40_p0 = scmp.ne.s32.totalorder %s3662_s13, %s3658_s12  ;;  %p4925_p1 = scmp.eq.s32.totalorder %s3722_s16, 0 }
   0x8   : > { %p112_p3 = scmp.eq.s32.totalorder %s2902_s17, 1  ;;  %p2903_p5 = scmp.ge.s32.totalorder %s3670_s15, 1 }
   0x9   : > { %p3731_p4 = por %p4925_p1, %p40_p0  ;;  %p119_p7 = scmp.lt.s32.totalorder %s3670_s15, 3 }
   0xa   : > { %p3736_p6 = por %p112_p3, %p40_p0  ;;  %s3672_s21 = smov [#allocation5]  }
   0xb   : > { %s4960_s18 = scalar_select %p3731_p4, 1, 0 }
   0xc   : > { %s4961_s19 = scalar_select %p3736_p6, 1, 0 }
   0xd   : > { %p3741_p8 = pnand %p2903_p5, %p119_p7  ;;  %s131_s22 = sshll.u32 %s3672_s21, 4  ;;  %s3745_s22 = int_to_ptr.vmem [resolvable:$true] %s131_s22 }
   0xe   : > { %s3757_s24 = sadd.s32 1, %s3670_s15   ;;  %s27_s25 = sadd.s32 1, %s3666_s14 }
   0xf   : > { %s4962_s20 = scalar_select %p3741_p8, 1, 0 }
  0x10   : > { %p3088_p9 = pneg %p3741_p8  ;;  %s24_s26 = ssub.s32 %s3670_s15, %s3757_s24 }
  0x11   : > { %s3542_s29 = scalar_lea.hbm %s4922_s1, 12288 }
  0x12   : > { %p3752_p11 = pnand %p3088_p9, %p4925_p1  ;;  %p3543_p12 = scmp.ne.s32.totalorder %s4922_s1, %s3542_s29 }
  0x13   : > { %p3549_p5 = scmp.lt.u32.totalorder %s3542_s29, %s4922_s1 }
  0x14   : > { %p3544_p13 = pneg %p3752_p11 }
  0x16   : > { %p3545_p0 = pnand %p3544_p13, %p3543_p12 }
  0x18   : > { %p3546_p3 = pneg %p3545_p0 }
  0x1a   : > { %p3551_p7 = pnand %p3549_p5, %p3546_p3 }
  0x1c   : > { %3554 = shalt.err (!%p3551_p7)
}
  0x1d   : > { %s3555_s7 = scalar_lea.vmem %s3745_s22, 12288  ;;  %p3563_p2 = scmp.lt.s32.totalorder %s3745_s22, %s3745_s22 }
  0x1e   : > { %p3556_p9 = scmp.ne.s32.totalorder %s3745_s22, %s3555_s7  ;;  %p3564_p6 = scmp.lt.s32.totalorder %s3555_s7, %s3555_s7 }
  0x20   : > { %p3558_p10 = pnand %p3556_p9, %p3544_p13  ;;  %p3565_p4 = por %p3564_p6, %p3563_p2 }
  0x22   : > { %p3559_p1 = pneg %p3558_p10 }
  0x24   : > { %p3566_p8 = pnand %p3565_p4, %p3559_p1 }
  0x26   : > { %3569 = shalt.err (!%p3566_p8)
}
  0x27   : > { %s3673_s8 = smov 384   ;;  %s3674_s9 = smov 24  }
  0x28   : > { %3091 = dma.hbm_to_vmem [thread:$0]  (!%p3752_p11), %s4922_s1, 12288, %s3745_s22, [#allocation6], %s3673_s8, %s3673_s8, %s3674_s9  }
  0x29   : > { %p25_p2 = scmp.eq.s32.totalorder %s24_s26, 0  ;;  %p34_p1 = scmp.ne.s32.totalorder %s3666_s14, %s3662_s13 }
  0x2a   : > { %p35_p4 = scmp.eq.s32.totalorder %s3670_s15, 0  ;;  %p3101_p6 = scmp.lt.s32.totalorder %s3670_s15, 2 }
  0x2b   : > { %s3788_s17 = scalar_select %p25_p2, %s3666_s14, %s27_s25  }
  0x2c   : > { %p36_p8 = por %p35_p4, %p34_p1  ;;  %p4964_p10 = scmp.eq.s32.totalorder %s3722_s16, 1 }
  0x2d   : > { %s148_s27 = sand.u32 1, %s3666_s14   ;;  %s3046_s28 = sshll.u32 %s3670_s15, 12 }
  0x2e   : > { %p3792_p12 = por %p4964_p10, %p34_p1  ;;  %s2906_s29 = sshll.u32 %s148_s27, 8 }
  0x2f   : > { %s3801_s4 = scalar_lea.hbm %s4921_s0, %s3046_s28  ;;  %s152_s22 = scalar_lea.vmem [#allocation2], %s2906_s29 }
  0x30   : > { %s159_s25 = sshll.u32 %s152_s22, 4  ;;  %p3803_p11 = pnand %p3101_p6, %p36_p8  ;;  %s3807_s25 = int_to_ptr.vmem [resolvable:$true] %s159_s25 }
  0x31   : > { %s3809_s5 = scalar_lea.sflag [#allocation3], %s148_s27  ;;  %s3570_s6 = scalar_lea.hbm %s3801_s4, 4096 }
  0x32   : > { %p3571_p13 = scmp.ne.s32.totalorder %s3801_s4, %s3570_s6  ;;  %p3572_p0 = pneg %p3803_p11 }
  0x33   : > { %s3575_s9 = scalar_lea.hbm %s4921_s0, 8192  ;;  %p3576_p7 = scmp.lt.u32.totalorder %s3801_s4, %s4921_s0 }
  0x34   : > { %p3573_p3 = pnand %p3572_p0, %p3571_p13  ;;  %p3577_p9 = scmp.lt.u32.totalorder %s3575_s9, %s3570_s6 }
  0x35   : > { %p3579_p1 = scmp.lt.u32.totalorder %s3570_s6, %s3801_s4 }
  0x36   : > { %p3574_p5 = pneg %p3573_p3  ;;  %p3578_p2 = por %p3577_p9, %p3576_p7 }
  0x38   : > { %p3580_p4 = por %p3579_p1, %p3578_p2 }
  0x3a   : > { %p3581_p6 = pnand %p3580_p4, %p3574_p5 }
  0x3c   : > { %3584 = shalt.err (!%p3581_p6)
}
  0x3d   : > { %s3585_s27 = scalar_lea.vmem %s3807_s25, 4096  ;;  %s3675_s28 = smov [#allocation2]  }
  0x3e   : > { %p3586_p8 = scmp.ne.s32.totalorder %s3807_s25, %s3585_s27  ;;  %s3590_s29 = sshll.u32 %s3675_s28, 4  ;;  %s3591_s29 = int_to_ptr.vmem [resolvable:$false] %s3590_s29 }
  0x3f   : > { %s3592_s23 = scalar_lea.vmem %s3591_s29, 8192  ;;  %p3593_p3 = scmp.lt.s32.totalorder %s3807_s25, %s3591_s29 }
  0x40   : > { %p3588_p10 = pnand %p3586_p8, %p3572_p0  ;;  %p3594_p7 = scmp.lt.s32.totalorder %s3592_s23, %s3585_s27 }
  0x42   : > { %p3589_p13 = pneg %p3588_p10  ;;  %p3595_p9 = por %p3594_p7, %p3593_p3 }
  0x44   : > { %p3596_p2 = pnand %p3595_p9, %p3589_p13 }
  0x46   : > { %3599 = shalt.err (!%p3596_p2)
}
  0x47   : > { %s3676_s30 = smov 128   ;;  %s3677_s22 = smov 8  }
  0x48   : > { %3095 = dma.hbm_to_vmem [thread:$0]  (!%p3803_p11), %s3801_s4, 4096, %s3807_s25, %s3809_s5, %s3676_s30, %s3676_s30, %s3677_s22  }
  0x49   : > { %p4967_p0 = scmp.ne.s32.totalorder %s4962_s20, 0 }
  0x4b   : > { %171 = sbr.rel (%p4967_p0) target bundleno = 1297 (0x511), region = 32 }
  0x52   : > { %s3840_s6 = sand.u32 1, %s3662_s13   ;;  %p4968_p5 = scmp.ne.s32.totalorder %s4960_s18, 0 }
  0x53   : > { %s2910_s7 = sshll.u32 %s3840_s6, 8  ;;  %s174_s8 = scalar_lea.sflag [#allocation3], %s3840_s6 }
  0x54   : > { %s3844_s9 = scalar_lea.vmem [#allocation2], %s2910_s7 }
  0x55   : > { %3645 = dma.done.wait (%p4968_p5), %s174_s8, 4096  }
  0x56   : > { %3647 = vsyncadd (%p4968_p5), %s174_s8, 4294963200  ;;  %p4969_p11 = scmp.eq.s32.totalorder %s3722_s16, 0 }
  0x58   : > { %3649 = dma.done.wait (%p4969_p11), [#allocation6], 12288   ;;  %p4970_p1 = pmov %p4969_p11 }
  0x59   : > { %v3143_v0 = vld [vmem:[#allocation5 + $0x4] ss:$24 sps:$4 sm:$0xff]   ;;  %v3145_v1 = vld [vmem:[#allocation5] ss:$24 sps:$4 sm:$0xff]   ;;  %v3146_v2 = vld [vmem:[#allocation5 + $0x34] ss:$24 sps:$4 sm:$0xff]  }
  0x5a   : > { %3651 = vsyncadd (%p4970_p1), [#allocation6], 4294955008  ;;  %3048 = vmatprep.subr.bf16.mxu1 %v3143_v0  ;;  %1004 = vmatprep.subr.bf16.mxu0 %v3143_v0  ;;  %v3148_v3 = vld [vmem:[#allocation5 + $0x30] ss:$24 sps:$4 sm:$0xff]   ;;  %v3149_v4 = vld [vmem:[#allocation5 + $0x64] ss:$24 sps:$4 sm:$0xff]  }
  0x5b   : > { %3064 = vmatpush1.bf16.msra.mxu1 %v3145_v1  ;;  %1005 = vmatpush1.bf16.msra.mxu0 %v3145_v1  ;;  %v3151_v5 = vld [vmem:[#allocation5 + $0x60] ss:$24 sps:$4 sm:$0xff]   ;;  %v3152_v6 = vld [vmem:[#allocation5 + $0x94] ss:$24 sps:$4 sm:$0xff]   ;;  %v3154_v7 = vld [vmem:[#allocation5 + $0x90] ss:$24 sps:$4 sm:$0xff]  }
  0x5c   : > { %3049 = vmatprep.subr.bf16.mxu1 %v3146_v2  ;;  %1006 = vmatprep.subr.bf16.mxu0 %v3146_v2  ;;  %v3155_v8 = vld [vmem:[#allocation5 + $0xc4] ss:$24 sps:$4 sm:$0xff]   ;;  %v3157_v9 = vld [vmem:[#allocation5 + $0xc0] ss:$24 sps:$4 sm:$0xff]   ;;  %v3158_v10 = vld [vmem:[#allocation5 + $0xf4] ss:$24 sps:$4 sm:$0xff]  }
  0x5d   : > { %v3160_v11 = vld [vmem:[#allocation5 + $0xf0] ss:$24 sps:$4 sm:$0xff]   ;;  %v3161_v12 = vld [vmem:[#allocation5 + $0x124] ss:$24 sps:$4 sm:$0xff]   ;;  %v3163_v14 = vld [vmem:[#allocation5 + $0x120] ss:$24 sps:$4 sm:$0xff]  }
  0x5e   : > { %v3855_v13 = vld [vmem:[%s3844_s9 + $0x84] ss:$8 sps:$4 sm:$0xff]   ;;  %v3166_v16 = vld [vmem:[#allocation5 + $0x150] ss:$24 sps:$4 sm:$0xff]   ;;  %v3169_v18 = vld [vmem:[#allocation5 + $0x180] ss:$24 sps:$4 sm:$0xff]  }
  0x5f   : > { %3065 = vmatpush1.bf16.msra.mxu1 %v3148_v3  ;;  %1007 = vmatpush1.bf16.msra.mxu0 %v3148_v3  ;;  %v3164_v15 = vld [vmem:[#allocation5 + $0x154] ss:$24 sps:$4 sm:$0xff]   ;;  %v3167_v17 = vld [vmem:[#allocation5 + $0x184] ss:$24 sps:$4 sm:$0xff]   ;;  %v3172_v20 = vld [vmem:[#allocation5 + $0x1b0] ss:$24 sps:$4 sm:$0xff]  }
  0x60   : > { %3050 = vmatprep.subr.bf16.mxu1 %v3149_v4  ;;  %1008 = vmatprep.subr.bf16.mxu0 %v3149_v4  ;;  %v3170_v19 = vld [vmem:[#allocation5 + $0x1b4] ss:$24 sps:$4 sm:$0xff]   ;;  %v3173_v21 = vld [vmem:[#allocation5 + $0x1e4] ss:$24 sps:$4 sm:$0xff]   ;;  %v3175_v22 = vld [vmem:[#allocation5 + $0x1e0] ss:$24 sps:$4 sm:$0xff]  }
  0x61   : > { %1116 = vmatprep.mubr.bf16.mxu1 %v3855_v13  ;;  %v3176_v23 = vld [vmem:[#allocation5 + $0x214] ss:$24 sps:$4 sm:$0xff]   ;;  %v3178_v24 = vld [vmem:[#allocation5 + $0x210] ss:$24 sps:$4 sm:$0xff]   ;;  %v3179_v25 = vld [vmem:[#allocation5 + $0x244] ss:$24 sps:$4 sm:$0xff]  }
  0x62   : > { %v3181_v26 = vld [vmem:[#allocation5 + $0x240] ss:$24 sps:$4 sm:$0xff]   ;;  %v3182_v27 = vld [vmem:[#allocation5 + $0x274] ss:$24 sps:$4 sm:$0xff]   ;;  %v3184_v28 = vld [vmem:[#allocation5 + $0x270] ss:$24 sps:$4 sm:$0xff]  }
  0x63   : > { %3066 = vmatpush1.bf16.msra.mxu1 %v3151_v5  ;;  %1009 = vmatpush1.bf16.msra.mxu0 %v3151_v5  ;;  %v3185_v29 = vld [vmem:[#allocation5 + $0x2a4] ss:$24 sps:$4 sm:$0xff]   ;;  %v3187_v30 = vld [vmem:[#allocation5 + $0x2a0] ss:$24 sps:$4 sm:$0xff]   ;;  %v3188_v32 = vld [vmem:[#allocation5 + $0x2d4] ss:$24 sps:$4 sm:$0xff]  }
  0x64   : > { %3051 = vmatprep.subr.bf16.mxu1 %v3152_v6  ;;  %1010 = vmatprep.subr.bf16.mxu0 %v3152_v6  ;;  %v3859_v31 = vld [vmem:[%s3844_s9 + $0x4] ss:$8 sps:$4 sm:$0xff]   ;;  %v3190_v33 = vld [vmem:[#allocation5 + $0x2d0] ss:$24 sps:$4 sm:$0xff]   ;;  %v3199_v37 = vld [vmem:[#allocation5 + $0x3c] ss:$24 sps:$4 sm:$0xff]  }
  0x65   : > { %1036 = vmatprep.mubr.bf16.mxu0 %v3859_v31  ;;  %v3196_v34 = vld [vmem:[#allocation5 + $0xc] ss:$24 sps:$4 sm:$0xff]   ;;  %v3863_v35 = vld [vmem:[%s3844_s9 + $0x80] ss:$8 sps:$4 sm:$0xff]   ;;  %v3866_v38 = vld [vmem:[%s3844_s9 + $0x94] ss:$8 sps:$4 sm:$0xff]  }
  0x66   : > { %v3194_v36 = vld [vmem:[#allocation5 + $0x8] ss:$24 sps:$4 sm:$0xff]   ;;  %v3872_v40 = vld [vmem:[%s3844_s9 + $0x14] ss:$8 sps:$4 sm:$0xff]   ;;  %v3197_v41 = vld [vmem:[#allocation5 + $0x38] ss:$24 sps:$4 sm:$0xff]  }
  0x67   : > { %3067 = vmatpush1.bf16.msra.mxu1 %v3154_v7  ;;  %1011 = vmatpush1.bf16.msra.mxu0 %v3154_v7  ;;  %v3869_v39 = vld [vmem:[%s3844_s9] ss:$8 sps:$4 sm:$0xff]   ;;  %v3205_v42 = vld [vmem:[#allocation5 + $0x6c] ss:$24 sps:$4 sm:$0xff]   ;;  %v3878_v43 = vld [vmem:[%s3844_s9 + $0x90] ss:$8 sps:$4 sm:$0xff]  }
  0x68   : > { %3052 = vmatprep.subr.bf16.mxu1 %v3155_v8  ;;  %1012 = vmatprep.subr.bf16.mxu0 %v3155_v8  ;;  %v3203_v44 = vld [vmem:[#allocation5 + $0x68] ss:$24 sps:$4 sm:$0xff]   ;;  %v3882_v45 = vld [vmem:[%s3844_s9 + $0xa4] ss:$8 sps:$4 sm:$0xff]   ;;  %v3208_v46 = vld [vmem:[#allocation5 + $0x9c] ss:$24 sps:$4 sm:$0xff]  }
  0x69   : > { %v3885_v47 = vld [vmem:[%s3844_s9 + $0x10] ss:$8 sps:$4 sm:$0xff]   ;;  %v3889_v48 = vld [vmem:[%s3844_s9 + $0x24] ss:$8 sps:$4 sm:$0xff]   ;;  %v3895_v51 = vld [vmem:[%s3844_s9 + $0xa0] ss:$8 sps:$4 sm:$0xff]  }
  0x6a   : > { %v3206_v49 = vld [vmem:[#allocation5 + $0x98] ss:$24 sps:$4 sm:$0xff]   ;;  %v3214_v50 = vld [vmem:[#allocation5 + $0xcc] ss:$24 sps:$4 sm:$0xff]   ;;  %v3212_v52 = vld [vmem:[#allocation5 + $0xc8] ss:$24 sps:$4 sm:$0xff]  }
  0x6b   : > { %3068 = vmatpush1.bf16.msra.mxu1 %v3157_v9  ;;  %1013 = vmatpush1.bf16.msra.mxu0 %v3157_v9  ;;  %v3898_v53 = vld [vmem:[%s3844_s9 + $0xb4] ss:$8 sps:$4 sm:$0xff]   ;;  %v3901_v55 = vld [vmem:[%s3844_s9 + $0x20] ss:$8 sps:$4 sm:$0xff]   ;;  %v3215_v57 = vld [vmem:[#allocation5 + $0xf8] ss:$24 sps:$4 sm:$0xff]  }
  0x6c   : > { %3053 = vmatprep.subr.bf16.mxu1 %v3158_v10  ;;  %1014 = vmatprep.subr.bf16.mxu0 %v3158_v10  ;;  %v3217_v54 = vld [vmem:[#allocation5 + $0xfc] ss:$24 sps:$4 sm:$0xff]   ;;  %v3223_v58 = vld [vmem:[#allocation5 + $0x12c] ss:$24 sps:$4 sm:$0xff]   ;;  %v3911_v59 = vld [vmem:[%s3844_s9 + $0xb0] ss:$8 sps:$4 sm:$0xff]  }
  0x6d   : > { %v3905_v56 = vld [vmem:[%s3844_s9 + $0x34] ss:$8 sps:$4 sm:$0xff]   ;;  %v3221_v60 = vld [vmem:[#allocation5 + $0x128] ss:$24 sps:$4 sm:$0xff]   ;;  %v3914_v61 = vld [vmem:[%s3844_s9 + $0xc4] ss:$8 sps:$4 sm:$0xff]  }
  0x6e   : > { %v3226_v62 = vld [vmem:[#allocation5 + $0x15c] ss:$24 sps:$4 sm:$0xff]   ;;  %v3917_v63 = vld [vmem:[%s3844_s9 + $0x30] ss:$8 sps:$4 sm:$0xff]   ;;  %v3921_v0 = vld [vmem:[%s3844_s9 + $0x44] ss:$8 sps:$4 sm:$0xff]  }
  0x6f   : > { %3069 = vmatpush1.bf16.msra.mxu1 %v3160_v11  ;;  %1015 = vmatpush1.bf16.msra.mxu0 %v3160_v11  ;;  %v3224_v1 = vld [vmem:[#allocation5 + $0x158] ss:$24 sps:$4 sm:$0xff]   ;;  %v3232_v2 = vld [vmem:[#allocation5 + $0x18c] ss:$24 sps:$4 sm:$0xff]   ;;  %v3927_v3 = vld [vmem:[%s3844_s9 + $0xc0] ss:$8 sps:$4 sm:$0xff]  }
  0x70   : > { %3054 = vmatprep.subr.bf16.mxu1 %v3161_v12  ;;  %1016 = vmatprep.subr.bf16.mxu0 %v3161_v12  ;;  %v3230_v4 = vld [vmem:[#allocation5 + $0x188] ss:$24 sps:$4 sm:$0xff]   ;;  %v3930_v5 = vld [vmem:[%s3844_s9 + $0xd4] ss:$8 sps:$4 sm:$0xff]   ;;  %v3233_v9 = vld [vmem:[#allocation5 + $0x1b8] ss:$24 sps:$4 sm:$0xff]  }
  0x71   : > { %v3235_v6 = vld [vmem:[#allocation5 + $0x1bc] ss:$24 sps:$4 sm:$0xff]   ;;  %v3933_v7 = vld [vmem:[%s3844_s9 + $0x40] ss:$8 sps:$4 sm:$0xff]   ;;  %v3241_v10 = vld [vmem:[#allocation5 + $0x1ec] ss:$24 sps:$4 sm:$0xff]  }
  0x72   : > { %v3937_v8 = vld [vmem:[%s3844_s9 + $0x54] ss:$8 sps:$4 sm:$0xff]   ;;  %v3943_v11 = vld [vmem:[%s3844_s9 + $0xd0] ss:$8 sps:$4 sm:$0xff]   ;;  %v3239_v12 = vld [vmem:[#allocation5 + $0x1e8] ss:$24 sps:$4 sm:$0xff]  }
  0x73   : > { %3070 = vmatpush1.bf16.msra.mxu1 %v3163_v14  ;;  %1017 = vmatpush1.bf16.msra.mxu0 %v3163_v14  ;;  %v3946_v14 = vld [vmem:[%s3844_s9 + $0xe4] ss:$8 sps:$4 sm:$0xff]   ;;  %s2912_s4 = sshll.u32 %s3840_s6, 9  ;;  %s3047_s26 = sshll.u32 %s3722_s16, 13 }
  0x74   : > { %3055 = vmatprep.subr.bf16.mxu1 %v3164_v15  ;;  %1018 = vmatprep.subr.bf16.mxu0 %v3164_v15  ;;  %v3244_v15 = vld [vmem:[#allocation5 + $0x21c] ss:$24 sps:$4 sm:$0xff]   ;;  %s4804_s25 = scalar_lea.vmem [#allocation7], %s2912_s4  ;;  %s4872_s27 = scalar_lea.hbm %s4924_s3, %s3047_s26 }
  0x75   : > { %s2819_s5 = sshll.u32 %s4804_s25, 4  ;;  %s2806_s16 = scalar_lea.sflag [#allocation4], %s3840_s6  ;;  %s4874_s5 = int_to_ptr.vmem [resolvable:$true] %s2819_s5 }
  0x76   : > { %s3600_s28 = scalar_lea.vmem %s4874_s5, 8192  ;;  %s3678_s29 = smov [#allocation7]  }
  0x77   : > { %3071 = vmatpush1.bf16.msra.mxu1 %v3166_v16  ;;  %1019 = vmatpush1.bf16.msra.mxu0 %v3166_v16  ;;  %v3949_v16 = vld [vmem:[%s3844_s9 + $0x50] ss:$8 sps:$4 sm:$0xff]   ;;  %p3601_p4 = scmp.ne.s32.totalorder %s4874_s5, %s3600_s28  ;;  %s3604_s23 = sshll.u32 %s3678_s29, 4  ;;  %s3605_s23 = int_to_ptr.vmem [resolvable:$false] %s3604_s23 }
  0x78   : > { %3056 = vmatprep.subr.bf16.mxu1 %v3167_v17  ;;  %1020 = vmatprep.subr.bf16.mxu0 %v3167_v17  ;;  %v3953_v17 = vld [vmem:[%s3844_s9 + $0x64] ss:$8 sps:$4 sm:$0xff]   ;;  %s3606_s30 = scalar_lea.vmem %s3605_s23, 16384  ;;  %p3607_p10 = scmp.lt.s32.totalorder %s4874_s5, %s3605_s23 }
  0x79   : > { %p3602_p6 = pnand %p3601_p4, %p3792_p12  ;;  %p3608_p13 = scmp.lt.s32.totalorder %s3606_s30, %s3600_s28 }
  0x7b   : > { %3072 = vmatpush1.bf16.msra.mxu1 %v3169_v18  ;;  %1021 = vmatpush1.bf16.msra.mxu0 %v3169_v18  ;;  %v3242_v18 = vld [vmem:[#allocation5 + $0x218] ss:$24 sps:$4 sm:$0xff]   ;;  %p3603_p8 = pneg %p3602_p6  ;;  %p3609_p3 = por %p3608_p13, %p3607_p10 }
  0x7c   : > { %3057 = vmatprep.subr.bf16.mxu1 %v3170_v19  ;;  %1022 = vmatprep.subr.bf16.mxu0 %v3170_v19  ;;  %v3250_v19 = vld [vmem:[#allocation5 + $0x24c] ss:$24 sps:$4 sm:$0xff]  }
  0x7d   : > { %p3610_p7 = pnand %p3609_p3, %p3603_p8 }
  0x7f   : > { %3073 = vmatpush1.bf16.msra.mxu1 %v3172_v20  ;;  %1023 = vmatpush1.bf16.msra.mxu0 %v3172_v20  ;;  %v3247_v20 = vld [vmem:[%s3844_s9 + $0xe0] ss:$8 sps:$4 sm:$0xff]  }
  0x80   : > { %3058 = vmatprep.subr.bf16.mxu1 %v3173_v21  ;;  %1024 = vmatprep.subr.bf16.mxu0 %v3173_v21  ;;  %v3248_v21 = vld [vmem:[#allocation5 + $0x248] ss:$24 sps:$4 sm:$0xff]  }
  0x83   : > { %3074 = vmatpush1.bf16.msra.mxu1 %v3175_v22  ;;  %1025 = vmatpush1.bf16.msra.mxu0 %v3175_v22  ;;  %v3254_v22 = vld [vmem:[%s3844_s9 + $0xf4] ss:$8 sps:$4 sm:$0xff]  }
  0x84   : > { %3059 = vmatprep.subr.bf16.mxu1 %v3176_v23  ;;  %1026 = vmatprep.subr.bf16.mxu0 %v3176_v23  ;;  %v3253_v23 = vld [vmem:[#allocation5 + $0x27c] ss:$24 sps:$4 sm:$0xff]  }
  0x87   : > { %3075 = vmatpush1.bf16.msra.mxu1 %v3178_v24  ;;  %1027 = vmatpush1.bf16.msra.mxu0 %v3178_v24  ;;  %v3961_v24 = vld [vmem:[%s3844_s9 + $0x60] ss:$8 sps:$4 sm:$0xff]  }
  0x88   : > { %3060 = vmatprep.subr.bf16.mxu1 %v3179_v25  ;;  %1028 = vmatprep.subr.bf16.mxu0 %v3179_v25  ;;  %v3964_v25 = vld [vmem:[%s3844_s9 + $0x74] ss:$8 sps:$4 sm:$0xff]  }
  0x8b   : > { %3076 = vmatpush1.bf16.msra.mxu1 %v3181_v26  ;;  %1029 = vmatpush1.bf16.msra.mxu0 %v3181_v26  ;;  %v3251_v26 = vld [vmem:[#allocation5 + $0x278] ss:$24 sps:$4 sm:$0xff]  }
  0x8c   : > { %3061 = vmatprep.subr.bf16.mxu1 %v3182_v27  ;;  %1030 = vmatprep.subr.bf16.mxu0 %v3182_v27  ;;  %v3259_v27 = vld [vmem:[#allocation5 + $0x2ac] ss:$24 sps:$4 sm:$0xff]  }
  0x8f   : > { %3077 = vmatpush1.bf16.msra.mxu1 %v3184_v28  ;;  %1031 = vmatpush1.bf16.msra.mxu0 %v3184_v28  ;;  %v3969_v28 = vld [vmem:[%s3844_s9 + $0xf0] ss:$8 sps:$4 sm:$0xff]  }
  0x90   : > { %3062 = vmatprep.subr.bf16.mxu1 %v3185_v29  ;;  %1032 = vmatprep.subr.bf16.mxu0 %v3185_v29  ;;  %v3257_v29 = vld [vmem:[#allocation5 + $0x2a8] ss:$24 sps:$4 sm:$0xff]  }
  0x93   : > { %3078 = vmatpush1.bf16.msra.mxu1 %v3187_v30  ;;  %1033 = vmatpush1.bf16.msra.mxu0 %v3187_v30  ;;  %v3262_v30 = vld [vmem:[#allocation5 + $0x2dc] ss:$24 sps:$4 sm:$0xff]  }
  0x94   : > { %3063 = vmatprep.subr.bf16.mxu1 %v3188_v32  ;;  %1034 = vmatprep.subr.bf16.mxu0 %v3188_v32  ;;  %v3972_v32 = vld [vmem:[%s3844_s9 + $0x70] ss:$8 sps:$4 sm:$0xff]  }
  0x97   : > { %3079 = vmatpush1.bf16.msra.mxu1 %v3190_v33  ;;  %1035 = vmatpush1.bf16.msra.mxu0 %v3190_v33  ;;  %v3260_v33 = vld [vmem:[#allocation5 + $0x2d8] ss:$24 sps:$4 sm:$0xff]  }
  0x98   : > { %1197 = vmatprep.subr.bf16.mxu1 %v3196_v34 }
  0x9a   : > { %1117 = vmatmul.mubr.bf16.vlgmr.msra.gmra.mrb[0].mxu1 %v3863_v35  ;;  %1037 = vmatmul.mubr.bf16.vlgmr.msra.gmra.mrb[0].mxu0 %v3869_v39 }
  0x9b   : > { %1198 = vmatpush1.bf16.msra.mxu1 %v3194_v36  ;;  %1126 = vmatprep.mubr.bf16.mxu1 %v3866_v38 }
  0x9c   : > { %1199 = vmatprep.subr.bf16.mxu1 %v3199_v37  ;;  %1046 = vmatprep.mubr.bf16.mxu0 %v3872_v40 }
  0x9f   : > { %1200 = vmatpush1.bf16.msra.mxu1 %v3197_v41 }
  0xa0   : > { %1201 = vmatprep.subr.bf16.mxu1 %v3205_v42 }
  0xa2   : > { %1127 = vmatmul.mubr.bf16.gmra.mrb[4].mxu1 %v3878_v43  ;;  %1047 = vmatmul.mubr.bf16.gmra.mrb[4].mxu0 %v3885_v47 }
  0xa3   : > { %1202 = vmatpush1.bf16.msra.mxu1 %v3203_v44  ;;  %1136 = vmatprep.mubr.bf16.mxu1 %v3882_v45 }
  0xa4   : > { %1203 = vmatprep.subr.bf16.mxu1 %v3208_v46  ;;  %1056 = vmatprep.mubr.bf16.mxu0 %v3889_v48 }
  0xa7   : > { %1204 = vmatpush1.bf16.msra.mxu1 %v3206_v49 }
  0xa8   : > { %1205 = vmatprep.subr.bf16.mxu1 %v3214_v50 }
  0xaa   : > { %1137 = vmatmul.mubr.bf16.gmra.mrb[8].mxu1 %v3895_v51  ;;  %1057 = vmatmul.mubr.bf16.gmra.mrb[8].mxu0 %v3901_v55 }
  0xab   : > { %1206 = vmatpush1.bf16.msra.mxu1 %v3212_v52  ;;  %1146 = vmatprep.mubr.bf16.mxu1 %v3898_v53  ;;  %v3307_v52 = vld [vmem:[#allocation5 + $0x134] ss:$24 sps:$4 sm:$0xff]  }
  0xac   : > { %1207 = vmatprep.subr.bf16.mxu1 %v3217_v54  ;;  %1066 = vmatprep.mubr.bf16.mxu0 %v3905_v56 }
  0xaf   : > { %1208 = vmatpush1.bf16.msra.mxu1 %v3215_v57 }
  0xb0   : > { %1209 = vmatprep.subr.bf16.mxu1 %v3223_v58 }
  0xb2   : > { %1147 = vmatmul.mubr.bf16.gmra.mrb[12].mxu1 %v3911_v59  ;;  %1067 = vmatmul.mubr.bf16.gmra.mrb[12].mxu0 %v3917_v63 }
  0xb3   : > { %1210 = vmatpush1.bf16.msra.mxu1 %v3221_v60  ;;  %1156 = vmatprep.mubr.bf16.mxu1 %v3914_v61 }
  0xb4   : > { %1211 = vmatprep.subr.bf16.mxu1 %v3226_v62  ;;  %1076 = vmatprep.mubr.bf16.mxu0 %v3921_v0 }
  0xb7   : > { %1212 = vmatpush1.bf16.msra.mxu1 %v3224_v1 }
  0xb8   : > { %1213 = vmatprep.subr.bf16.mxu1 %v3232_v2 }
  0xba   : > { %1157 = vmatmul.mubr.bf16.gmra.mrb[16].mxu1 %v3927_v3  ;;  %1077 = vmatmul.mubr.bf16.gmra.mrb[16].mxu0 %v3933_v7 }
  0xbb   : > { %1214 = vmatpush1.bf16.msra.mxu1 %v3230_v4  ;;  %1166 = vmatprep.mubr.bf16.mxu1 %v3930_v5 }
  0xbc   : > { %1215 = vmatprep.subr.bf16.mxu1 %v3235_v6  ;;  %1086 = vmatprep.mubr.bf16.mxu0 %v3937_v8 }
  0xbf   : > { %1216 = vmatpush1.bf16.msra.mxu1 %v3233_v9 }
  0xc0   : > { %1217 = vmatprep.subr.bf16.mxu1 %v3241_v10 }
  0xc2   : > { %1167 = vmatmul.mubr.bf16.gmra.mrb[20].mxu1 %v3943_v11  ;;  %1087 = vmatmul.mubr.bf16.gmra.mrb[20].mxu0 %v3949_v16 }
  0xc3   : > { %1218 = vmatpush1.bf16.msra.mxu1 %v3239_v12  ;;  %1176 = vmatprep.mubr.bf16.mxu1 %v3946_v14 }
  0xc4   : > { %1219 = vmatprep.subr.bf16.mxu1 %v3244_v15  ;;  %1096 = vmatprep.mubr.bf16.mxu0 %v3953_v17 }
  0xc7   : > { %1220 = vmatpush1.bf16.msra.mxu1 %v3242_v18 }
  0xc8   : > { %1221 = vmatprep.subr.bf16.mxu1 %v3250_v19 }
  0xca   : > { %1177 = vmatmul.mubr.bf16.gmra.mrb[24].mxu1 %v3247_v20  ;;  %1097 = vmatmul.mubr.bf16.gmra.mrb[24].mxu0 %v3961_v24 }
  0xcb   : > { %1222 = vmatpush1.bf16.msra.mxu1 %v3248_v21  ;;  %1186 = vmatprep.mubr.bf16.mxu1 %v3254_v22 }
  0xcc   : > { %1223 = vmatprep.subr.bf16.mxu1 %v3253_v23  ;;  %1106 = vmatprep.mubr.bf16.mxu0 %v3964_v25 }
  0xcf   : > { %1224 = vmatpush1.bf16.msra.mxu1 %v3251_v26 }
  0xd0   : > { %1225 = vmatprep.subr.bf16.mxu1 %v3259_v27 }
  0xd2   : > { %1187 = vmatmul.mubr.bf16.gmra.mrb[28].mxu1 %v3969_v28  ;;  %1107 = vmatmul.mubr.bf16.gmra.mrb[28].mxu0 %v3972_v32 }
  0xd3   : > { %1226 = vmatpush1.bf16.msra.mxu1 %v3257_v29  ;;  %1229 = vmatprep.mubr.bf16.mxu1 %v3859_v31  ;;  %v3301_v29 = vld [vmem:[#allocation5 + $0xd4] ss:$24 sps:$4 sm:$0xff]  }
  0xd4   : > { %1227 = vmatprep.subr.bf16.mxu1 %v3262_v30  ;;  %1422 = vmatprep.mubr.bf16.mxu0 %v3859_v31 }
  0xd7   : > { %1228 = vmatpush1.bf16.msra.mxu1 %v3260_v33 }
  0xda   : > { %1230 = vmatmul.mubr.bf16.vlgmr.msra.gmra.mrb[32].mxu1 %v3869_v39 }
  0xdb   : > { %1239 = vmatprep.mubr.bf16.mxu1 %v3872_v40 }
  0xe2   : > { %1240 = vmatmul.mubr.bf16.gmra.mrb[36].mxu1 %v3885_v47 }
  0xe3   : > { %1249 = vmatprep.mubr.bf16.mxu1 %v3889_v48 }
  0xea   : > { %1250 = vmatmul.mubr.bf16.gmra.mrb[40].mxu1 %v3901_v55 }
  0xeb   : > { %1259 = vmatprep.mubr.bf16.mxu1 %v3905_v56 }
  0xf2   : > { %1260 = vmatmul.mubr.bf16.gmra.mrb[44].mxu1 %v3917_v63 }
  0xf3   : > { %1269 = vmatprep.mubr.bf16.mxu1 %v3921_v0 }
  0xfa   : > { %1270 = vmatmul.mubr.bf16.gmra.mrb[48].mxu1 %v3933_v7 }
  0xfb   : > { %1279 = vmatprep.mubr.bf16.mxu1 %v3937_v8 }
 0x102   : > { %1280 = vmatmul.mubr.bf16.gmra.mrb[52].mxu1 %v3949_v16 }
 0x103   : > { %1289 = vmatprep.mubr.bf16.mxu1 %v3953_v17 }
 0x10a   : > { %1290 = vmatmul.mubr.bf16.gmra.mrb[56].mxu1 %v3961_v24 }
 0x10b   : > { %1299 = vmatprep.mubr.bf16.mxu1 %v3964_v25 }
 0x112   : > { %1300 = vmatmul.mubr.bf16.gmra.mrb[60].mxu1 %v3972_v32 }
 0x113   : > { %1309 = vmatprep.mubr.bf16.mxu1 %v3855_v13  ;;  %v4928_v13 = vlaneseq }
 0x115   : > { %v4008_v31 = vshrl.u32 %v4928_v13, 7 }
 0x117   : > { %4971 = vst [vmem:[#allocation11_spill] sm:$0xff] %v4008_v31  ;;  %v336_v34 = vsub.s32 0, %v4008_v31  ;;  %v340_v36 = vsub.s32 1, %v4008_v31 }
 0x11a   : > { %1310 = vmatmul.mubr.bf16.gmra.mrb[64].mxu1 %v3863_v35  ;;  %v4014_v35 = vld [vmem:[%s4923_s2] sm:$0x3f] }
 0x11b   : > { %1319 = vmatprep.mubr.bf16.mxu1 %v3866_v38  ;;  %4972 = vst [vmem:[#allocation12_spill] sm:$0xff] %v4014_v35  ;;  %v4018_v37 = vrot.slane %v4014_v35, %v336_v34  ;;  %v4021_v41 = vrot.slane %v4014_v35, %v340_v36 }
 0x122   : > { %1320 = vmatmul.mubr.bf16.gmra.mrb[68].mxu1 %v3878_v43 }
 0x123   : > { %1329 = vmatprep.mubr.bf16.mxu1 %v3882_v45 }
 0x12a   : > { %1330 = vmatmul.mubr.bf16.gmra.mrb[72].mxu1 %v3895_v51  ;;  %v3305_v51 = vld [vmem:[#allocation5 + $0x130] ss:$24 sps:$4 sm:$0xff]  }
 0x12b   : > { %1339 = vmatprep.mubr.bf16.mxu1 %v3898_v53 }
 0x132   : > { %1340 = vmatmul.mubr.bf16.gmra.mrb[76].mxu1 %v3911_v59 }
 0x133   : > { %1349 = vmatprep.mubr.bf16.mxu1 %v3914_v61 }
 0x13a   : > { %1350 = vmatmul.mubr.bf16.gmra.mrb[80].mxu1 %v3927_v3 }
 0x13b   : > { %1359 = vmatprep.mubr.bf16.mxu1 %v3930_v5 }
 0x142   : > { %1360 = vmatmul.mubr.bf16.gmra.mrb[84].mxu1 %v3943_v11 }
 0x143   : > { %1369 = vmatprep.mubr.bf16.mxu1 %v3946_v14  ;;  %v3304_v14 = vld [vmem:[#allocation5 + $0x104] ss:$24 sps:$4 sm:$0xff]  }
 0x14a   : > { %1370 = vmatmul.mubr.bf16.gmra.mrb[88].mxu1 %v3247_v20 }
 0x14b   : > { %1379 = vmatprep.mubr.bf16.mxu1 %v3254_v22 }
 0x152   : > { %1380 = vmatmul.mubr.bf16.gmra.mrb[92].mxu1 %v3969_v28 }
 0x16d   : > { %v1118_v38 = vpop.f32.mrb[0].mxu1  ;;  %v1038_v1 = vpop.f32.mrb[0].mxu0 }
 0x16e   : > { %v1120_v42 = vpop.f32.mrb[1].mxu1  ;;  %v4024_v44 = vadd.f32 %v1118_v38, %v4018_v37  ;;  %v1040_v2 = vpop.f32.mrb[1].mxu0 }
 0x16f   : > { %v1122_v43 = vpop.f32.mrb[2].mxu1  ;;  %v4030_v49 = vadd.f32 %v1120_v42, %v4021_v41 }
 0x170   : > { %v4027_v45 = vadd.f32 %v1122_v43, %v4018_v37  ;;  %v1124_v46 = vpop.f32.mrb[3].mxu1 }
 0x171   : > { %v4033_v50 = vadd.f32 %v1124_v46, %v4021_v41 }
 0x175   : > { %v1128_v53 = vpop.f32.mrb[4].mxu1 }
 0x176   : > { %v1130_v54 = vpop.f32.mrb[5].mxu1  ;;  %v4040_v58 = vadd.f32 %v1128_v53, %v4018_v37 }
 0x177   : > { %v1132_v57 = vpop.f32.mrb[6].mxu1  ;;  %v4046_v61 = vadd.f32 %v1130_v54, %v4021_v41  ;;  %v3298_v54 = vld [vmem:[#allocation5 + $0xa4] ss:$24 sps:$4 sm:$0xff]  }
 0x178   : > { %4973 = vst [vmem:[#allocation13_spill] sm:$0xff] %v4040_v58  ;;  %v4043_v59 = vadd.f32 %v1132_v57, %v4018_v37  ;;  %v1134_v60 = vpop.f32.mrb[7].mxu1 }
 0x179   : > { %4975 = vst [vmem:[#allocation15_spill] sm:$0xff] %v4046_v61  ;;  %v4049_v62 = vadd.f32 %v1134_v60, %v4021_v41  ;;  %v3287_v60 = vld [vmem:[#allocation5 + $0x10] ss:$24 sps:$4 sm:$0xff]  }
 0x17a   : > { %4974 = vst [vmem:[#allocation14_spill] sm:$0xff] %v4043_v59 }
 0x17d   : > { %v1138_v3 = vpop.f32.mrb[8].mxu1 }
 0x17e   : > { %v1140_v4 = vpop.f32.mrb[9].mxu1  ;;  %v4056_v6 = vadd.f32 %v1138_v3, %v4018_v37  ;;  %v3289_v3 = vld [vmem:[#allocation5 + $0x14] ss:$24 sps:$4 sm:$0xff]  }
 0x17f   : > { %v1142_v5 = vpop.f32.mrb[10].mxu1  ;;  %v4062_v11 = vadd.f32 %v1140_v4, %v4021_v41  ;;  %1390 = vmatprep.subr.bf16.mxu0 %v3289_v3  ;;  %v3293_v3 = vld [vmem:[#allocation5 + $0x70] ss:$24 sps:$4 sm:$0xff]  }
 0x180   : > { %4976 = vst [vmem:[#allocation16_spill] sm:$0xff] %v4056_v6  ;;  %v4059_v9 = vadd.f32 %v1142_v5, %v4018_v37  ;;  %v1144_v10 = vpop.f32.mrb[11].mxu1  ;;  %1391 = vmatpush1.bf16.msra.mxu0 %v3287_v60 }
 0x181   : > { %4978 = vst [vmem:[#allocation18_spill] sm:$0xff] %v4062_v11  ;;  %v4065_v12 = vadd.f32 %v1144_v10, %v4021_v41  ;;  %v3290_v10 = vld [vmem:[#allocation5 + $0x40] ss:$24 sps:$4 sm:$0xff]  }
 0x182   : > { %4977 = vst [vmem:[#allocation17_spill] sm:$0xff] %v4059_v9 }
 0x183   : > { %4979 = vst [vmem:[#allocation19_spill] sm:$0xff] %v4065_v12 }
 0x185   : > { %v1148_v18 = vpop.f32.mrb[12].mxu1 }
 0x186   : > { %v1150_v19 = vpop.f32.mrb[13].mxu1  ;;  %v4072_v21 = vadd.f32 %v1148_v18, %v4018_v37  ;;  %v3292_v18 = vld [vmem:[#allocation5 + $0x44] ss:$24 sps:$4 sm:$0xff]  }
 0x187   : > { %v1152_v20 = vpop.f32.mrb[14].mxu1  ;;  %v4078_v26 = vadd.f32 %v1150_v19, %v4021_v41  ;;  %1392 = vmatprep.subr.bf16.mxu0 %v3292_v18  ;;  %v3296_v18 = vld [vmem:[#allocation5 + $0xa0] ss:$24 sps:$4 sm:$0xff]  }
 0x188   : > { %4980 = vst [vmem:[#allocation20_spill] sm:$0xff] %v4072_v21  ;;  %v4075_v22 = vadd.f32 %v1152_v20, %v4018_v37  ;;  %v1154_v23 = vpop.f32.mrb[15].mxu1  ;;  %1393 = vmatpush1.bf16.msra.mxu0 %v3290_v10 }
 0x189   : > { %4982 = vst [vmem:[#allocation22_spill] sm:$0xff] %v4078_v26  ;;  %v4081_v27 = vadd.f32 %v1154_v23, %v4021_v41 }
 0x18a   : > { %4981 = vst [vmem:[#allocation21_spill] sm:$0xff] %v4075_v22 }
 0x18b   : > { %4983 = vst [vmem:[#allocation23_spill] sm:$0xff] %v4081_v27 }
 0x18d   : > { %v1158_v33 = vpop.f32.mrb[16].mxu1 }
 0x18e   : > { %v1160_v34 = vpop.f32.mrb[17].mxu1  ;;  %v4088_v38 = vadd.f32 %v1158_v33, %v4018_v37 }
 0x18f   : > { %v1162_v36 = vpop.f32.mrb[18].mxu1  ;;  %v4094_v46 = vadd.f32 %v1160_v34, %v4021_v41 }
 0x190   : > { %4984 = vst [vmem:[#allocation24_spill] sm:$0xff] %v4088_v38  ;;  %v4091_v42 = vadd.f32 %v1162_v36, %v4018_v37  ;;  %v1164_v43 = vpop.f32.mrb[19].mxu1 }
 0x191   : > { %4986 = vst [vmem:[#allocation26_spill] sm:$0xff] %v4094_v46  ;;  %v4097_v53 = vadd.f32 %v1164_v43, %v4021_v41 }
 0x192   : > { %4985 = vst [vmem:[#allocation25_spill] sm:$0xff] %v4091_v42 }
 0x193   : > { %4987 = vst [vmem:[#allocation27_spill] sm:$0xff] %v4097_v53 }
 0x195   : > { %v1168_v4 = vpop.f32.mrb[20].mxu1 }
 0x196   : > { %v1170_v5 = vpop.f32.mrb[21].mxu1  ;;  %v4104_v20 = vadd.f32 %v1168_v4, %v4018_v37  ;;  %v3295_v4 = vld [vmem:[#allocation5 + $0x74] ss:$24 sps:$4 sm:$0xff]  }
 0x197   : > { %v1172_v19 = vpop.f32.mrb[22].mxu1  ;;  %v4110_v34 = vadd.f32 %v1170_v5, %v4021_v41  ;;  %1394 = vmatprep.subr.bf16.mxu0 %v3295_v4 }
 0x198   : > { %4988 = vst [vmem:[#allocation28_spill] sm:$0xff] %v4104_v20  ;;  %v4107_v23 = vadd.f32 %v1172_v19, %v4018_v37  ;;  %v1174_v33 = vpop.f32.mrb[23].mxu1  ;;  %1395 = vmatpush1.bf16.msra.mxu0 %v3293_v3 }
 0x199   : > { %4990 = vst [vmem:[#allocation30_spill] sm:$0xff] %v4110_v34  ;;  %v4113_v36 = vadd.f32 %v1174_v33, %v4021_v41  ;;  %1396 = vmatprep.subr.bf16.mxu0 %v3298_v54  ;;  %v3302_v54 = vld [vmem:[#allocation5 + $0x100] ss:$24 sps:$4 sm:$0xff]  }
 0x19a   : > { %4989 = vst [vmem:[#allocation29_spill] sm:$0xff] %v4107_v23  ;;  %v3316_v23 = vld [vmem:[#allocation5 + $0x1c4] ss:$24 sps:$4 sm:$0xff]  }
 0x19b   : > { %4991 = vst [vmem:[#allocation31_spill] sm:$0xff] %v4113_v36 }
 0x19c   : > { %1397 = vmatpush1.bf16.msra.mxu0 %v3296_v18  ;;  %v344_v18 = vsub.s32 2, %v4008_v31 }
 0x19d   : > { %v1178_v13 = vpop.f32.mrb[24].mxu1  ;;  %1398 = vmatprep.subr.bf16.mxu0 %v3301_v29 }
 0x19e   : > { %v1180_v19 = vpop.f32.mrb[25].mxu1  ;;  %v4120_v57 = vadd.f32 %v1178_v13, %v4018_v37  ;;  %v3299_v13 = vld [vmem:[#allocation5 + $0xd0] ss:$24 sps:$4 sm:$0xff]  }
 0x19f   : > { %v1182_v5 = vpop.f32.mrb[26].mxu1  ;;  %v4126_v10 = vadd.f32 %v1180_v19, %v4021_v41 }
 0x1a0   : > { %4992 = vst [vmem:[#allocation32_spill] sm:$0xff] %v4120_v57  ;;  %v4123_v33 = vadd.f32 %v1182_v5, %v4018_v37  ;;  %v1184_v43 = vpop.f32.mrb[27].mxu1  ;;  %1399 = vmatpush1.bf16.msra.mxu0 %v3299_v13  ;;  %v348_v13 = vsub.s32 3, %v4008_v31  ;;  %v4158_v57 = vrot.slane %v4014_v35, %v344_v18 }
 0x1a1   : > { %4994 = vst [vmem:[#allocation34_spill] sm:$0xff] %v4126_v10  ;;  %v4129_v60 = vadd.f32 %v1184_v43, %v4021_v41  ;;  %1400 = vmatprep.subr.bf16.mxu0 %v3304_v14  ;;  %v4154_v14 = vadd.f32 %v1038_v1, %v4018_v37 }
 0x1a2   : > { %4993 = vst [vmem:[#allocation33_spill] sm:$0xff] %v4123_v33 }
 0x1a3   : > { %4995 = vst [vmem:[#allocation35_spill] sm:$0xff] %v4129_v60 }
 0x1a4   : > { %1401 = vmatpush1.bf16.msra.mxu0 %v3302_v54  ;;  %v3310_v54 = vld [vmem:[#allocation5 + $0x164] ss:$24 sps:$4 sm:$0xff]  }
 0x1a5   : > { %v1188_v30 = vpop.f32.mrb[28].mxu1  ;;  %1402 = vmatprep.subr.bf16.mxu0 %v3307_v52 }
 0x1a6   : > { %v1190_v5 = vpop.f32.mrb[29].mxu1  ;;  %v4136_v15 = vadd.f32 %v1188_v30, %v4018_v37 }
 0x1a7   : > { %v1192_v19 = vpop.f32.mrb[30].mxu1  ;;  %v4143_v4 = vadd.f32 %v1190_v5, %v4021_v41  ;;  %v1041_v5 = vadd.f32 %v1040_v2, %v4021_v41 }
 0x1a8   : > { %4996 = vst [vmem:[#allocation36_spill] sm:$0xff] %v4136_v15  ;;  %v4139_v43 = vadd.f32 %v1192_v19, %v4018_v37  ;;  %v1194_v3 = vpop.f32.mrb[31].mxu1  ;;  %1403 = vmatpush1.bf16.msra.mxu0 %v3305_v51 }
 0x1a9   : > { %4998 = vst [vmem:[#allocation38_spill] sm:$0xff] %v4143_v4  ;;  %v4146_v29 = vadd.f32 %v1194_v3, %v4021_v41  ;;  %v1042_v3 = vpop.f32.mrb[2].mxu0  ;;  %v3308_v4 = vld [vmem:[#allocation5 + $0x160] ss:$24 sps:$4 sm:$0xff]   ;;  %1404 = vmatprep.subr.bf16.mxu0 %v3310_v54 }
 0x1aa   : > { %4997 = vst [vmem:[#allocation37_spill] sm:$0xff] %v4139_v43  ;;  %v4161_v33 = vadd.f32 %v1042_v3, %v4018_v37  ;;  %v1044_v30 = vpop.f32.mrb[3].mxu0  ;;  %v4164_v43 = vrot.slane %v4014_v35, %v348_v13  ;;  %v3313_v3 = vld [vmem:[#allocation5 + $0x194] ss:$24 sps:$4 sm:$0xff]  }
 0x1ab   : > { %4999 = vst [vmem:[#allocation39_spill] sm:$0xff] %v4146_v29  ;;  %v1045_v19 = vadd.f32 %v1044_v30, %v4021_v41  ;;  %v1048_v18 = vpop.f32.mrb[4].mxu0 }
 0x1ac   : > { %v4170_v10 = vadd.f32 %v1048_v18, %v4018_v37  ;;  %v1050_v60 = vpop.f32.mrb[5].mxu0  ;;  %1405 = vmatpush1.bf16.msra.mxu0 %v3308_v4  ;;  %v3311_v18 = vld [vmem:[#allocation5 + $0x190] ss:$24 sps:$4 sm:$0xff]  }
 0x1ad   : > { %v1231_v15 = vpop.f32.mrb[32].mxu1  ;;  %v1584_v31 = vpack.c.bf16 %v1045_v19, %v1041_v5  ;;  %v4175_v51 = vadd.f32 %v1050_v60, %v4021_v41  ;;  %v1052_v35 = vpop.f32.mrb[6].mxu0  ;;  %1406 = vmatprep.subr.bf16.mxu0 %v3313_v3 }
 0x1ae   : > { %v1233_v1 = vpop.f32.mrb[33].mxu1  ;;  %v1232_v13 = vadd.f32 %v1231_v15, %v4158_v57  ;;  %v4180_v19 = vadd.f32 %v1052_v35, %v4018_v37  ;;  %v1054_v5 = vpop.f32.mrb[7].mxu0 }
 0x1af   : > { %v1235_v29 = vpop.f32.mrb[34].mxu1  ;;  %v1234_v2 = vadd.f32 %v1233_v1, %v4164_v43  ;;  %1711 = vmatprep.mubr.bf16.mxu1 %v1584_v31  ;;  %v4183_v15 = vadd.f32 %v1054_v5, %v4021_v41  ;;  %v1058_v4 = vpop.f32.mrb[8].mxu0 }
 0x1b0   : > { %v1236_v52 = vadd.f32 %v1235_v29, %v4158_v57  ;;  %v1237_v30 = vpop.f32.mrb[35].mxu1  ;;  %1407 = vmatpush1.bf16.msra.mxu0 %v3311_v18 }
 0x1b1   : > { %v1238_v20 = vadd.f32 %v1237_v30, %v4164_v43  ;;  %1408 = vmatprep.subr.bf16.mxu0 %v3316_v23  ;;  %v3319_v30 = vld [vmem:[#allocation5 + $0x1f4] ss:$24 sps:$4 sm:$0xff]   ;;  %v3317_v23 = vld [vmem:[#allocation5 + $0x1f0] ss:$24 sps:$4 sm:$0xff]  }
 0x1b2   : > { %v1585_v54 = vpack.c.bf16 %v1236_v52, %v1232_v13  ;;  %v3314_v13 = vld [vmem:[#allocation5 + $0x1c0] ss:$24 sps:$4 sm:$0xff]  }
 0x1b3   : > { %v1586_v29 = vpack.c.bf16 %v1238_v20, %v1234_v2  ;;  %v4190_v20 = vadd.f32 %v1058_v4, %v4018_v37  ;;  %v1060_v2 = vpop.f32.mrb[9].mxu0 }
 0x1b4   : > { %v1062_v1 = vpop.f32.mrb[10].mxu0  ;;  %1409 = vmatpush1.bf16.msra.mxu0 %v3314_v13 }
 0x1b5   : > { %v1241_v31 = vpop.f32.mrb[36].mxu1  ;;  %1679 = vmatprep.subr.bf16.mxu1 %v1586_v29  ;;  %v4197_v18 = vadd.f32 %v1062_v1, %v4018_v37  ;;  %1410 = vmatprep.subr.bf16.mxu0 %v3319_v30  ;;  %v3325_v30 = vld [vmem:[#allocation5 + $0x254] ss:$24 sps:$4 sm:$0xff]  }
 0x1b6   : > { %v1243_v35 = vpop.f32.mrb[37].mxu1  ;;  %1680 = vmatpush1.bf16.xpose.msra.mxu1 %v1585_v54  ;;  %v1242_v3 = vadd.f32 %v1241_v31, %v4158_v57  ;;  %v3322_v31 = vld [vmem:[#allocation5 + $0x224] ss:$24 sps:$4 sm:$0xff]  }
 0x1b7   : > { %v1245_v52 = vpop.f32.mrb[38].mxu1  ;;  %v1244_v29 = vadd.f32 %v1243_v35, %v4164_v43  ;;  %v1064_v35 = vpop.f32.mrb[11].mxu0 }
 0x1b8   : > { %v1246_v5 = vadd.f32 %v1245_v52, %v4158_v57  ;;  %v1247_v60 = vpop.f32.mrb[39].mxu1  ;;  %v4202_v52 = vadd.f32 %v1060_v2, %v4021_v41  ;;  %1411 = vmatpush1.bf16.msra.mxu0 %v3317_v23  ;;  %v4205_v1 = vadd.f32 %v1064_v35, %v4021_v41  ;;  %v1068_v13 = vpop.f32.mrb[12].mxu0 }
 0x1b9   : > { %v1248_v54 = vadd.f32 %v1247_v60, %v4164_v43  ;;  %v3320_v60 = vld [vmem:[#allocation5 + $0x220] ss:$24 sps:$4 sm:$0xff]   ;;  %1412 = vmatprep.subr.bf16.mxu0 %v3322_v31 }
 0x1ba   : > { %v1591_v34 = vpack.c.bf16 %v1246_v5, %v1242_v3  ;;  %v4208_v5 = vadd.f32 %v1068_v13, %v4018_v37  ;;  %v3323_v13 = vld [vmem:[#allocation5 + $0x250] ss:$24 sps:$4 sm:$0xff]  }
 0x1bb   : > { %v1592_v36 = vpack.c.bf16 %v1248_v54, %v1244_v29  ;;  %v1070_v29 = vpop.f32.mrb[13].mxu0 }
 0x1bc   : > { %v1072_v23 = vpop.f32.mrb[14].mxu0  ;;  %1413 = vmatpush1.bf16.msra.mxu0 %v3320_v60  ;;  %v4222_v21 = vadd.f32 %v1070_v29, %v4021_v41 }
 0x1bd   : > { %v1251_v38 = vpop.f32.mrb[40].mxu1  ;;  %1681 = vmatprep.subr.bf16.mxu1 %v1592_v36  ;;  %v4217_v31 = vadd.f32 %v1072_v23, %v4018_v37  ;;  %1414 = vmatprep.subr.bf16.mxu0 %v3325_v30  ;;  %v3331_v30 = vld [vmem:[#allocation5 + $0x2b4] ss:$24 sps:$4 sm:$0xff]  }
 0x1be   : > { %v1253_v42 = vpop.f32.mrb[41].mxu1  ;;  %1682 = vmatpush1.bf16.xpose.msra.mxu1 %v1591_v34  ;;  %v1252_v2 = vadd.f32 %v1251_v38, %v4158_v57 }
 0x1bf   : > { %v1255_v3 = vpop.f32.mrb[42].mxu1  ;;  %v1254_v35 = vadd.f32 %v1253_v42, %v4164_v43  ;;  %v1074_v42 = vpop.f32.mrb[15].mxu0 }
 0x1c0   : > { %v1256_v36 = vadd.f32 %v1255_v3, %v4158_v57  ;;  %v1257_v54 = vpop.f32.mrb[43].mxu1  ;;  %v3328_v3 = vld [vmem:[#allocation5 + $0x284] ss:$24 sps:$4 sm:$0xff]   ;;  %1415 = vmatpush1.bf16.msra.mxu0 %v3323_v13  ;;  %v1078_v60 = vpop.f32.mrb[16].mxu0 }
 0x1c1   : > { %v1258_v4 = vadd.f32 %v1257_v54, %v4164_v43  ;;  %v3326_v54 = vld [vmem:[#allocation5 + $0x280] ss:$24 sps:$4 sm:$0xff]   ;;  %1416 = vmatprep.subr.bf16.mxu0 %v3328_v3  ;;  %v1080_v23 = vpop.f32.mrb[17].mxu0 }
 0x1c2   : > { %v1597_v46 = vpack.c.bf16 %v1256_v36, %v1252_v2  ;;  %v4225_v2 = vadd.f32 %v1074_v42, %v4021_v41  ;;  %v4228_v36 = vadd.f32 %v1078_v60, %v4018_v37  ;;  %v1082_v13 = vpop.f32.mrb[18].mxu0  ;;  %v3329_v60 = vld [vmem:[#allocation5 + $0x2b0] ss:$24 sps:$4 sm:$0xff]   ;;  %v4242_v6 = vadd.f32 %v1080_v23, %v4021_v41 }
 0x1c3   : > { %v1598_v53 = vpack.c.bf16 %v1258_v4, %v1254_v35  ;;  %v4237_v3 = vadd.f32 %v1082_v13, %v4018_v37 }
 0x1c4   : > { %1417 = vmatpush1.bf16.msra.mxu0 %v3326_v54 }
 0x1c5   : > { %v1261_v34 = vpop.f32.mrb[44].mxu1  ;;  %1683 = vmatprep.subr.bf16.mxu1 %v1598_v53  ;;  %1418 = vmatprep.subr.bf16.mxu0 %v3331_v30 }
 0x1c6   : > { %v1263_v22 = vpop.f32.mrb[45].mxu1  ;;  %1684 = vmatpush1.bf16.xpose.msra.mxu1 %v1597_v46  ;;  %v1262_v29 = vadd.f32 %v1261_v34, %v4158_v57 }
 0x1c7   : > { %v1265_v4 = vpop.f32.mrb[46].mxu1  ;;  %v1264_v42 = vadd.f32 %v1263_v22, %v4164_v43  ;;  %v1084_v22 = vpop.f32.mrb[19].mxu0 }
 0x1c8   : > { %v1266_v53 = vadd.f32 %v1265_v4, %v4158_v57  ;;  %v1267_v35 = vpop.f32.mrb[47].mxu1  ;;  %v3334_v4 = vld [vmem:[#allocation5 + $0x2e4] ss:$24 sps:$4 sm:$0xff]   ;;  %1419 = vmatpush1.bf16.msra.mxu0 %v3329_v60  ;;  %v1088_v54 = vpop.f32.mrb[20].mxu0 }
 0x1c9   : > { %v1268_v38 = vadd.f32 %v1267_v35, %v4164_v43  ;;  %v3332_v35 = vld [vmem:[#allocation5 + $0x2e0] ss:$24 sps:$4 sm:$0xff]   ;;  %1420 = vmatprep.subr.bf16.mxu0 %v3334_v4  ;;  %v4248_v30 = vadd.f32 %v1088_v54, %v4018_v37 }
 0x1ca   : > { %v1603_v26 = vpack.c.bf16 %v1266_v53, %v1262_v29  ;;  %v4245_v29 = vadd.f32 %v1084_v22, %v4021_v41  ;;  %v1090_v53 = vpop.f32.mrb[21].mxu0 }
 0x1cb   : > { %v1604_v27 = vpack.c.bf16 %v1268_v38, %v1264_v42  ;;  %v1092_v42 = vpop.f32.mrb[22].mxu0 }
 0x1cc   : > { %v4257_v34 = vadd.f32 %v1092_v42, %v4018_v37  ;;  %1421 = vmatpush1.bf16.msra.mxu0 %v3332_v35 }
 0x1cd   : > { %v1271_v46 = vpop.f32.mrb[48].mxu1  ;;  %1685 = vmatprep.subr.bf16.mxu1 %v1604_v27 }
 0x1ce   : > { %v1273_v9 = vpop.f32.mrb[49].mxu1  ;;  %1686 = vmatpush1.bf16.xpose.msra.mxu1 %v1603_v26  ;;  %v1272_v23 = vadd.f32 %v1271_v46, %v4158_v57  ;;  %v1094_v26 = vpop.f32.mrb[23].mxu0 }
 0x1cf   : > { %v1275_v38 = vpop.f32.mrb[50].mxu1  ;;  %v1274_v60 = vadd.f32 %v1273_v9, %v4164_v43  ;;  %1423 = vmatmul.mubr.bf16.vlgmr.msra.gmra.mrb[32].mxu0 %v3869_v39  ;;  %v1098_v35 = vpop.f32.mrb[24].mxu0 }
 0x1d0   : > { %v1276_v13 = vadd.f32 %v1275_v38, %v4158_v57  ;;  %v1277_v27 = vpop.f32.mrb[51].mxu1  ;;  %v4262_v38 = vadd.f32 %v1090_v53, %v4021_v41  ;;  %1432 = vmatprep.mubr.bf16.mxu0 %v3872_v40  ;;  %v1100_v42 = vpop.f32.mrb[25].mxu0 }
 0x1d1   : > { %v1278_v22 = vadd.f32 %v1277_v27, %v4164_v43  ;;  %v4266_v27 = vadd.f32 %v1094_v26, %v4021_v41 }
 0x1d2   : > { %v1609_v4 = vpack.c.bf16 %v1276_v13, %v1272_v23  ;;  %v4270_v13 = vadd.f32 %v1098_v35, %v4018_v37 }
 0x1d3   : > { %v1610_v54 = vpack.c.bf16 %v1278_v22, %v1274_v60 }
 0x1d5   : > { %v1281_v11 = vpop.f32.mrb[52].mxu1  ;;  %1687 = vmatprep.subr.bf16.mxu1 %v1610_v54 }
 0x1d6   : > { %v1283_v9 = vpop.f32.mrb[53].mxu1  ;;  %1688 = vmatpush1.bf16.xpose.msra.mxu1 %v1609_v4  ;;  %v1282_v53 = vadd.f32 %v1281_v11, %v4158_v57  ;;  %v1102_v4 = vpop.f32.mrb[26].mxu0  ;;  %v4284_v11 = vadd.f32 %v1100_v42, %v4021_v41 }
 0x1d7   : > { %v1285_v23 = vpop.f32.mrb[54].mxu1  ;;  %v1284_v26 = vadd.f32 %v1283_v9, %v4164_v43  ;;  %v4279_v40 = vadd.f32 %v1102_v4, %v4018_v37  ;;  %1433 = vmatmul.mubr.bf16.gmra.mrb[36].mxu0 %v3885_v47  ;;  %v1104_v39 = vpop.f32.mrb[27].mxu0 }
 0x1d8   : > { %v1286_v60 = vadd.f32 %v1285_v23, %v4158_v57  ;;  %v1287_v22 = vpop.f32.mrb[55].mxu1  ;;  %v4288_v9 = vadd.f32 %v1104_v39, %v4021_v41  ;;  %1442 = vmatprep.mubr.bf16.mxu0 %v3889_v48 }
 0x1d9   : > { %v1288_v54 = vadd.f32 %v1287_v22, %v4164_v43 }
 0x1da   : > { %v1615_v46 = vpack.c.bf16 %v1286_v60, %v1282_v53  ;;  %v1108_v53 = vpop.f32.mrb[28].mxu0 }
 0x1db   : > { %v1616_v35 = vpack.c.bf16 %v1288_v54, %v1284_v26  ;;  %v4292_v22 = vadd.f32 %v1108_v53, %v4018_v37  ;;  %v1110_v4 = vpop.f32.mrb[29].mxu0 }
 0x1dd   : > { %v1291_v23 = vpop.f32.mrb[56].mxu1  ;;  %1689 = vmatprep.subr.bf16.mxu1 %v1616_v35 }
 0x1de   : > { %v1293_v58 = vpop.f32.mrb[57].mxu1  ;;  %1690 = vmatpush1.bf16.xpose.msra.mxu1 %v1615_v46  ;;  %v1292_v42 = vadd.f32 %v1291_v23, %v4158_v57  ;;  %v1112_v46 = vpop.f32.mrb[30].mxu0  ;;  %v4306_v23 = vadd.f32 %v1110_v4, %v4021_v41 }
 0x1df   : > { %v1295_v60 = vpop.f32.mrb[58].mxu1  ;;  %v1294_v39 = vadd.f32 %v1293_v58, %v4164_v43  ;;  %v4301_v48 = vadd.f32 %v1112_v46, %v4018_v37  ;;  %1443 = vmatmul.mubr.bf16.gmra.mrb[40].mxu0 %v3901_v55  ;;  %v1114_v47 = vpop.f32.mrb[31].mxu0 }
 0x1e0   : > { %v1296_v26 = vadd.f32 %v1295_v60, %v4158_v57  ;;  %v1297_v54 = vpop.f32.mrb[59].mxu1  ;;  %v4310_v58 = vadd.f32 %v1114_v47, %v4021_v41  ;;  %1452 = vmatprep.mubr.bf16.mxu0 %v3905_v56 }
 0x1e1   : > { %v1298_v35 = vadd.f32 %v1297_v54, %v4164_v43  ;;  %v1625_v59 = vpack.c.bf16 %v4301_v48, %v4292_v22  ;;  %v5035_v48 = vld [vmem:[#allocation25_spill] sm:$0xff] }
 0x1e2   : > { %v1621_v12 = vpack.c.bf16 %v1296_v26, %v1292_v42  ;;  %v1626_v4 = vpack.c.bf16 %v4310_v58, %v4306_v23  ;;  %v5036_v23 = vld [vmem:[#allocation24_spill] sm:$0xff] }
 0x1e3   : > { %v1622_v53 = vpack.c.bf16 %v1298_v35, %v1294_v39  ;;  %v5037_v58 = vpack.c.bf16 %v5035_v48, %v5036_v23 }
 0x1e5   : > { %v1301_v60 = vpop.f32.mrb[60].mxu1  ;;  %1691 = vmatprep.subr.bf16.mxu1 %v1622_v53 }
 0x1e6   : > { %v1303_v61 = vpop.f32.mrb[61].mxu1  ;;  %1692 = vmatpush1.bf16.xpose.msra.mxu1 %v1621_v12  ;;  %v1302_v42 = vadd.f32 %v1301_v60, %v4158_v57 }
 0x1e7   : > { %v1305_v37 = vpop.f32.mrb[62].mxu1  ;;  %v1304_v46 = vadd.f32 %v1303_v61, %v4164_v43  ;;  %1453 = vmatmul.mubr.bf16.gmra.mrb[44].mxu0 %v3917_v63 }
 0x1e8   : > { %v1306_v26 = vadd.f32 %v1305_v37, %v4158_v57  ;;  %v1307_v54 = vpop.f32.mrb[63].mxu1  ;;  %1462 = vmatprep.mubr.bf16.mxu0 %v3921_v0 }
 0x1e9   : > { %v1308_v55 = vadd.f32 %v1307_v54, %v4164_v43 }
 0x1ea   : > { %v1627_v39 = vpack.c.bf16 %v1306_v26, %v1302_v42 }
 0x1eb   : > { %v1628_v12 = vpack.c.bf16 %v1308_v55, %v1304_v46 }
 0x1ed   : > { %v1311_v35 = vpop.f32.mrb[64].mxu1  ;;  %1693 = vmatprep.subr.bf16.mxu1 %v1628_v12 }
 0x1ee   : > { %v1313_v56 = vpop.f32.mrb[65].mxu1  ;;  %1694 = vmatpush1.bf16.xpose.msra.mxu1 %v1627_v39  ;;  %v1312_v47 = vadd.f32 %v1311_v35, %v4158_v57 }
 0x1ef   : > { %v1315_v41 = vpop.f32.mrb[66].mxu1  ;;  %v1314_v61 = vadd.f32 %v1313_v56, %v4164_v43  ;;  %1463 = vmatmul.mubr.bf16.gmra.mrb[48].mxu0 %v3933_v7 }
 0x1f0   : > { %v1316_v53 = vadd.f32 %v1315_v41, %v4158_v57  ;;  %v1317_v60 = vpop.f32.mrb[67].mxu1  ;;  %1472 = vmatprep.mubr.bf16.mxu0 %v3937_v8 }
 0x1f1   : > { %v1318_v37 = vadd.f32 %v1317_v60, %v4164_v43 }
 0x1f2   : > { %v1633_v42 = vpack.c.bf16 %v1316_v53, %v1312_v47 }
 0x1f3   : > { %v1634_v26 = vpack.c.bf16 %v1318_v37, %v1314_v61 }
 0x1f5   : > { %v1321_v54 = vpop.f32.mrb[68].mxu1  ;;  %1695 = vmatprep.subr.bf16.mxu1 %v1634_v26 }
 0x1f6   : > { %v1323_v63 = vpop.f32.mrb[69].mxu1  ;;  %1696 = vmatpush1.bf16.xpose.msra.mxu1 %v1633_v42  ;;  %v1322_v46 = vadd.f32 %v1321_v54, %v4158_v57 }
 0x1f7   : > { %v1325_v0 = vpop.f32.mrb[70].mxu1  ;;  %v1324_v12 = vadd.f32 %v1323_v63, %v4164_v43  ;;  %1473 = vmatmul.mubr.bf16.gmra.mrb[52].mxu0 %v3949_v16 }
 0x1f8   : > { %v1326_v55 = vadd.f32 %v1325_v0, %v4158_v57  ;;  %v1327_v39 = vpop.f32.mrb[71].mxu1  ;;  %1482 = vmatprep.mubr.bf16.mxu0 %v3953_v17 }
 0x1f9   : > { %v1328_v35 = vadd.f32 %v1327_v39, %v4164_v43 }
 0x1fa   : > { %v1639_v56 = vpack.c.bf16 %v1326_v55, %v1322_v46 }
 0x1fb   : > { %v1640_v41 = vpack.c.bf16 %v1328_v35, %v1324_v12 }
 0x1fd   : > { %v1331_v47 = vpop.f32.mrb[72].mxu1  ;;  %1697 = vmatprep.subr.bf16.mxu1 %v1640_v41 }
 0x1fe   : > { %v1333_v7 = vpop.f32.mrb[73].mxu1  ;;  %1698 = vmatpush1.bf16.xpose.msra.mxu1 %v1639_v56  ;;  %v1332_v53 = vadd.f32 %v1331_v47, %v4158_v57 }
 0x1ff   : > { %v1335_v8 = vpop.f32.mrb[74].mxu1  ;;  %v1334_v37 = vadd.f32 %v1333_v7, %v4164_v43  ;;  %1483 = vmatmul.mubr.bf16.gmra.mrb[56].mxu0 %v3961_v24 }
 0x200   : > { %v1336_v60 = vadd.f32 %v1335_v8, %v4158_v57  ;;  %v1337_v61 = vpop.f32.mrb[75].mxu1  ;;  %1492 = vmatprep.mubr.bf16.mxu0 %v3964_v25  ;;  %v3527_v25 = vld [vmem:[%s3844_s9 + $0x84] ss:$8 sps:$4 sm:$0xff]  }
 0x201   : > { %v1338_v42 = vadd.f32 %v1337_v61, %v4164_v43 }
 0x202   : > { %v1645_v26 = vpack.c.bf16 %v1336_v60, %v1332_v53 }
 0x203   : > { %v1646_v54 = vpack.c.bf16 %v1338_v42, %v1334_v37 }
 0x205   : > { %v1341_v63 = vpop.f32.mrb[76].mxu1  ;;  %1699 = vmatprep.subr.bf16.mxu1 %v1646_v54 }
 0x206   : > { %v1343_v16 = vpop.f32.mrb[77].mxu1  ;;  %1700 = vmatpush1.bf16.xpose.msra.mxu1 %v1645_v26  ;;  %v1342_v0 = vadd.f32 %v1341_v63, %v4158_v57  ;;  %v3529_v63 = vld [vmem:[%s3844_s9 + $0x94] ss:$8 sps:$4 sm:$0xff]  }
 0x207   : > { %v1345_v17 = vpop.f32.mrb[78].mxu1  ;;  %v1344_v39 = vadd.f32 %v1343_v16, %v4164_v43  ;;  %1493 = vmatmul.mubr.bf16.gmra.mrb[60].mxu0 %v3972_v32  ;;  %v3528_v32 = vld [vmem:[%s3844_s9 + $0x80] ss:$8 sps:$4 sm:$0xff]  }
 0x208   : > { %v1346_v46 = vadd.f32 %v1345_v17, %v4158_v57  ;;  %v1347_v55 = vpop.f32.mrb[79].mxu1  ;;  %1502 = vmatprep.mubr.bf16.mxu0 %v3527_v25  ;;  %v3531_v25 = vld [vmem:[%s3844_s9 + $0xa4] ss:$8 sps:$4 sm:$0xff]  }
 0x209   : > { %v1348_v12 = vadd.f32 %v1347_v55, %v4164_v43 }
 0x20a   : > { %v1651_v35 = vpack.c.bf16 %v1346_v46, %v1342_v0 }
 0x20b   : > { %v1652_v56 = vpack.c.bf16 %v1348_v12, %v1344_v39 }
 0x20d   : > { %v1351_v41 = vpop.f32.mrb[80].mxu1  ;;  %1701 = vmatprep.subr.bf16.mxu1 %v1652_v56 }
 0x20e   : > { %v1353_v24 = vpop.f32.mrb[81].mxu1  ;;  %1702 = vmatpush1.bf16.xpose.msra.mxu1 %v1651_v35  ;;  %v1352_v7 = vadd.f32 %v1351_v41, %v4158_v57  ;;  %v3530_v41 = vld [vmem:[%s3844_s9 + $0x90] ss:$8 sps:$4 sm:$0xff]  }
 0x20f   : > { %v1355_v47 = vpop.f32.mrb[82].mxu1  ;;  %v1354_v60 = vadd.f32 %v1353_v24, %v4164_v43  ;;  %1503 = vmatmul.mubr.bf16.gmra.mrb[64].mxu0 %v3528_v32  ;;  %v3532_v32 = vld [vmem:[%s3844_s9 + $0xa0] ss:$8 sps:$4 sm:$0xff]  }
 0x210   : > { %v1356_v8 = vadd.f32 %v1355_v47, %v4158_v57  ;;  %v1357_v53 = vpop.f32.mrb[83].mxu1  ;;  %1512 = vmatprep.mubr.bf16.mxu0 %v3529_v63  ;;  %v3533_v63 = vld [vmem:[%s3844_s9 + $0xb4] ss:$8 sps:$4 sm:$0xff]  }
 0x211   : > { %v1358_v61 = vadd.f32 %v1357_v53, %v4164_v43 }
 0x212   : > { %v1657_v37 = vpack.c.bf16 %v1356_v8, %v1352_v7 }
 0x213   : > { %v1658_v42 = vpack.c.bf16 %v1358_v61, %v1354_v60 }
 0x215   : > { %v1361_v26 = vpop.f32.mrb[84].mxu1  ;;  %1703 = vmatprep.subr.bf16.mxu1 %v1658_v42 }
 0x216   : > { %v1363_v54 = vpop.f32.mrb[85].mxu1  ;;  %1704 = vmatpush1.bf16.xpose.msra.mxu1 %v1657_v37  ;;  %v1362_v17 = vadd.f32 %v1361_v26, %v4158_v57 }
 0x217   : > { %v1365_v16 = vpop.f32.mrb[86].mxu1  ;;  %v1364_v55 = vadd.f32 %v1363_v54, %v4164_v43  ;;  %1513 = vmatmul.mubr.bf16.gmra.mrb[68].mxu0 %v3530_v41  ;;  %v3535_v41 = vld [vmem:[%s3844_s9 + $0xc4] ss:$8 sps:$4 sm:$0xff]  }
 0x218   : > { %v1366_v0 = vadd.f32 %v1365_v16, %v4158_v57  ;;  %v1367_v46 = vpop.f32.mrb[87].mxu1  ;;  %1522 = vmatprep.mubr.bf16.mxu0 %v3531_v25  ;;  %v3537_v25 = vld [vmem:[%s3844_s9 + $0xd4] ss:$8 sps:$4 sm:$0xff]  }
 0x219   : > { %v1368_v39 = vadd.f32 %v1367_v46, %v4164_v43 }
 0x21a   : > { %v1663_v12 = vpack.c.bf16 %v1366_v0, %v1362_v17 }
 0x21b   : > { %v1664_v35 = vpack.c.bf16 %v1368_v39, %v1364_v55 }
 0x21d   : > { %v1371_v56 = vpop.f32.mrb[88].mxu1  ;;  %1705 = vmatprep.subr.bf16.mxu1 %v1664_v35 }
 0x21e   : > { %v1373_v24 = vpop.f32.mrb[89].mxu1  ;;  %1706 = vmatpush1.bf16.xpose.msra.mxu1 %v1663_v12  ;;  %v1372_v7 = vadd.f32 %v1371_v56, %v4158_v57  ;;  %v3534_v56 = vld [vmem:[%s3844_s9 + $0xb0] ss:$8 sps:$4 sm:$0xff]  }
 0x21f   : > { %v1375_v47 = vpop.f32.mrb[90].mxu1  ;;  %v1374_v60 = vadd.f32 %v1373_v24, %v4164_v43  ;;  %1523 = vmatmul.mubr.bf16.gmra.mrb[72].mxu0 %v3532_v32  ;;  %v3536_v24 = vld [vmem:[%s3844_s9 + $0xc0] ss:$8 sps:$4 sm:$0xff]   ;;  %v5045_v32 = vld [vmem:[#allocation34_spill] sm:$0xff] }
 0x220   : > { %v1376_v8 = vadd.f32 %v1375_v47, %v4158_v57  ;;  %v1377_v53 = vpop.f32.mrb[91].mxu1  ;;  %1532 = vmatprep.mubr.bf16.mxu0 %v3533_v63  ;;  %v5002_v47 = vpack.c.bf16 %v4180_v19, %v4170_v10  ;;  %v3541_v10 = vld [vmem:[%s3844_s9 + $0xf4] ss:$8 sps:$4 sm:$0xff]   ;;  %v5006_v19 = vpack.c.bf16 %v4217_v31, %v4208_v5  ;;  %v5014_v5 = vpack.c.bf16 %v4027_v45, %v4024_v44  ;;  %v5015_v31 = vld [vmem:[#allocation15_spill] sm:$0xff] }
 0x221   : > { %v1378_v61 = vadd.f32 %v1377_v53, %v4164_v43  ;;  %v5029_v45 = vld [vmem:[#allocation21_spill] sm:$0xff]  ;;  %v5039_v53 = vld [vmem:[#allocation30_spill] sm:$0xff]  ;;  %v5047_v63 = vld [vmem:[#allocation11_spill] sm:$0xff] }
 0x222   : > { %v1669_v37 = vpack.c.bf16 %v1376_v8, %v1372_v7  ;;  %v3538_v7 = vld [vmem:[%s3844_s9 + $0xd0] ss:$8 sps:$4 sm:$0xff]   ;;  %v5003_v8 = vpack.c.bf16 %v4205_v1, %v4202_v52  ;;  %v5007_v52 = vpack.c.bf16 %v4245_v29, %v4242_v6  ;;  %v5011_v1 = vpack.c.bf16 %v4288_v9, %v4284_v11  ;;  %v5020_v29 = vld [vmem:[#allocation19_spill] sm:$0xff] }
 0x223   : > { %v1670_v42 = vpack.c.bf16 %v1378_v61, %v1374_v60  ;;  %v5013_v6 = vpack.c.bf16 %v4033_v50, %v4030_v49  ;;  %v5026_v50 = vld [vmem:[#allocation23_spill] sm:$0xff]  ;;  %v5033_v9 = vld [vmem:[#allocation26_spill] sm:$0xff]  ;;  %v5041_v61 = vld [vmem:[#allocation29_spill] sm:$0xff] }
 0x224   : > { %v5032_v11 = vld [vmem:[#allocation27_spill] sm:$0xff] }
 0x225   : > { %v1381_v26 = vpop.f32.mrb[92].mxu1  ;;  %1707 = vmatprep.subr.bf16.mxu1 %v1670_v42  ;;  %v5034_v22 = vpack.c.bf16 %v5032_v11, %v5033_v9 }
 0x226   : > { %v1383_v54 = vpop.f32.mrb[93].mxu1  ;;  %1708 = vmatpush1.bf16.xpose.msra.mxu1 %v1669_v37  ;;  %v1382_v17 = vadd.f32 %v1381_v26, %v4158_v57  ;;  %v5042_v37 = vld [vmem:[#allocation28_spill] sm:$0xff]  ;;  %v5044_v26 = vld [vmem:[#allocation35_spill] sm:$0xff] }
 0x227   : > { %v1385_v16 = vpop.f32.mrb[94].mxu1  ;;  %v1384_v55 = vadd.f32 %v1383_v54, %v4164_v43  ;;  %1533 = vmatmul.mubr.bf16.gmra.mrb[76].mxu0 %v3534_v56  ;;  %v5043_v42 = vpack.c.bf16 %v5041_v61, %v5042_v37  ;;  %v5046_v54 = vpack.c.bf16 %v5044_v26, %v5045_v32  ;;  %v5053_v56 = vld [vmem:[#allocation38_spill] sm:$0xff] }
 0x228   : > { %v1386_v0 = vadd.f32 %v1385_v16, %v4158_v57  ;;  %v1387_v46 = vpop.f32.mrb[95].mxu1  ;;  %1542 = vmatprep.mubr.bf16.mxu0 %v3535_v41  ;;  %v5000_v57 = vpack.c.bf16 %v4161_v33, %v4154_v14  ;;  %v3539_v33 = vld [vmem:[%s3844_s9 + $0xe4] ss:$8 sps:$4 sm:$0xff]   ;;  %v5004_v14 = vpack.c.bf16 %v4197_v18, %v4190_v20  ;;  %v5008_v20 = vpack.c.bf16 %v4237_v3, %v4228_v36  ;;  %v5017_v36 = vld [vmem:[#allocation14_spill] sm:$0xff]  ;;  %v5018_v3 = vld [vmem:[#allocation13_spill] sm:$0xff] }
 0x229   : > { %v1388_v39 = vadd.f32 %v1387_v46, %v4164_v43  ;;  %v5001_v43 = vpack.c.bf16 %v4183_v15, %v4175_v51  ;;  %v3540_v51 = vld [vmem:[%s3844_s9 + $0xe0] ss:$8 sps:$4 sm:$0xff]   ;;  %v5005_v15 = vpack.c.bf16 %v4225_v2, %v4222_v21  ;;  %v5009_v21 = vpack.c.bf16 %v4266_v27, %v4262_v38 }
 0x22a   : > { %v1675_v12 = vpack.c.bf16 %v1386_v0, %v1382_v17  ;;  %v5010_v18 = vpack.c.bf16 %v4257_v34, %v4248_v30  ;;  %v5016_v2 = vpack.c.bf16 %v4049_v62, %v5015_v31  ;;  %v5019_v34 = vpack.c.bf16 %v5017_v36, %v5018_v3  ;;  %v5021_v30 = vld [vmem:[#allocation18_spill] sm:$0xff]  ;;  %v5024_v27 = vld [vmem:[#allocation16_spill] sm:$0xff]  ;;  %v5048_v0 = vld [vmem:[#allocation33_spill] sm:$0xff] }
 0x22b   : > { %v1676_v35 = vpack.c.bf16 %v1388_v39, %v1384_v55  ;;  %v5022_v38 = vpack.c.bf16 %v5020_v29, %v5021_v30  ;;  %v352_v16 = vsub.s32 4, %v5047_v63  ;;  %v356_v17 = vsub.s32 5, %v5047_v63  ;;  %v5049_v46 = vld [vmem:[#allocation32_spill] sm:$0xff] }
 0x22c   : > { %v5050_v55 = vpack.c.bf16 %v5048_v0, %v5049_v46  ;;  %v5051_v39 = vld [vmem:[#allocation12_spill] sm:$0xff] }
 0x22d   : > { %1709 = vmatprep.subr.bf16.mxu1 %v1676_v35  ;;  %v5052_v35 = vld [vmem:[#allocation39_spill] sm:$0xff] }
 0x22e   : > { %1710 = vmatpush1.bf16.xpose.msra.mxu1 %v1675_v12  ;;  %v4466_v12 = vrot.slane %v5051_v39, %v352_v16  ;;  %v5054_v41 = vpack.c.bf16 %v5052_v35, %v5053_v56 }
 0x22f   : > { %1543 = vmatmul.mubr.bf16.gmra.mrb[80].mxu0 %v3536_v24 }
 0x230   : > { %1552 = vmatprep.mubr.bf16.mxu0 %v3537_v25 }
 0x235   : > { %1712 = vmatmul.mubr.bf16.vlgmr.msra.gmra.mrb[96].mxu1 %v5000_v57  ;;  %v4472_v57 = vrot.slane %v5051_v39, %v356_v17 }
 0x236   : > { %1721 = vmatprep.mubr.bf16.mxu1 %v5001_v43 }
 0x237   : > { %1553 = vmatmul.mubr.bf16.gmra.mrb[84].mxu0 %v3538_v7 }
 0x238   : > { %1562 = vmatprep.mubr.bf16.mxu0 %v3539_v33 }
 0x23d   : > { %1722 = vmatmul.mubr.bf16.gmra.mrb[100].mxu1 %v5002_v47 }
 0x23e   : > { %1731 = vmatprep.mubr.bf16.mxu1 %v5003_v8 }
 0x23f   : > { %1563 = vmatmul.mubr.bf16.gmra.mrb[88].mxu0 %v3540_v51  ;;  %v5055_v51 = vld [vmem:[#allocation37_spill] sm:$0xff] }
 0x240   : > { %1572 = vmatprep.mubr.bf16.mxu0 %v3541_v10 }
 0x245   : > { %1732 = vmatmul.mubr.bf16.gmra.mrb[104].mxu1 %v5004_v14 }
 0x246   : > { %1741 = vmatprep.mubr.bf16.mxu1 %v5005_v15  ;;  %v5056_v15 = vld [vmem:[#allocation36_spill] sm:$0xff] }
 0x247   : > { %1573 = vmatmul.mubr.bf16.gmra.mrb[92].mxu0 %v3969_v28  ;;  %v5012_v28 = vpack.c.bf16 %v4279_v40, %v4270_v13  ;;  %v5027_v13 = vld [vmem:[#allocation22_spill] sm:$0xff]  ;;  %v5030_v40 = vld [vmem:[#allocation20_spill] sm:$0xff]  ;;  %v5057_v10 = vpack.c.bf16 %v5055_v51, %v5056_v15 }
 0x248   : > { %v5028_v44 = vpack.c.bf16 %v5026_v50, %v5027_v13  ;;  %v5031_v62 = vpack.c.bf16 %v5029_v45, %v5030_v40 }
 0x24d   : > { %1742 = vmatmul.mubr.bf16.gmra.mrb[108].mxu1 %v5006_v19 }
 0x24e   : > { %1751 = vmatprep.mubr.bf16.mxu1 %v5007_v52 }
 0x255   : > { %1752 = vmatmul.mubr.bf16.gmra.mrb[112].mxu1 %v5008_v20 }
 0x256   : > { %1761 = vmatprep.mubr.bf16.mxu1 %v5009_v21 }
 0x25d   : > { %1762 = vmatmul.mubr.bf16.gmra.mrb[116].mxu1 %v5010_v18 }
 0x25e   : > { %1771 = vmatprep.mubr.bf16.mxu1 %v5011_v1 }
 0x265   : > { %1772 = vmatmul.mubr.bf16.gmra.mrb[120].mxu1 %v5012_v28 }
 0x266   : > { %1781 = vmatprep.mubr.bf16.mxu1 %v1626_v4  ;;  %v5038_v4 = vld [vmem:[#allocation31_spill] sm:$0xff] }
 0x267   : > { %v5040_v60 = vpack.c.bf16 %v5038_v4, %v5039_v53 }
 0x26d   : > { %1782 = vmatmul.mubr.bf16.gmra.mrb[124].mxu1 %v1625_v59  ;;  %v5023_v59 = vld [vmem:[#allocation17_spill] sm:$0xff] }
 0x26e   : > { %1791 = vmatprep.mubr.bf16.mxu1 %v5013_v6  ;;  %v5025_v49 = vpack.c.bf16 %v5023_v59, %v5024_v27 }
 0x275   : > { %1792 = vmatmul.mubr.bf16.gmra.mrb[128].mxu1 %v5014_v5 }
 0x276   : > { %1801 = vmatprep.mubr.bf16.mxu1 %v5016_v2 }
 0x27d   : > { %1802 = vmatmul.mubr.bf16.gmra.mrb[132].mxu1 %v5019_v34 }
 0x27e   : > { %1811 = vmatprep.mubr.bf16.mxu1 %v5022_v38 }
 0x285   : > { %1812 = vmatmul.mubr.bf16.gmra.mrb[136].mxu1 %v5025_v49 }
 0x286   : > { %1821 = vmatprep.mubr.bf16.mxu1 %v5028_v44 }
 0x28d   : > { %1822 = vmatmul.mubr.bf16.gmra.mrb[140].mxu1 %v5031_v62 }
 0x28e   : > { %1831 = vmatprep.mubr.bf16.mxu1 %v5034_v22 }
 0x295   : > { %1832 = vmatmul.mubr.bf16.gmra.mrb[144].mxu1 %v5037_v58 }
 0x296   : > { %1841 = vmatprep.mubr.bf16.mxu1 %v5040_v60 }
 0x29d   : > { %1842 = vmatmul.mubr.bf16.gmra.mrb[148].mxu1 %v5043_v42 }
 0x29e   : > { %1851 = vmatprep.mubr.bf16.mxu1 %v5046_v54 }
 0x2a2   : > { %v1424_v24 = vpop.f32.mrb[32].mxu0 }
 0x2a3   : > { %v1425_v43 = vadd.f32 %v1424_v24, %v4466_v12  ;;  %v1426_v25 = vpop.f32.mrb[33].mxu0 }
 0x2a4   : > { %v1427_v47 = vadd.f32 %v1426_v25, %v4472_v57  ;;  %v1428_v7 = vpop.f32.mrb[34].mxu0 }
 0x2a5   : > { %1852 = vmatmul.mubr.bf16.gmra.mrb[152].mxu1 %v5050_v55  ;;  %v1429_v8 = vadd.f32 %v1428_v7, %v4466_v12  ;;  %v1430_v33 = vpop.f32.mrb[35].mxu0 }
 0x2a6   : > { %1861 = vmatprep.mubr.bf16.mxu1 %v5054_v41  ;;  %v1431_v14 = vadd.f32 %v1430_v33, %v4472_v57 }
 0x2a7   : > { %v1587_v19 = vpack.c.bf16 %v1429_v8, %v1425_v43 }
 0x2a8   : > { %v1588_v52 = vpack.c.bf16 %v1431_v14, %v1427_v47 }
 0x2aa   : > { %v1434_v20 = vpop.f32.mrb[36].mxu0  ;;  %2484 = vmatprep.subr.bf16.mxu0 %v1588_v52 }
 0x2ab   : > { %v1435_v21 = vadd.f32 %v1434_v20, %v4466_v12  ;;  %v1436_v18 = vpop.f32.mrb[37].mxu0  ;;  %2485 = vmatpush1.bf16.msra.mxu0 %v1587_v19 }
 0x2ac   : > { %v1437_v1 = vadd.f32 %v1436_v18, %v4472_v57  ;;  %v1438_v28 = vpop.f32.mrb[38].mxu0 }
 0x2ad   : > { %1862 = vmatmul.mubr.bf16.gmra.mrb[156].mxu1 %v5057_v10  ;;  %v1439_v6 = vadd.f32 %v1438_v28, %v4466_v12  ;;  %v1440_v5 = vpop.f32.mrb[39].mxu0 }
 0x2ae   : > { %v1441_v31 = vadd.f32 %v1440_v5, %v4472_v57 }
 0x2af   : > { %v1593_v2 = vpack.c.bf16 %v1439_v6, %v1435_v21 }
 0x2b0   : > { %v1594_v36 = vpack.c.bf16 %v1441_v31, %v1437_v1 }
 0x2b2   : > { %v1444_v3 = vpop.f32.mrb[40].mxu0  ;;  %2486 = vmatprep.subr.bf16.mxu0 %v1594_v36 }
 0x2b3   : > { %v1445_v34 = vadd.f32 %v1444_v3, %v4466_v12  ;;  %v1446_v29 = vpop.f32.mrb[41].mxu0  ;;  %2487 = vmatpush1.bf16.msra.mxu0 %v1593_v2 }
 0x2b4   : > { %v1447_v30 = vadd.f32 %v1446_v29, %v4472_v57  ;;  %v1448_v38 = vpop.f32.mrb[42].mxu0 }
 0x2b5   : > { %v1449_v59 = vadd.f32 %v1448_v38, %v4466_v12  ;;  %v1450_v27 = vpop.f32.mrb[43].mxu0 }
 0x2b6   : > { %v1451_v49 = vadd.f32 %v1450_v27, %v4472_v57 }
 0x2b7   : > { %v1599_v50 = vpack.c.bf16 %v1449_v59, %v1445_v34 }
 0x2b8   : > { %v1600_v13 = vpack.c.bf16 %v1451_v49, %v1447_v30 }
 0x2ba   : > { %v1454_v44 = vpop.f32.mrb[44].mxu0  ;;  %2488 = vmatprep.subr.bf16.mxu0 %v1600_v13 }
 0x2bb   : > { %v1455_v45 = vadd.f32 %v1454_v44, %v4466_v12  ;;  %v1456_v40 = vpop.f32.mrb[45].mxu0  ;;  %2489 = vmatpush1.bf16.msra.mxu0 %v1599_v50 }
 0x2bc   : > { %v1457_v62 = vadd.f32 %v1456_v40, %v4472_v57  ;;  %v1458_v11 = vpop.f32.mrb[46].mxu0 }
 0x2bd   : > { %v1459_v9 = vadd.f32 %v1458_v11, %v4466_v12  ;;  %v1460_v22 = vpop.f32.mrb[47].mxu0 }
 0x2be   : > { %v1461_v48 = vadd.f32 %v1460_v22, %v4472_v57 }
 0x2bf   : > { %v1605_v23 = vpack.c.bf16 %v1459_v9, %v1455_v45 }
 0x2c0   : > { %v1606_v58 = vpack.c.bf16 %v1461_v48, %v1457_v62 }
 0x2c2   : > { %v1464_v4 = vpop.f32.mrb[48].mxu0  ;;  %2490 = vmatprep.subr.bf16.mxu0 %v1606_v58 }
 0x2c3   : > { %v1465_v53 = vadd.f32 %v1464_v4, %v4466_v12  ;;  %v1466_v60 = vpop.f32.mrb[49].mxu0  ;;  %2491 = vmatpush1.bf16.msra.mxu0 %v1605_v23 }
 0x2c4   : > { %v1467_v61 = vadd.f32 %v1466_v60, %v4472_v57  ;;  %v1468_v37 = vpop.f32.mrb[50].mxu0 }
 0x2c5   : > { %v1469_v42 = vadd.f32 %v1468_v37, %v4466_v12  ;;  %v1470_v26 = vpop.f32.mrb[51].mxu0 }
 0x2c6   : > { %v1471_v32 = vadd.f32 %v1470_v26, %v4472_v57 }
 0x2c7   : > { %v1611_v54 = vpack.c.bf16 %v1469_v42, %v1465_v53 }
 0x2c8   : > { %v1612_v16 = vpack.c.bf16 %v1471_v32, %v1467_v61 }
 0x2ca   : > { %v1474_v17 = vpop.f32.mrb[52].mxu0  ;;  %2492 = vmatprep.subr.bf16.mxu0 %v1612_v16 }
 0x2cb   : > { %v1475_v0 = vadd.f32 %v1474_v17, %v4466_v12  ;;  %v1476_v46 = vpop.f32.mrb[53].mxu0  ;;  %2493 = vmatpush1.bf16.msra.mxu0 %v1611_v54 }
 0x2cc   : > { %v1477_v55 = vadd.f32 %v1476_v46, %v4472_v57  ;;  %v1478_v39 = vpop.f32.mrb[54].mxu0  ;;  %v5058_v46 = vlaneseq }
 0x2cd   : > { %v1479_v35 = vadd.f32 %v1478_v39, %v4466_v12  ;;  %v1480_v56 = vpop.f32.mrb[55].mxu0 }
 0x2ce   : > { %v1481_v41 = vadd.f32 %v1480_v56, %v4472_v57 }
 0x2cf   : > { %v1617_v24 = vpack.c.bf16 %v1479_v35, %v1475_v0 }
 0x2d0   : > { %v1618_v43 = vpack.c.bf16 %v1481_v41, %v1477_v55  ;;  %v4523_v55 = vand.u32 127, %v5058_v46 }
 0x2d2   : > { %v1484_v25 = vpop.f32.mrb[56].mxu0  ;;  %2494 = vmatprep.subr.bf16.mxu0 %v1618_v43  ;;  %vm1908_vm0 = vcmp.gt.s32.totalorder %v4523_v55, %v5047_v63 }
 0x2d3   : > { %v1485_v47 = vadd.f32 %v1484_v25, %v4466_v12  ;;  %v1486_v7 = vpop.f32.mrb[57].mxu0  ;;  %2495 = vmatpush1.bf16.msra.mxu0 %v1617_v24  ;;  %v1874_v24 = vadd.s32 8, %v5047_v63 }
 0x2d4   : > { %v1487_v8 = vadd.f32 %v1486_v7, %v4472_v57  ;;  %v1488_v33 = vpop.f32.mrb[58].mxu0 }
 0x2d5   : > { %v1489_v14 = vadd.f32 %v1488_v33, %v4466_v12  ;;  %v1490_v51 = vpop.f32.mrb[59].mxu0  ;;  %vm1910_vm1 = vcmp.gt.s32.totalorder %v4523_v55, %v1874_v24  ;;  %v1880_v24 = vadd.s32 56, %v5047_v63 }
 0x2d6   : > { %v1491_v15 = vadd.f32 %v1490_v51, %v4472_v57 }
 0x2d7   : > { %v1623_v10 = vpack.c.bf16 %v1489_v14, %v1485_v47  ;;  %vm1922_vm7 = vcmp.gt.s32.totalorder %v4523_v55, %v1880_v24 }
 0x2d8   : > { %v1624_v19 = vpack.c.bf16 %v1491_v15, %v1487_v8 }
 0x2da   : > { %v1494_v52 = vpop.f32.mrb[60].mxu0  ;;  %2496 = vmatprep.subr.bf16.mxu0 %v1624_v19 }
 0x2db   : > { %v1495_v20 = vadd.f32 %v1494_v52, %v4466_v12  ;;  %v1496_v21 = vpop.f32.mrb[61].mxu0  ;;  %2497 = vmatpush1.bf16.msra.mxu0 %v1623_v10  ;;  %v1875_v52 = vadd.s32 16, %v5047_v63 }
 0x2dc   : > { %v1497_v18 = vadd.f32 %v1496_v21, %v4472_v57  ;;  %v1498_v1 = vpop.f32.mrb[62].mxu0 }
 0x2dd   : > { %v1499_v28 = vadd.f32 %v1498_v1, %v4466_v12  ;;  %v1500_v6 = vpop.f32.mrb[63].mxu0  ;;  %vm1912_vm2 = vcmp.gt.s32.totalorder %v4523_v55, %v1875_v52  ;;  %v1881_v52 = vadd.s32 64, %v5047_v63 }
 0x2de   : > { %v1501_v5 = vadd.f32 %v1500_v6, %v4472_v57 }
 0x2df   : > { %v1629_v31 = vpack.c.bf16 %v1499_v28, %v1495_v20  ;;  %vm1924_vm8 = vcmp.gt.s32.totalorder %v4523_v55, %v1881_v52 }
 0x2e0   : > { %v1630_v2 = vpack.c.bf16 %v1501_v5, %v1497_v18  ;;  %v1876_v5 = vadd.s32 24, %v5047_v63 }
 0x2e2   : > { %v1504_v36 = vpop.f32.mrb[64].mxu0  ;;  %2498 = vmatprep.subr.bf16.mxu0 %v1630_v2  ;;  %vm1914_vm3 = vcmp.gt.s32.totalorder %v4523_v55, %v1876_v5 }
 0x2e3   : > { %v1505_v3 = vadd.f32 %v1504_v36, %v4466_v12  ;;  %v1506_v34 = vpop.f32.mrb[65].mxu0  ;;  %2499 = vmatpush1.bf16.msra.mxu0 %v1629_v31 }
 0x2e4   : > { %v1507_v29 = vadd.f32 %v1506_v34, %v4472_v57  ;;  %v1508_v30 = vpop.f32.mrb[66].mxu0 }
 0x2e5   : > { %v1509_v38 = vadd.f32 %v1508_v30, %v4466_v12  ;;  %v1510_v59 = vpop.f32.mrb[67].mxu0 }
 0x2e6   : > { %v1511_v27 = vadd.f32 %v1510_v59, %v4472_v57 }
 0x2e7   : > { %v1635_v49 = vpack.c.bf16 %v1509_v38, %v1505_v3 }
 0x2e8   : > { %v1636_v50 = vpack.c.bf16 %v1511_v27, %v1507_v29 }
 0x2ea   : > { %v1514_v13 = vpop.f32.mrb[68].mxu0  ;;  %2500 = vmatprep.subr.bf16.mxu0 %v1636_v50 }
 0x2eb   : > { %v1515_v44 = vadd.f32 %v1514_v13, %v4466_v12  ;;  %v1516_v45 = vpop.f32.mrb[69].mxu0  ;;  %2501 = vmatpush1.bf16.msra.mxu0 %v1635_v49  ;;  %v1877_v13 = vadd.s32 32, %v5047_v63 }
 0x2ec   : > { %v1517_v40 = vadd.f32 %v1516_v45, %v4472_v57  ;;  %v1518_v62 = vpop.f32.mrb[70].mxu0 }
 0x2ed   : > { %v1519_v11 = vadd.f32 %v1518_v62, %v4466_v12  ;;  %v1520_v9 = vpop.f32.mrb[71].mxu0  ;;  %vm1916_vm4 = vcmp.gt.s32.totalorder %v4523_v55, %v1877_v13 }
 0x2ee   : > { %v1521_v22 = vadd.f32 %v1520_v9, %v4472_v57 }
 0x2ef   : > { %v1641_v48 = vpack.c.bf16 %v1519_v11, %v1515_v44 }
 0x2f0   : > { %v1642_v23 = vpack.c.bf16 %v1521_v22, %v1517_v40  ;;  %v1878_v22 = vadd.s32 40, %v5047_v63 }
 0x2f2   : > { %v1524_v58 = vpop.f32.mrb[72].mxu0  ;;  %2502 = vmatprep.subr.bf16.mxu0 %v1642_v23  ;;  %vm1918_vm5 = vcmp.gt.s32.totalorder %v4523_v55, %v1878_v22 }
 0x2f3   : > { %v1525_v4 = vadd.f32 %v1524_v58, %v4466_v12  ;;  %v1526_v53 = vpop.f32.mrb[73].mxu0  ;;  %2503 = vmatpush1.bf16.msra.mxu0 %v1641_v48 }
 0x2f4   : > { %v1527_v60 = vadd.f32 %v1526_v53, %v4472_v57  ;;  %v1528_v61 = vpop.f32.mrb[74].mxu0 }
 0x2f5   : > { %v1529_v37 = vadd.f32 %v1528_v61, %v4466_v12  ;;  %v1530_v42 = vpop.f32.mrb[75].mxu0 }
 0x2f6   : > { %v1531_v26 = vadd.f32 %v1530_v42, %v4472_v57 }
 0x2f7   : > { %v1647_v32 = vpack.c.bf16 %v1529_v37, %v1525_v4 }
 0x2f8   : > { %v1648_v54 = vpack.c.bf16 %v1531_v26, %v1527_v60 }
 0x2fa   : > { %v1534_v16 = vpop.f32.mrb[76].mxu0  ;;  %2504 = vmatprep.subr.bf16.mxu0 %v1648_v54 }
 0x2fb   : > { %v1535_v17 = vadd.f32 %v1534_v16, %v4466_v12  ;;  %v1536_v0 = vpop.f32.mrb[77].mxu0  ;;  %2505 = vmatpush1.bf16.msra.mxu0 %v1647_v32  ;;  %v1879_v16 = vadd.s32 48, %v5047_v63 }
 0x2fc   : > { %v1537_v39 = vadd.f32 %v1536_v0, %v4472_v57  ;;  %v1538_v35 = vpop.f32.mrb[78].mxu0 }
 0x2fd   : > { %v1539_v56 = vadd.f32 %v1538_v35, %v4466_v12  ;;  %v1540_v41 = vpop.f32.mrb[79].mxu0  ;;  %vm1920_vm6 = vcmp.gt.s32.totalorder %v4523_v55, %v1879_v16  ;;  %v1887_v16 = vadd.s32 112, %v5047_v63 }
 0x2fe   : > { %v1541_v43 = vadd.f32 %v1540_v41, %v4472_v57 }
 0x2ff   : > { %v1653_v25 = vpack.c.bf16 %v1539_v56, %v1535_v17  ;;  %vm1936_vm14 = vcmp.gt.s32.totalorder %v4523_v55, %v1887_v16 }
 0x300   : > { %v1654_v47 = vpack.c.bf16 %v1541_v43, %v1537_v39 }
 0x302   : > { %v1544_v8 = vpop.f32.mrb[80].mxu0  ;;  %2506 = vmatprep.subr.bf16.mxu0 %v1654_v47 }
 0x303   : > { %v1545_v51 = vadd.f32 %v1544_v8, %v4466_v12  ;;  %v1546_v15 = vpop.f32.mrb[81].mxu0  ;;  %2507 = vmatpush1.bf16.msra.mxu0 %v1653_v25 }
 0x304   : > { %v1547_v20 = vadd.f32 %v1546_v15, %v4472_v57  ;;  %v1548_v21 = vpop.f32.mrb[82].mxu0 }
 0x305   : > { %v1549_v28 = vadd.f32 %v1548_v21, %v4466_v12  ;;  %v1550_v6 = vpop.f32.mrb[83].mxu0 }
 0x306   : > { %v1551_v31 = vadd.f32 %v1550_v6, %v4472_v57 }
 0x307   : > { %v1659_v2 = vpack.c.bf16 %v1549_v28, %v1545_v51 }
 0x308   : > { %v1713_v7 = vpop.f32.mrb[96].mxu1  ;;  %v1660_v3 = vpack.c.bf16 %v1551_v31, %v1547_v20  ;;  %v1882_v31 = vadd.s32 72, %v5047_v63 }
 0x309   : > { %v4532_v33 = vsel %vm1908_vm0, -1e+09, %v1713_v7  ;;  %v1715_v14 = vpop.f32.mrb[97].mxu1 }
 0x30a   : > { %v1717_v10 = vpop.f32.mrb[98].mxu1  ;;  %v2036_v19 = vmax.f32 %v4532_v33, -1e+09  ;;  %v1554_v29 = vpop.f32.mrb[84].mxu0  ;;  %2508 = vmatprep.subr.bf16.mxu0 %v1660_v3  ;;  %vm1926_vm9 = vcmp.gt.s32.totalorder %v4523_v55, %v1882_v31 }
 0x30b   : > { %v4538_v18 = vsel %vm1910_vm1, -1e+09, %v1717_v10  ;;  %v1719_v1 = vpop.f32.mrb[99].mxu1  ;;  %v1555_v59 = vadd.f32 %v1554_v29, %v4466_v12  ;;  %v1556_v27 = vpop.f32.mrb[85].mxu0  ;;  %2509 = vmatpush1.bf16.msra.mxu0 %v1659_v2 }
 0x30c   : > { %2037 = vmax.xlane.f32.xlu0 %v2036_v19  ;;  %v2039_v36 = vmax.f32 %v4538_v18, -1e+09  ;;  %v1557_v44 = vadd.f32 %v1556_v27, %v4472_v57  ;;  %v1558_v45 = vpop.f32.mrb[86].mxu0 }
 0x30d   : > { %v1559_v11 = vadd.f32 %v1558_v45, %v4466_v12  ;;  %v1560_v9 = vpop.f32.mrb[87].mxu0  ;;  %v1884_v45 = vadd.s32 88, %v5047_v63 }
 0x30e   : > { %v1561_v48 = vadd.f32 %v1560_v9, %v4472_v57 }
 0x30f   : > { %v1665_v23 = vpack.c.bf16 %v1559_v11, %v1555_v59  ;;  %vm1930_vm11 = vcmp.gt.s32.totalorder %v4523_v55, %v1884_v45 }
 0x310   : > { %2040 = vmax.xlane.f32.xlu0 %v2039_v36  ;;  %v1723_v34 = vpop.f32.mrb[100].mxu1  ;;  %v1666_v4 = vpack.c.bf16 %v1561_v48, %v1557_v44 }
 0x311   : > { %v4546_v30 = vsel %vm1912_vm2, -1e+09, %v1723_v34  ;;  %v1725_v38 = vpop.f32.mrb[101].mxu1 }
 0x312   : > { %v1727_v49 = vpop.f32.mrb[102].mxu1  ;;  %v2042_v50 = vmax.f32 %v4546_v30, -1e+09  ;;  %v1564_v60 = vpop.f32.mrb[88].mxu0  ;;  %2510 = vmatprep.subr.bf16.mxu0 %v1666_v4 }
 0x313   : > { %v4552_v40 = vsel %vm1914_vm3, -1e+09, %v1727_v49  ;;  %v1729_v62 = vpop.f32.mrb[103].mxu1  ;;  %v1565_v42 = vadd.f32 %v1564_v60, %v4466_v12  ;;  %v1566_v26 = vpop.f32.mrb[89].mxu0  ;;  %2511 = vmatpush1.bf16.msra.mxu0 %v1665_v23  ;;  %v1885_v23 = vadd.s32 96, %v5047_v63  ;;  %v1886_v60 = vadd.s32 104, %v5047_v63 }
 0x314   : > { %2043 = vmax.xlane.f32.xlu1 %v2042_v50  ;;  %v2045_v58 = vmax.f32 %v4552_v40, -1e+09  ;;  %v1567_v17 = vadd.f32 %v1566_v26, %v4472_v57  ;;  %v1568_v0 = vpop.f32.mrb[90].mxu0 }
 0x315   : > { %v1569_v35 = vadd.f32 %v1568_v0, %v4466_v12  ;;  %v1570_v56 = vpop.f32.mrb[91].mxu0  ;;  %vm1932_vm12 = vcmp.gt.s32.totalorder %v4523_v55, %v1885_v23  ;;  %vm1934_vm13 = vcmp.gt.s32.totalorder %v4523_v55, %v1886_v60  ;;  %v1895_v23 = vadd.s32 176, %v5047_v63 }
 0x316   : > { %v1571_v43 = vadd.f32 %v1570_v56, %v4472_v57  ;;  %v1896_v60 = vadd.s32 184, %v5047_v63 }
 0x317   : > { %v1671_v25 = vpack.c.bf16 %v1569_v35, %v1565_v42  ;;  %v1888_v35 = vadd.s32 120, %v5047_v63 }
 0x318   : > { %2046 = vmax.xlane.f32.xlu1 %v2045_v58  ;;  %v1733_v53 = vpop.f32.mrb[104].mxu1  ;;  %v1672_v47 = vpack.c.bf16 %v1571_v43, %v1567_v17 }
 0x319   : > { %v4560_v61 = vsel %vm1916_vm4, -1e+09, %v1733_v53  ;;  %v1735_v37 = vpop.f32.mrb[105].mxu1  ;;  %vm1938_vm15 = vcmp.gt.s32.totalorder %v4523_v55, %v1888_v35 }
 0x31a   : > { %v1737_v32 = vpop.f32.mrb[106].mxu1  ;;  %v2048_v54 = vmax.f32 %v4560_v61, -1e+09  ;;  %v1574_v8 = vpop.f32.mrb[92].mxu0  ;;  %2512 = vmatprep.subr.bf16.mxu0 %v1672_v47 }
 0x31b   : > { %v4566_v46 = vsel %vm1918_vm5, -1e+09, %v1737_v32  ;;  %v1739_v39 = vpop.f32.mrb[107].mxu1  ;;  %v1576_v15 = vpop.f32.mrb[93].mxu0  ;;  %2513 = vmatpush1.bf16.msra.mxu0 %v1671_v25  ;;  %v1575_v20 = vadd.f32 %v1574_v8, %v4466_v12  ;;  %v1889_v8 = vadd.s32 128, %v5047_v63 }
 0x31c   : > { %2049 = vmax.xlane.f32.xlu0 %v2048_v54  ;;  %v2051_v41 = vmax.f32 %v4566_v46, -1e+09  ;;  %v1577_v28 = vadd.f32 %v1576_v15, %v4472_v57  ;;  %v1578_v6 = vpop.f32.mrb[94].mxu0 }
 0x31d   : > { %v1579_v2 = vadd.f32 %v1578_v6, %v4466_v12  ;;  %v1580_v36 = vpop.f32.mrb[95].mxu0  ;;  %v1883_v12 = vadd.s32 80, %v5047_v63  ;;  %v1891_v6 = vadd.s32 144, %v5047_v63 }
 0x31e   : > { %2052 = vmax.xlane.f32.xlu1 %v2051_v41  ;;  %v1581_v3 = vadd.f32 %v1580_v36, %v4472_v57 }
 0x31f   : > { %v1677_v34 = vpack.c.bf16 %v1579_v2, %v1575_v20  ;;  %vm1928_vm10 = vcmp.gt.s32.totalorder %v4523_v55, %v1883_v12  ;;  %v1892_v2 = vadd.s32 152, %v5047_v63 }
 0x320   : > { %v1743_v7 = vpop.f32.mrb[108].mxu1  ;;  %v1678_v29 = vpack.c.bf16 %v1581_v3, %v1577_v28 }
 0x321   : > { %v4574_v14 = vsel %vm1920_vm6, -1e+09, %v1743_v7  ;;  %v1745_v51 = vpop.f32.mrb[109].mxu1 }
 0x322   : > { %v1747_v10 = vpop.f32.mrb[110].mxu1  ;;  %v2054_v19 = vmax.f32 %v4574_v14, -1e+09  ;;  %2514 = vmatprep.subr.bf16.mxu0 %v1678_v29  ;;  %v4625_v51 = vadd.s32 128, %v4523_v55 }
 0x323   : > { %v4579_v21 = vsel %vm1922_vm7, -1e+09, %v1747_v10  ;;  %v1749_v1 = vpop.f32.mrb[111].mxu1  ;;  %2515 = vmatpush1.bf16.msra.mxu0 %v1677_v34  ;;  %v1890_v10 = vadd.s32 136, %v5047_v63 }
 0x324   : > { %2055 = vmax.xlane.f32.xlu0 %v2054_v19  ;;  %v2057_v5 = vmax.f32 %v4579_v21, -1e+09  ;;  %vm1941_vm0 = vcmp.gt.s32.totalorder %v4625_v51, %v1889_v8  ;;  %vm1945_vm2 = vcmp.gt.s32.totalorder %v4625_v51, %v1891_v6  ;;  %vm1947_vm3 = vcmp.gt.s32.totalorder %v4625_v51, %v1892_v2 }
 0x325   : > { %vm1943_vm1 = vcmp.gt.s32.totalorder %v4625_v51, %v1890_v10  ;;  %vm1953_vm6 = vcmp.gt.s32.totalorder %v4625_v51, %v1895_v23  ;;  %vm1955_vm7 = vcmp.gt.s32.totalorder %v4625_v51, %v1896_v60  ;;  %v1900_v6 = vadd.s32 216, %v5047_v63 }
 0x326   : > { %2058 = vmax.xlane.f32.xlu1 %v2057_v5 }
 0x328   : > { %v1753_v38 = vpop.f32.mrb[112].mxu1 }
 0x329   : > { %v4588_v59 = vsel %vm1924_vm8, -1e+09, %v1753_v38  ;;  %v1755_v27 = vpop.f32.mrb[113].mxu1 }
 0x32a   : > { %v1757_v49 = vpop.f32.mrb[114].mxu1  ;;  %v2060_v50 = vmax.f32 %v4588_v59, -1e+09 }
 0x32b   : > { %v4592_v13 = vsel %vm1926_vm9, -1e+09, %v1757_v49  ;;  %v1759_v57 = vpop.f32.mrb[115].mxu1  ;;  %v1893_v49 = vadd.s32 160, %v5047_v63 }
 0x32c   : > { %2061 = vmax.xlane.f32.xlu0 %v2060_v50  ;;  %v2063_v44 = vmax.f32 %v4592_v13, -1e+09  ;;  %v1894_v57 = vadd.s32 168, %v5047_v63 }
 0x32d   : > { %vm1949_vm4 = vcmp.gt.s32.totalorder %v4625_v51, %v1893_v49 }
 0x32e   : > { %2064 = vmax.xlane.f32.xlu1 %v2063_v44  ;;  %vm1951_vm5 = vcmp.gt.s32.totalorder %v4625_v51, %v1894_v57 }
 0x330   : > { %v1763_v62 = vpop.f32.mrb[116].mxu1 }
 0x331   : > { %v4598_v11 = vsel %vm1928_vm10, -1e+09, %v1763_v62  ;;  %v1765_v9 = vpop.f32.mrb[117].mxu1 }
 0x332   : > { %v1767_v22 = vpop.f32.mrb[118].mxu1  ;;  %v2066_v48 = vmax.f32 %v4598_v11, -1e+09 }
 0x333   : > { %v4602_v58 = vsel %vm1930_vm11, -1e+09, %v1767_v22  ;;  %v1769_v4 = vpop.f32.mrb[119].mxu1  ;;  %vm1963_vm11 = vcmp.gt.s32.totalorder %v4625_v51, %v1900_v6 }
 0x334   : > { %2067 = vmax.xlane.f32.xlu0 %v2066_v48  ;;  %v2069_v53 = vmax.f32 %v4602_v58, -1e+09 }
 0x336   : > { %2070 = vmax.xlane.f32.xlu1 %v2069_v53 }
 0x338   : > { %v1773_v37 = vpop.f32.mrb[120].mxu1 }
 0x339   : > { %v4608_v42 = vsel %vm1932_vm12, -1e+09, %v1773_v37  ;;  %v1775_v26 = vpop.f32.mrb[121].mxu1 }
 0x33a   : > { %v1777_v32 = vpop.f32.mrb[122].mxu1  ;;  %v2072_v54 = vmax.f32 %v4608_v42, -1e+09 }
 0x33b   : > { %v4612_v17 = vsel %vm1934_vm13, -1e+09, %v1777_v32  ;;  %v1779_v0 = vpop.f32.mrb[123].mxu1 }
 0x33c   : > { %2073 = vmax.xlane.f32.xlu0 %v2072_v54  ;;  %v2075_v39 = vmax.f32 %v4612_v17, -1e+09 }
 0x33e   : > { %2076 = vmax.xlane.f32.xlu1 %v2075_v39  ;;  %v1897_v39 = vadd.s32 192, %v5047_v63 }
 0x340   : > { %v1783_v56 = vpop.f32.mrb[124].mxu1  ;;  %vm1957_vm8 = vcmp.gt.s32.totalorder %v4625_v51, %v1897_v39 }
 0x341   : > { %v4618_v41 = vsel %vm1936_vm14, -1e+09, %v1783_v56  ;;  %v1785_v24 = vpop.f32.mrb[125].mxu1 }
 0x342   : > { %v1787_v43 = vpop.f32.mrb[126].mxu1  ;;  %v2078_v25 = vmax.f32 %v4618_v41, -1e+09  ;;  %v1898_v24 = vadd.s32 200, %v5047_v63 }
 0x343   : > { %v4621_v47 = vsel %vm1938_vm15, -1e+09, %v1787_v43  ;;  %v1789_v7 = vpop.f32.mrb[127].mxu1 }
 0x344   : > { %2079 = vmax.xlane.f32.xlu0 %v2078_v25  ;;  %v2081_v15 = vmax.f32 %v4621_v47, -1e+09  ;;  %vm1959_vm9 = vcmp.gt.s32.totalorder %v4625_v51, %v1898_v24  ;;  %v1904_v24 = vadd.s32 248, %v5047_v63 }
 0x346   : > { %2082 = vmax.xlane.f32.xlu1 %v2081_v15  ;;  %vm1971_vm15 = vcmp.gt.s32.totalorder %v4625_v51, %v1904_v24 }
 0x348   : > { %v4630_v19 = vpop.f32.mrb[128].mxu1 }
 0x349   : > { %v1795_v52 = vpop.f32.mrb[129].mxu1 }
 0x34a   : > { %v4633_v20 = vsel %vm1941_vm0, -1e+09, %v1795_v52  ;;  %v4635_v1 = vpop.f32.mrb[130].mxu1  ;;  %v1899_v52 = vadd.s32 208, %v5047_v63 }
 0x34b   : > { %v1799_v28 = vpop.f32.mrb[131].mxu1  ;;  %v2084_v55 = vmax.f32 %v4630_v19, %v4633_v20 }
 0x34c   : > { %v4640_v5 = vsel %vm1943_vm1, -1e+09, %v1799_v28  ;;  %vm1961_vm10 = vcmp.gt.s32.totalorder %v4625_v51, %v1899_v52 }
 0x34d   : > { %2085 = vmax.xlane.f32.xlu0 %v2084_v55  ;;  %v2087_v31 = vmax.f32 %v4635_v1, %v4640_v5 }
 0x34f   : > { %2088 = vmax.xlane.f32.xlu1 %v2087_v31 }
 0x350   : > { %v4646_v36 = vpop.f32.mrb[132].mxu1 }
 0x351   : > { %v1805_v3 = vpop.f32.mrb[133].mxu1 }
 0x352   : > { %v4649_v34 = vsel %vm1945_vm2, -1e+09, %v1805_v3  ;;  %v4651_v29 = vpop.f32.mrb[134].mxu1 }
 0x353   : > { %v1809_v38 = vpop.f32.mrb[135].mxu1  ;;  %v2090_v27 = vmax.f32 %v4646_v36, %v4649_v34 }
 0x354   : > { %v4656_v50 = vsel %vm1947_vm3, -1e+09, %v1809_v38 }
 0x355   : > { %2091 = vmax.xlane.f32.xlu0 %v2090_v27  ;;  %v2093_v12 = vmax.f32 %v4651_v29, %v4656_v50 }
 0x357   : > { %2094 = vmax.xlane.f32.xlu1 %v2093_v12  ;;  %v1901_v12 = vadd.s32 224, %v5047_v63 }
 0x358   : > { %v4662_v44 = vpop.f32.mrb[136].mxu1 }
 0x359   : > { %v1815_v45 = vpop.f32.mrb[137].mxu1  ;;  %vm1965_vm12 = vcmp.gt.s32.totalorder %v4625_v51, %v1901_v12 }
 0x35a   : > { %v4665_v62 = vsel %vm1949_vm4, -1e+09, %v1815_v45  ;;  %v4667_v9 = vpop.f32.mrb[138].mxu1 }
 0x35b   : > { %v1819_v22 = vpop.f32.mrb[139].mxu1  ;;  %v2096_v48 = vmax.f32 %v4662_v44, %v4665_v62 }
 0x35c   : > { %v4672_v4 = vsel %vm1951_vm5, -1e+09, %v1819_v22  ;;  %v1902_v22 = vadd.s32 232, %v5047_v63 }
 0x35d   : > { %2097 = vmax.xlane.f32.xlu0 %v2096_v48  ;;  %v2099_v53 = vmax.f32 %v4667_v9, %v4672_v4 }
 0x35e   : > { %vm1967_vm13 = vcmp.gt.s32.totalorder %v4625_v51, %v1902_v22 }
 0x35f   : > { %2100 = vmax.xlane.f32.xlu1 %v2099_v53 }
 0x360   : > { %v4678_v37 = vpop.f32.mrb[140].mxu1 }
 0x361   : > { %v1825_v26 = vpop.f32.mrb[141].mxu1 }
 0x362   : > { %v4681_v32 = vsel %vm1953_vm6, -1e+09, %v1825_v26  ;;  %v4683_v54 = vpop.f32.mrb[142].mxu1 }
 0x363   : > { %v1829_v16 = vpop.f32.mrb[143].mxu1  ;;  %v2102_v0 = vmax.f32 %v4678_v37, %v4681_v32 }
 0x364   : > { %v4688_v35 = vsel %vm1955_vm7, -1e+09, %v1829_v16 }
 0x365   : > { %2103 = vmax.xlane.f32.xlu0 %v2102_v0  ;;  %v2105_v56 = vmax.f32 %v4683_v54, %v4688_v35  ;;  %v1903_v0 = vadd.s32 240, %v5047_v63 }
 0x367   : > { %2106 = vmax.xlane.f32.xlu1 %v2105_v56  ;;  %vm1969_vm14 = vcmp.gt.s32.totalorder %v4625_v51, %v1903_v0 }
 0x368   : > { %v4694_v43 = vpop.f32.mrb[144].mxu1 }
 0x369   : > { %v1835_v25 = vpop.f32.mrb[145].mxu1 }
 0x36a   : > { %v4697_v7 = vsel %vm1957_vm8, -1e+09, %v1835_v25  ;;  %v4699_v8 = vpop.f32.mrb[146].mxu1 }
 0x36b   : > { %v1839_v15 = vpop.f32.mrb[147].mxu1  ;;  %v2108_v10 = vmax.f32 %v4694_v43, %v4697_v7 }
 0x36c   : > { %v4704_v28 = vsel %vm1959_vm9, -1e+09, %v1839_v15 }
 0x36d   : > { %2109 = vmax.xlane.f32.xlu0 %v2108_v10  ;;  %v2111_v55 = vmax.f32 %v4699_v8, %v4704_v28 }
 0x36f   : > { %2112 = vmax.xlane.f32.xlu1 %v2111_v55 }
 0x370   : > { %v4710_v31 = vpop.f32.mrb[148].mxu1 }
 0x371   : > { %v1845_v2 = vpop.f32.mrb[149].mxu1 }
 0x372   : > { %v4713_v3 = vsel %vm1961_vm10, -1e+09, %v1845_v2  ;;  %v4715_v38 = vpop.f32.mrb[150].mxu1 }
 0x373   : > { %v1849_v27 = vpop.f32.mrb[151].mxu1  ;;  %v2114_v49 = vmax.f32 %v4710_v31, %v4713_v3 }
 0x374   : > { %v4720_v57 = vsel %vm1963_vm11, -1e+09, %v1849_v27 }
 0x375   : > { %2115 = vmax.xlane.f32.xlu0 %v2114_v49  ;;  %v2117_v45 = vmax.f32 %v4715_v38, %v4720_v57 }
 0x377   : > { %2118 = vmax.xlane.f32.xlu1 %v2117_v45 }
 0x378   : > { %v4726_v48 = vpop.f32.mrb[152].mxu1 }
 0x379   : > { %v1855_v23 = vpop.f32.mrb[153].mxu1 }
 0x37a   : > { %v4729_v53 = vsel %vm1965_vm12, -1e+09, %v1855_v23  ;;  %v4731_v60 = vpop.f32.mrb[154].mxu1 }
 0x37b   : > { %v1859_v26 = vpop.f32.mrb[155].mxu1  ;;  %v2120_v16 = vmax.f32 %v4726_v48, %v4729_v53 }
 0x37c   : > { %v4736_v39 = vsel %vm1967_vm13, -1e+09, %v1859_v26 }
 0x37d   : > { %2121 = vmax.xlane.f32.xlu0 %v2120_v16  ;;  %v2123_v56 = vmax.f32 %v4731_v60, %v4736_v39 }
 0x37f   : > { %2124 = vmax.xlane.f32.xlu1 %v2123_v56 }
 0x380   : > { %v4742_v25 = vpop.f32.mrb[156].mxu1 }
 0x381   : > { %v1865_v15 = vpop.f32.mrb[157].mxu1 }
 0x382   : > { %v4745_v10 = vsel %vm1969_vm14, -1e+09, %v1865_v15  ;;  %v4747_v52 = vpop.f32.mrb[158].mxu1 }
 0x383   : > { %v1869_v55 = vpop.f32.mrb[159].mxu1  ;;  %v2126_v6 = vmax.f32 %v4742_v25, %v4745_v10 }
 0x384   : > { %v4751_v2 = vsel %vm1971_vm15, -1e+09, %v1869_v55 }
 0x385   : > { %2127 = vmax.xlane.f32.xlu0 %v2126_v6  ;;  %v2129_v63 = vmax.f32 %v4747_v52, %v4751_v2 }
 0x387   : > { %2130 = vmax.xlane.f32.xlu1 %v2129_v63 }
 0x399   : > { %v2038_v27 = vpop.xlane.xlu0 %2037 }
 0x39a   : > { %v2132_v49 = vsub.f32 %v4532_v33, %v2038_v27  ;;  %v2133_v12 = vsub.f32 -1e+09, %v2038_v27 }
 0x39c   : > { %v2196_v51 = vmul.f32 1.442695, %v2132_v49  ;;  %v2198_v45 = vmul.f32 1.442695, %v2133_v12 }
 0x39d   : > { %v2041_v22 = vpop.xlane.xlu0 %2040 }
 0x39e   : > { %3335 = vpow2.f32 %v2196_v51  ;;  %v2134_v23 = vsub.f32 %v4538_v18, %v2041_v22  ;;  %v2135_v26 = vsub.f32 -1e+09, %v2041_v22 }
 0x39f   : > { %3337 = vpow2.f32 %v2198_v45 }
 0x3a0   : > { %v2200_v16 = vmul.f32 1.442695, %v2134_v23  ;;  %v2202_v0 = vmul.f32 1.442695, %v2135_v26 }
 0x3a1   : > { %v2044_v56 = vpop.xlane.xlu1 %2043 }
 0x3a2   : > { %3339 = vpow2.f32 %v2200_v16  ;;  %v2136_v24 = vsub.f32 %v4546_v30, %v2044_v56  ;;  %v2137_v15 = vsub.f32 -1e+09, %v2044_v56 }
 0x3a3   : > { %3341 = vpow2.f32 %v2202_v0 }
 0x3a4   : > { %v2204_v55 = vmul.f32 1.442695, %v2136_v24  ;;  %v2206_v6 = vmul.f32 1.442695, %v2137_v15 }
 0x3a5   : > { %v2047_v33 = vpop.xlane.xlu1 %2046 }
 0x3a6   : > { %3343 = vpow2.f32 %v2204_v55  ;;  %v2138_v63 = vsub.f32 %v4552_v40, %v2047_v33  ;;  %v2139_v27 = vsub.f32 -1e+09, %v2047_v33 }
 0x3a7   : > { %3345 = vpow2.f32 %v2206_v6 }
 0x3a8   : > { %v3336_v49 = vpop.eup %3335  ;;  %v2208_v18 = vmul.f32 1.442695, %v2138_v63  ;;  %v2210_v12 = vmul.f32 1.442695, %v2139_v27 }
 0x3a9   : > { %v3338_v51 = vpop.eup %3337  ;;  %v2050_v45 = vpop.xlane.xlu0 %2049 }
 0x3aa   : > { %3347 = vpow2.f32 %v2208_v18  ;;  %v2140_v22 = vsub.f32 %v4560_v61, %v2050_v45  ;;  %v2141_v23 = vsub.f32 -1e+09, %v2050_v45  ;;  %v2324_v30 = vadd.f32 %v3338_v51, %v3336_v49 }
 0x3ab   : > { %3349 = vpow2.f32 %v2210_v12  ;;  %v2053_v26 = vpop.xlane.xlu1 %2052 }
 0x3ac   : > { %v3340_v16 = vpop.eup %3339  ;;  %v2212_v0 = vmul.f32 1.442695, %v2140_v22  ;;  %v2214_v56 = vmul.f32 1.442695, %v2141_v23  ;;  %v2142_v24 = vsub.f32 %v4566_v46, %v2053_v26  ;;  %v2143_v40 = vsub.f32 -1e+09, %v2053_v26  ;;  %2325 = vadd.xlane.f32.xlu0 %v2324_v30 }
 0x3ad   : > { %v3342_v15 = vpop.eup %3341  ;;  %v2452_v55 = vpack.c.bf16 %v3340_v16, %v3336_v49 }
 0x3ae   : > { %3351 = vpow2.f32 %v2212_v0  ;;  %v2216_v6 = vmul.f32 1.442695, %v2142_v24  ;;  %v2218_v33 = vmul.f32 1.442695, %v2143_v40  ;;  %v2453_v63 = vpack.c.bf16 %v3342_v15, %v3338_v51 }
 0x3af   : > { %3353 = vpow2.f32 %v2214_v56  ;;  %v2327_v27 = vadd.f32 %v3342_v15, %v3340_v16 }
 0x3b0   : > { %v3344_v61 = vpop.eup %3343  ;;  %3355 = vpow2.f32 %v2216_v6  ;;  %2516 = vmatprep.mubr.bf16.mxu0 %v2453_v63 }
 0x3b1   : > { %v3346_v18 = vpop.eup %3345  ;;  %3357 = vpow2.f32 %v2218_v33  ;;  %2328 = vadd.xlane.f32.xlu1 %v2327_v27  ;;  %2517 = vmatmul.mubr.bf16.vlgmr.msra.gmra.mrb[96].mxu0 %v2452_v55  ;;  %v2056_v12 = vpop.xlane.xlu0 %2055 }
 0x3b2   : > { %v2144_v46 = vsub.f32 %v4574_v14, %v2056_v12  ;;  %v2145_v45 = vsub.f32 -1e+09, %v2056_v12  ;;  %v2330_v22 = vadd.f32 %v3346_v18, %v3344_v61 }
 0x3b3   : > { %v2059_v23 = vpop.xlane.xlu1 %2058 }
 0x3b4   : > { %v3348_v49 = vpop.eup %3347  ;;  %v2220_v30 = vmul.f32 1.442695, %v2144_v46  ;;  %v2222_v26 = vmul.f32 1.442695, %v2145_v45  ;;  %v2146_v51 = vsub.f32 %v4579_v21, %v2059_v23  ;;  %v2147_v0 = vsub.f32 -1e+09, %v2059_v23  ;;  %2331 = vadd.xlane.f32.xlu0 %v2330_v22 }
 0x3b5   : > { %v3350_v16 = vpop.eup %3349  ;;  %v2454_v56 = vpack.c.bf16 %v3348_v49, %v3344_v61 }
 0x3b6   : > { %3359 = vpow2.f32 %v2220_v30  ;;  %v2224_v24 = vmul.f32 1.442695, %v2146_v51  ;;  %v2226_v40 = vmul.f32 1.442695, %v2147_v0  ;;  %v2455_v15 = vpack.c.bf16 %v3350_v16, %v3346_v18 }
 0x3b7   : > { %3361 = vpow2.f32 %v2222_v26  ;;  %v2333_v55 = vadd.f32 %v3350_v16, %v3348_v49 }
 0x3b8   : > { %v3352_v6 = vpop.eup %3351  ;;  %3363 = vpow2.f32 %v2224_v24  ;;  %2526 = vmatprep.mubr.bf16.mxu0 %v2455_v15 }
 0x3b9   : > { %v3354_v14 = vpop.eup %3353  ;;  %3365 = vpow2.f32 %v2226_v40  ;;  %2334 = vadd.xlane.f32.xlu1 %v2333_v55  ;;  %2527 = vmatmul.mubr.bf16.gmra.mrb[100].mxu0 %v2454_v56  ;;  %v2062_v33 = vpop.xlane.xlu0 %2061 }
 0x3ba   : > { %v3356_v63 = vpop.eup %3355  ;;  %v2148_v21 = vsub.f32 %v4588_v59, %v2062_v33  ;;  %v2149_v27 = vsub.f32 -1e+09, %v2062_v33  ;;  %v2336_v12 = vadd.f32 %v3354_v14, %v3352_v6 }
 0x3bb   : > { %v3358_v61 = vpop.eup %3357  ;;  %v2065_v46 = vpop.xlane.xlu1 %2064  ;;  %v2456_v0 = vpack.c.bf16 %v3356_v63, %v3352_v6 }
 0x3bc   : > { %v2228_v45 = vmul.f32 1.442695, %v2148_v21  ;;  %v2230_v22 = vmul.f32 1.442695, %v2149_v27  ;;  %v2150_v18 = vsub.f32 %v4592_v13, %v2065_v46  ;;  %v2151_v23 = vsub.f32 -1e+09, %v2065_v46  ;;  %2337 = vadd.xlane.f32.xlu0 %v2336_v12 }
 0x3bd   : > { %v2457_v49 = vpack.c.bf16 %v3358_v61, %v3354_v14  ;;  %v2339_v30 = vadd.f32 %v3358_v61, %v3356_v63 }
 0x3be   : > { %3367 = vpow2.f32 %v2228_v45  ;;  %v2232_v26 = vmul.f32 1.442695, %v2150_v18  ;;  %v2234_v51 = vmul.f32 1.442695, %v2151_v23 }
 0x3bf   : > { %3369 = vpow2.f32 %v2230_v22  ;;  %2536 = vmatprep.mubr.bf16.mxu0 %v2457_v49  ;;  %2340 = vadd.xlane.f32.xlu1 %v2339_v30 }
 0x3c0   : > { %v3360_v59 = vpop.eup %3359  ;;  %3371 = vpow2.f32 %v2232_v26 }
 0x3c1   : > { %v3362_v16 = vpop.eup %3361  ;;  %3373 = vpow2.f32 %v2234_v51  ;;  %2537 = vmatmul.mubr.bf16.gmra.mrb[104].mxu0 %v2456_v0  ;;  %v2068_v56 = vpop.xlane.xlu0 %2067 }
 0x3c2   : > { %v3364_v24 = vpop.eup %3363  ;;  %v2152_v13 = vsub.f32 %v4598_v11, %v2068_v56  ;;  %v2153_v40 = vsub.f32 -1e+09, %v2068_v56  ;;  %v2342_v15 = vadd.f32 %v3362_v16, %v3360_v59 }
 0x3c3   : > { %v3366_v55 = vpop.eup %3365  ;;  %v2071_v14 = vpop.xlane.xlu1 %2070  ;;  %v2458_v45 = vpack.c.bf16 %v3364_v24, %v3360_v59 }
 0x3c4   : > { %v2236_v33 = vmul.f32 1.442695, %v2152_v13  ;;  %v2238_v21 = vmul.f32 1.442695, %v2153_v40  ;;  %v2154_v27 = vsub.f32 %v4602_v58, %v2071_v14  ;;  %v2155_v12 = vsub.f32 -1e+09, %v2071_v14  ;;  %2343 = vadd.xlane.f32.xlu0 %v2342_v15 }
 0x3c5   : > { %v2459_v6 = vpack.c.bf16 %v3366_v55, %v3362_v16  ;;  %v2345_v63 = vadd.f32 %v3366_v55, %v3364_v24 }
 0x3c6   : > { %3375 = vpow2.f32 %v2236_v33  ;;  %v2240_v61 = vmul.f32 1.442695, %v2154_v27  ;;  %v2242_v46 = vmul.f32 1.442695, %v2155_v12 }
 0x3c7   : > { %3377 = vpow2.f32 %v2238_v21  ;;  %2546 = vmatprep.mubr.bf16.mxu0 %v2459_v6  ;;  %2346 = vadd.xlane.f32.xlu1 %v2345_v63 }
 0x3c8   : > { %v3368_v11 = vpop.eup %3367  ;;  %3379 = vpow2.f32 %v2240_v61 }
 0x3c9   : > { %v3370_v22 = vpop.eup %3369  ;;  %3381 = vpow2.f32 %v2242_v46  ;;  %2547 = vmatmul.mubr.bf16.gmra.mrb[108].mxu0 %v2458_v45  ;;  %v2074_v18 = vpop.xlane.xlu0 %2073 }
 0x3ca   : > { %v3372_v23 = vpop.eup %3371  ;;  %v2156_v58 = vsub.f32 %v4608_v42, %v2074_v18  ;;  %v2157_v49 = vsub.f32 -1e+09, %v2074_v18  ;;  %v2348_v30 = vadd.f32 %v3370_v22, %v3368_v11 }
 0x3cb   : > { %v3374_v26 = vpop.eup %3373  ;;  %v2077_v51 = vpop.xlane.xlu1 %2076  ;;  %v2460_v55 = vpack.c.bf16 %v3372_v23, %v3368_v11 }
 0x3cc   : > { %v2244_v0 = vmul.f32 1.442695, %v2156_v58  ;;  %v2246_v16 = vmul.f32 1.442695, %v2157_v49  ;;  %v2158_v56 = vsub.f32 %v4612_v17, %v2077_v51  ;;  %v2159_v13 = vsub.f32 -1e+09, %v2077_v51  ;;  %2349 = vadd.xlane.f32.xlu0 %v2348_v30 }
 0x3cd   : > { %v2461_v59 = vpack.c.bf16 %v3374_v26, %v3370_v22  ;;  %v2351_v24 = vadd.f32 %v3374_v26, %v3372_v23 }
 0x3ce   : > { %3383 = vpow2.f32 %v2244_v0  ;;  %v2248_v40 = vmul.f32 1.442695, %v2158_v56  ;;  %v2250_v15 = vmul.f32 1.442695, %v2159_v13 }
 0x3cf   : > { %3385 = vpow2.f32 %v2246_v16  ;;  %2556 = vmatprep.mubr.bf16.mxu0 %v2461_v59  ;;  %2352 = vadd.xlane.f32.xlu1 %v2351_v24 }
 0x3d0   : > { %v3376_v42 = vpop.eup %3375  ;;  %3387 = vpow2.f32 %v2248_v40 }
 0x3d1   : > { %v3378_v14 = vpop.eup %3377  ;;  %3389 = vpow2.f32 %v2250_v15  ;;  %2557 = vmatmul.mubr.bf16.gmra.mrb[112].mxu0 %v2460_v55  ;;  %v2080_v33 = vpop.xlane.xlu0 %2079 }
 0x3d2   : > { %v3380_v21 = vpop.eup %3379  ;;  %v2160_v17 = vsub.f32 %v4618_v41, %v2080_v33  ;;  %v2161_v27 = vsub.f32 -1e+09, %v2080_v33  ;;  %v2354_v12 = vadd.f32 %v3378_v14, %v3376_v42 }
 0x3d3   : > { %v3382_v6 = vpop.eup %3381  ;;  %v2083_v63 = vpop.xlane.xlu1 %2082  ;;  %v2462_v49 = vpack.c.bf16 %v3380_v21, %v3376_v42 }
 0x3d4   : > { %v2252_v61 = vmul.f32 1.442695, %v2160_v17  ;;  %v2254_v46 = vmul.f32 1.442695, %v2161_v27  ;;  %v2162_v45 = vsub.f32 %v4621_v47, %v2083_v63  ;;  %v2163_v22 = vsub.f32 -1e+09, %v2083_v63  ;;  %2355 = vadd.xlane.f32.xlu0 %v2354_v12 }
 0x3d5   : > { %v2463_v11 = vpack.c.bf16 %v3382_v6, %v3378_v14  ;;  %v2357_v18 = vadd.f32 %v3382_v6, %v3380_v21 }
 0x3d6   : > { %3391 = vpow2.f32 %v2252_v61  ;;  %v2256_v23 = vmul.f32 1.442695, %v2162_v45  ;;  %v2258_v58 = vmul.f32 1.442695, %v2163_v22 }
 0x3d7   : > { %3393 = vpow2.f32 %v2254_v46  ;;  %2566 = vmatprep.mubr.bf16.mxu0 %v2463_v11  ;;  %2358 = vadd.xlane.f32.xlu1 %v2357_v18 }
 0x3d8   : > { %v3384_v41 = vpop.eup %3383  ;;  %3395 = vpow2.f32 %v2256_v23 }
 0x3d9   : > { %v3386_v30 = vpop.eup %3385  ;;  %3397 = vpow2.f32 %v2258_v58  ;;  %2567 = vmatmul.mubr.bf16.gmra.mrb[116].mxu0 %v2462_v49 }
 0x3da   : > { %v3388_v26 = vpop.eup %3387  ;;  %v2086_v51 = vpop.xlane.xlu0 %2085  ;;  %v2360_v0 = vadd.f32 %v3386_v30, %v3384_v41 }
 0x3db   : > { %v3390_v47 = vpop.eup %3389  ;;  %v2164_v16 = vsub.f32 %v4630_v19, %v2086_v51  ;;  %v2165_v56 = vsub.f32 %v4633_v20, %v2086_v51  ;;  %v2464_v21 = vpack.c.bf16 %v3388_v26, %v3384_v41 }
 0x3dc   : > { %2361 = vadd.xlane.f32.xlu0 %v2360_v0  ;;  %v2089_v13 = vpop.xlane.xlu1 %2088  ;;  %v2465_v59 = vpack.c.bf16 %v3390_v47, %v3386_v30  ;;  %v2363_v24 = vadd.f32 %v3390_v47, %v3388_v26 }
 0x3dd   : > { %v2260_v40 = vmul.f32 1.442695, %v2164_v16  ;;  %v2262_v15 = vmul.f32 1.442695, %v2165_v56  ;;  %v2166_v55 = vsub.f32 %v4635_v1, %v2089_v13  ;;  %v2167_v42 = vsub.f32 %v4640_v5, %v2089_v13 }
 0x3de   : > { %2576 = vmatprep.mubr.bf16.mxu0 %v2465_v59  ;;  %2364 = vadd.xlane.f32.xlu1 %v2363_v24 }
 0x3df   : > { %3399 = vpow2.f32 %v2260_v40  ;;  %v2264_v14 = vmul.f32 1.442695, %v2166_v55  ;;  %v2266_v33 = vmul.f32 1.442695, %v2167_v42 }
 0x3e0   : > { %v3392_v17 = vpop.eup %3391  ;;  %3401 = vpow2.f32 %v2262_v15 }
 0x3e1   : > { %v3394_v19 = vpop.eup %3393  ;;  %3403 = vpow2.f32 %v2264_v14  ;;  %2577 = vmatmul.mubr.bf16.gmra.mrb[120].mxu0 %v2464_v21 }
 0x3e2   : > { %v3396_v20 = vpop.eup %3395  ;;  %3405 = vpow2.f32 %v2266_v33  ;;  %v2092_v27 = vpop.xlane.xlu0 %2091  ;;  %v2366_v12 = vadd.f32 %v3394_v19, %v3392_v17 }
 0x3e3   : > { %v3398_v6 = vpop.eup %3397  ;;  %v2168_v1 = vsub.f32 %v4646_v36, %v2092_v27  ;;  %v2169_v5 = vsub.f32 %v4649_v34, %v2092_v27  ;;  %v2466_v49 = vpack.c.bf16 %v3396_v20, %v3392_v17 }
 0x3e4   : > { %2367 = vadd.xlane.f32.xlu0 %v2366_v12  ;;  %v2095_v63 = vpop.xlane.xlu1 %2094  ;;  %v2467_v61 = vpack.c.bf16 %v3398_v6, %v3394_v19  ;;  %v2369_v46 = vadd.f32 %v3398_v6, %v3396_v20 }
 0x3e5   : > { %v2268_v45 = vmul.f32 1.442695, %v2168_v1  ;;  %v2270_v22 = vmul.f32 1.442695, %v2169_v5  ;;  %v2170_v11 = vsub.f32 %v4651_v29, %v2095_v63  ;;  %v2171_v18 = vsub.f32 %v4656_v50, %v2095_v63 }
 0x3e6   : > { %2586 = vmatprep.mubr.bf16.mxu0 %v2467_v61  ;;  %2370 = vadd.xlane.f32.xlu1 %v2369_v46 }
 0x3e7   : > { %3407 = vpow2.f32 %v2268_v45  ;;  %v2272_v23 = vmul.f32 1.442695, %v2170_v11  ;;  %v2274_v58 = vmul.f32 1.442695, %v2171_v18 }
 0x3e8   : > { %3409 = vpow2.f32 %v2270_v22 }
 0x3e9   : > { %v3400_v36 = vpop.eup %3399  ;;  %3411 = vpow2.f32 %v2272_v23  ;;  %2587 = vmatmul.mubr.bf16.gmra.mrb[124].mxu0 %v2466_v49 }
 0x3ea   : > { %v3402_v34 = vpop.eup %3401  ;;  %3413 = vpow2.f32 %v2274_v58  ;;  %v2098_v41 = vpop.xlane.xlu0 %2097 }
 0x3eb   : > { %v3404_v30 = vpop.eup %3403  ;;  %v2172_v26 = vsub.f32 %v4662_v44, %v2098_v41  ;;  %v2173_v29 = vsub.f32 %v4665_v62, %v2098_v41  ;;  %v2372_v51 = vadd.f32 %v3402_v34, %v3400_v36 }
 0x3ec   : > { %v3406_v50 = vpop.eup %3405  ;;  %v2101_v0 = vpop.xlane.xlu1 %2100  ;;  %v2468_v47 = vpack.c.bf16 %v3404_v30, %v3400_v36 }
 0x3ed   : > { %v2276_v16 = vmul.f32 1.442695, %v2172_v26  ;;  %v2278_v56 = vmul.f32 1.442695, %v2173_v29  ;;  %v2174_v13 = vsub.f32 %v4667_v9, %v2101_v0  ;;  %v2175_v59 = vsub.f32 %v4672_v4, %v2101_v0  ;;  %2373 = vadd.xlane.f32.xlu0 %v2372_v51 }
 0x3ee   : > { %v2469_v24 = vpack.c.bf16 %v3406_v50, %v3402_v34  ;;  %v2375_v40 = vadd.f32 %v3406_v50, %v3404_v30 }
 0x3ef   : > { %3415 = vpow2.f32 %v2276_v16  ;;  %v2280_v15 = vmul.f32 1.442695, %v2174_v13  ;;  %v2282_v55 = vmul.f32 1.442695, %v2175_v59 }
 0x3f0   : > { %3417 = vpow2.f32 %v2278_v56  ;;  %2596 = vmatprep.mubr.bf16.mxu0 %v2469_v24  ;;  %2376 = vadd.xlane.f32.xlu1 %v2375_v40 }
 0x3f1   : > { %v3408_v44 = vpop.eup %3407  ;;  %3419 = vpow2.f32 %v2280_v15  ;;  %2597 = vmatmul.mubr.bf16.gmra.mrb[128].mxu0 %v2468_v47 }
 0x3f2   : > { %v3410_v62 = vpop.eup %3409  ;;  %3421 = vpow2.f32 %v2282_v55  ;;  %v2104_v42 = vpop.xlane.xlu0 %2103 }
 0x3f3   : > { %v3412_v14 = vpop.eup %3411  ;;  %v2176_v9 = vsub.f32 %v4678_v37, %v2104_v42  ;;  %v2177_v4 = vsub.f32 %v4681_v32, %v2104_v42  ;;  %v2378_v33 = vadd.f32 %v3410_v62, %v3408_v44 }
 0x3f4   : > { %v3414_v21 = vpop.eup %3413  ;;  %v2107_v17 = vpop.xlane.xlu1 %2106  ;;  %v2470_v19 = vpack.c.bf16 %v3412_v14, %v3408_v44 }
 0x3f5   : > { %v2284_v20 = vmul.f32 1.442695, %v2176_v9  ;;  %v2286_v27 = vmul.f32 1.442695, %v2177_v4  ;;  %v2178_v12 = vsub.f32 %v4683_v54, %v2107_v17  ;;  %v2179_v6 = vsub.f32 %v4688_v35, %v2107_v17  ;;  %2379 = vadd.xlane.f32.xlu0 %v2378_v33 }
 0x3f6   : > { %v2471_v1 = vpack.c.bf16 %v3414_v21, %v3410_v62  ;;  %v2381_v5 = vadd.f32 %v3414_v21, %v3412_v14 }
 0x3f7   : > { %3423 = vpow2.f32 %v2284_v20  ;;  %v2288_v63 = vmul.f32 1.442695, %v2178_v12  ;;  %v2290_v61 = vmul.f32 1.442695, %v2179_v6 }
 0x3f8   : > { %3425 = vpow2.f32 %v2286_v27  ;;  %2606 = vmatprep.mubr.bf16.mxu0 %v2471_v1  ;;  %2382 = vadd.xlane.f32.xlu1 %v2381_v5 }
 0x3f9   : > { %v3416_v37 = vpop.eup %3415  ;;  %3427 = vpow2.f32 %v2288_v63  ;;  %2607 = vmatmul.mubr.bf16.gmra.mrb[132].mxu0 %v2470_v19 }
 0x3fa   : > { %v3418_v32 = vpop.eup %3417  ;;  %3429 = vpow2.f32 %v2290_v61  ;;  %v2110_v46 = vpop.xlane.xlu0 %2109 }
 0x3fb   : > { %v3420_v45 = vpop.eup %3419  ;;  %v2180_v54 = vsub.f32 %v4694_v43, %v2110_v46  ;;  %v2181_v35 = vsub.f32 %v4697_v7, %v2110_v46  ;;  %v2384_v22 = vadd.f32 %v3418_v32, %v3416_v37 }
 0x3fc   : > { %v3422_v11 = vpop.eup %3421  ;;  %v2113_v18 = vpop.xlane.xlu1 %2112  ;;  %v2472_v23 = vpack.c.bf16 %v3420_v45, %v3416_v37 }
 0x3fd   : > { %v2292_v58 = vmul.f32 1.442695, %v2180_v54  ;;  %v2294_v49 = vmul.f32 1.442695, %v2181_v35  ;;  %v2182_v36 = vsub.f32 %v4699_v8, %v2113_v18  ;;  %v2183_v34 = vsub.f32 %v4704_v28, %v2113_v18  ;;  %2385 = vadd.xlane.f32.xlu0 %v2384_v22 }
 0x3fe   : > { %v2473_v41 = vpack.c.bf16 %v3422_v11, %v3418_v32  ;;  %v2387_v30 = vadd.f32 %v3422_v11, %v3420_v45 }
 0x3ff   : > { %3431 = vpow2.f32 %v2292_v58  ;;  %v2296_v26 = vmul.f32 1.442695, %v2182_v36  ;;  %v2298_v29 = vmul.f32 1.442695, %v2183_v34 }
 0x400   : > { %3433 = vpow2.f32 %v2294_v49  ;;  %2616 = vmatprep.mubr.bf16.mxu0 %v2473_v41  ;;  %2388 = vadd.xlane.f32.xlu1 %v2387_v30 }
 0x401   : > { %v3424_v43 = vpop.eup %3423  ;;  %3435 = vpow2.f32 %v2296_v26  ;;  %2617 = vmatmul.mubr.bf16.gmra.mrb[136].mxu0 %v2472_v23 }
 0x402   : > { %v3426_v7 = vpop.eup %3425  ;;  %3437 = vpow2.f32 %v2298_v29  ;;  %v2116_v51 = vpop.xlane.xlu0 %2115 }
 0x403   : > { %v3428_v50 = vpop.eup %3427  ;;  %v2184_v8 = vsub.f32 %v4710_v31, %v2116_v51  ;;  %v2185_v28 = vsub.f32 %v4713_v3, %v2116_v51  ;;  %v2390_v0 = vadd.f32 %v3426_v7, %v3424_v43 }
 0x404   : > { %v3430_v47 = vpop.eup %3429  ;;  %v2119_v16 = vpop.xlane.xlu1 %2118  ;;  %v2474_v56 = vpack.c.bf16 %v3428_v50, %v3424_v43 }
 0x405   : > { %v2300_v13 = vmul.f32 1.442695, %v2184_v8  ;;  %v2302_v59 = vmul.f32 1.442695, %v2185_v28  ;;  %v2186_v24 = vsub.f32 %v4715_v38, %v2119_v16  ;;  %v2187_v40 = vsub.f32 %v4720_v57, %v2119_v16  ;;  %2391 = vadd.xlane.f32.xlu0 %v2390_v0 }
 0x406   : > { %v2475_v15 = vpack.c.bf16 %v3430_v47, %v3426_v7  ;;  %v2393_v55 = vadd.f32 %v3430_v47, %v3428_v50 }
 0x407   : > { %3439 = vpow2.f32 %v2300_v13  ;;  %v2304_v44 = vmul.f32 1.442695, %v2186_v24  ;;  %v2306_v62 = vmul.f32 1.442695, %v2187_v40 }
 0x408   : > { %3441 = vpow2.f32 %v2302_v59  ;;  %2626 = vmatprep.mubr.bf16.mxu0 %v2475_v15  ;;  %2394 = vadd.xlane.f32.xlu1 %v2393_v55 }
 0x409   : > { %v3432_v31 = vpop.eup %3431  ;;  %3443 = vpow2.f32 %v2304_v44  ;;  %2627 = vmatmul.mubr.bf16.gmra.mrb[140].mxu0 %v2474_v56 }
 0x40a   : > { %v3434_v3 = vpop.eup %3433  ;;  %3445 = vpow2.f32 %v2306_v62  ;;  %v2122_v42 = vpop.xlane.xlu0 %2121 }
 0x40b   : > { %v3436_v14 = vpop.eup %3435  ;;  %v2188_v38 = vsub.f32 %v4726_v48, %v2122_v42  ;;  %v2189_v57 = vsub.f32 %v4729_v53, %v2122_v42  ;;  %v2396_v9 = vadd.f32 %v3434_v3, %v3432_v31 }
 0x40c   : > { %v3438_v4 = vpop.eup %3437  ;;  %v2125_v33 = vpop.xlane.xlu1 %2124  ;;  %v2476_v21 = vpack.c.bf16 %v3436_v14, %v3432_v31 }
 0x40d   : > { %v2308_v17 = vmul.f32 1.442695, %v2188_v38  ;;  %v2310_v19 = vmul.f32 1.442695, %v2189_v57  ;;  %v2190_v20 = vsub.f32 %v4731_v60, %v2125_v33  ;;  %v2191_v27 = vsub.f32 %v4736_v39, %v2125_v33  ;;  %2397 = vadd.xlane.f32.xlu0 %v2396_v9 }
 0x40e   : > { %v2477_v12 = vpack.c.bf16 %v3438_v4, %v3434_v3  ;;  %v2399_v6 = vadd.f32 %v3438_v4, %v3436_v14 }
 0x40f   : > { %3447 = vpow2.f32 %v2308_v17  ;;  %v2312_v1 = vmul.f32 1.442695, %v2190_v20  ;;  %v2314_v5 = vmul.f32 1.442695, %v2191_v27 }
 0x410   : > { %3449 = vpow2.f32 %v2310_v19  ;;  %2636 = vmatprep.mubr.bf16.mxu0 %v2477_v12  ;;  %2400 = vadd.xlane.f32.xlu1 %v2399_v6 }
 0x411   : > { %v3440_v48 = vpop.eup %3439  ;;  %3451 = vpow2.f32 %v2312_v1  ;;  %2637 = vmatmul.mubr.bf16.gmra.mrb[144].mxu0 %v2476_v21 }
 0x412   : > { %v3442_v53 = vpop.eup %3441  ;;  %3453 = vpow2.f32 %v2314_v5  ;;  %v2128_v63 = vpop.xlane.xlu0 %2127 }
 0x413   : > { %v3444_v61 = vpop.eup %3443  ;;  %v2192_v60 = vsub.f32 %v4742_v25, %v2128_v63  ;;  %v2193_v39 = vsub.f32 %v4745_v10, %v2128_v63  ;;  %v2402_v37 = vadd.f32 %v3442_v53, %v3440_v48 }
 0x414   : > { %v3446_v32 = vpop.eup %3445  ;;  %v2131_v46 = vpop.xlane.xlu1 %2130  ;;  %v2478_v45 = vpack.c.bf16 %v3444_v61, %v3440_v48 }
 0x415   : > { %v2316_v54 = vmul.f32 1.442695, %v2192_v60  ;;  %v2318_v35 = vmul.f32 1.442695, %v2193_v39  ;;  %2403 = vadd.xlane.f32.xlu0 %v2402_v37  ;;  %v2194_v22 = vsub.f32 %v4747_v52, %v2131_v46  ;;  %v2195_v11 = vsub.f32 %v4751_v2, %v2131_v46 }
 0x416   : > { %v2479_v18 = vpack.c.bf16 %v3446_v32, %v3442_v53  ;;  %v2405_v23 = vadd.f32 %v3446_v32, %v3444_v61 }
 0x417   : > { %3455 = vpow2.f32 %v2316_v54  ;;  %v2320_v58 = vmul.f32 1.442695, %v2194_v22  ;;  %v2322_v49 = vmul.f32 1.442695, %v2195_v11 }
 0x418   : > { %3457 = vpow2.f32 %v2318_v35  ;;  %2646 = vmatprep.mubr.bf16.mxu0 %v2479_v18  ;;  %2406 = vadd.xlane.f32.xlu1 %v2405_v23 }
 0x419   : > { %v3448_v25 = vpop.eup %3447  ;;  %3459 = vpow2.f32 %v2320_v58  ;;  %2647 = vmatmul.mubr.bf16.gmra.mrb[148].mxu0 %v2478_v45 }
 0x41a   : > { %v3450_v10 = vpop.eup %3449  ;;  %3461 = vpow2.f32 %v2322_v49 }
 0x41b   : > { %v3452_v36 = vpop.eup %3451  ;;  %v2408_v34 = vadd.f32 %v3450_v10, %v3448_v25 }
 0x41c   : > { %v3454_v41 = vpop.eup %3453  ;;  %v2480_v30 = vpack.c.bf16 %v3452_v36, %v3448_v25 }
 0x41d   : > { %2409 = vadd.xlane.f32.xlu0 %v2408_v34  ;;  %v2481_v52 = vpack.c.bf16 %v3454_v41, %v3450_v10  ;;  %v2411_v2 = vadd.f32 %v3454_v41, %v3452_v36 }
 0x41f   : > { %2656 = vmatprep.mubr.bf16.mxu0 %v2481_v52  ;;  %2412 = vadd.xlane.f32.xlu1 %v2411_v2 }
 0x421   : > { %v3456_v26 = vpop.eup %3455  ;;  %2657 = vmatmul.mubr.bf16.gmra.mrb[152].mxu0 %v2480_v30 }
 0x422   : > { %v3458_v29 = vpop.eup %3457 }
 0x423   : > { %v3460_v43 = vpop.eup %3459  ;;  %v2414_v7 = vadd.f32 %v3458_v29, %v3456_v26 }
 0x424   : > { %v3462_v51 = vpop.eup %3461  ;;  %v2482_v50 = vpack.c.bf16 %v3460_v43, %v3456_v26 }
 0x425   : > { %2415 = vadd.xlane.f32.xlu0 %v2414_v7  ;;  %v2483_v8 = vpack.c.bf16 %v3462_v51, %v3458_v29  ;;  %v2417_v28 = vadd.f32 %v3462_v51, %v3460_v43 }
 0x427   : > { %2666 = vmatprep.mubr.bf16.mxu0 %v2483_v8  ;;  %2418 = vadd.xlane.f32.xlu1 %v2417_v28 }
 0x429   : > { %2667 = vmatmul.mubr.bf16.gmra.mrb[156].mxu0 %v2482_v50 }
 0x439   : > { %v2326_v0 = vpop.xlane.xlu0 %2325 }
 0x43a   : > { %3463 = vrcp.f32 %v2326_v0 }
 0x43e   : > { %v2329_v47 = vpop.xlane.xlu1 %2328 }
 0x43f   : > { %3465 = vrcp.f32 %v2329_v47 }
 0x441   : > { %v2332_v16 = vpop.xlane.xlu0 %2331 }
 0x442   : > { %3467 = vrcp.f32 %v2332_v16 }
 0x444   : > { %v3464_v13 = vpop.eup %3463 }
 0x446   : > { %v2335_v56 = vpop.xlane.xlu1 %2334 }
 0x447   : > { %3469 = vrcp.f32 %v2335_v56 }
 0x449   : > { %v3466_v15 = vpop.eup %3465  ;;  %v2338_v62 = vpop.xlane.xlu0 %2337 }
 0x44a   : > { %3471 = vrcp.f32 %v2338_v62 }
 0x44c   : > { %v2341_v14 = vpop.xlane.xlu1 %2340  ;;  %v3468_v38 = vpop.eup %3467 }
 0x44d   : > { %3473 = vrcp.f32 %v2341_v14 }
 0x451   : > { %v3470_v33 = vpop.eup %3469  ;;  %v2344_v19 = vpop.xlane.xlu0 %2343 }
 0x452   : > { %3475 = vrcp.f32 %v2344_v19 }
 0x454   : > { %v2347_v6 = vpop.xlane.xlu1 %2346  ;;  %v3472_v1 = vpop.eup %3471 }
 0x455   : > { %3477 = vrcp.f32 %v2347_v6 }
 0x457   : > { %v3474_v63 = vpop.eup %3473 }
 0x459   : > { %v2350_v39 = vpop.xlane.xlu0 %2349 }
 0x45a   : > { %3479 = vrcp.f32 %v2350_v39 }
 0x45c   : > { %v2353_v45 = vpop.xlane.xlu1 %2352  ;;  %v3476_v54 = vpop.eup %3475 }
 0x45d   : > { %3481 = vrcp.f32 %v2353_v45 }
 0x45f   : > { %v3478_v18 = vpop.eup %3477 }
 0x461   : > { %v2356_v49 = vpop.xlane.xlu0 %2355 }
 0x462   : > { %3483 = vrcp.f32 %v2356_v49 }
 0x464   : > { %v2359_v34 = vpop.xlane.xlu1 %2358  ;;  %v3480_v41 = vpop.eup %3479 }
 0x465   : > { %3485 = vrcp.f32 %v2359_v34 }
 0x467   : > { %v3482_v26 = vpop.eup %3481 }
 0x469   : > { %v2362_v7 = vpop.xlane.xlu0 %2361 }
 0x46a   : > { %3487 = vrcp.f32 %v2362_v7 }
 0x46b   : > { %v2365_v28 = vpop.xlane.xlu1 %2364 }
 0x46c   : > { %v3484_v0 = vpop.eup %3483  ;;  %3489 = vrcp.f32 %v2365_v28 }
 0x473   : > { %v2371_v62 = vpop.xlane.xlu1 %2370 }
 0x47d   : > { %v2377_v19 = vpop.xlane.xlu1 %2376 }
 0x484   : > { %v2518_v59 = vpop.f32.mrb[96].mxu0 }
 0x485   : > { %v2677_v24 = vmul.f32 %v3464_v13, %v2518_v59  ;;  %v2520_v40 = vpop.f32.mrb[97].mxu0  ;;  %v2383_v39 = vpop.xlane.xlu1 %2382 }
 0x486   : > { %v2678_v55 = vmul.f32 %v3464_v13, %v2520_v40  ;;  %v2522_v44 = vpop.f32.mrb[98].mxu0  ;;  %v3486_v13 = vpop.eup %3485 }
 0x487   : > { %2741 = vst [vmem:[%s4804_s25] sm:$0xff] %v2677_v24  ;;  %v2679_v31 = vmul.f32 %v3466_v15, %v2522_v44  ;;  %v2524_v3 = vpop.f32.mrb[99].mxu0  ;;  %v2368_v40 = vpop.xlane.xlu0 %2367 }
 0x488   : > { %2742 = vst [vmem:[%s4804_s25 + $0x8] sm:$0xff] %v2678_v55  ;;  %v2680_v42 = vmul.f32 %v3466_v15, %v2524_v3  ;;  %3491 = vrcp.f32 %v2368_v40 }
 0x489   : > { %2743 = vst [vmem:[%s4804_s25 + $0x10] sm:$0xff] %v2679_v31  ;;  %v3488_v31 = vpop.eup %3487  ;;  %3493 = vrcp.f32 %v2371_v62 }
 0x48a   : > { %2744 = vst [vmem:[%s4804_s25 + $0x18] sm:$0xff] %v2680_v42 }
 0x48c   : > { %v2528_v57 = vpop.f32.mrb[100].mxu0 }
 0x48d   : > { %v2681_v9 = vmul.f32 %v3468_v38, %v2528_v57  ;;  %v2530_v4 = vpop.f32.mrb[101].mxu0  ;;  %v2389_v49 = vpop.xlane.xlu1 %2388 }
 0x48e   : > { %v2682_v21 = vmul.f32 %v3468_v38, %v2530_v4  ;;  %v2532_v17 = vpop.f32.mrb[102].mxu0  ;;  %v3490_v38 = vpop.eup %3489 }
 0x48f   : > { %2745 = vst [vmem:[%s4804_s25 + $0x20] sm:$0xff] %v2681_v9  ;;  %v2683_v20 = vmul.f32 %v3470_v33, %v2532_v17  ;;  %v2534_v27 = vpop.f32.mrb[103].mxu0  ;;  %v2374_v4 = vpop.xlane.xlu0 %2373 }
 0x490   : > { %2746 = vst [vmem:[%s4804_s25 + $0x28] sm:$0xff] %v2682_v21  ;;  %v2684_v12 = vmul.f32 %v3470_v33, %v2534_v27  ;;  %3495 = vrcp.f32 %v2374_v4 }
 0x491   : > { %2747 = vst [vmem:[%s4804_s25 + $0x30] sm:$0xff] %v2683_v20  ;;  %3497 = vrcp.f32 %v2377_v19 }
 0x492   : > { %2748 = vst [vmem:[%s4804_s25 + $0x38] sm:$0xff] %v2684_v12  ;;  %v3492_v20 = vpop.eup %3491 }
 0x494   : > { %v2538_v5 = vpop.f32.mrb[104].mxu0 }
 0x495   : > { %v2685_v48 = vmul.f32 %v3472_v1, %v2538_v5  ;;  %v2540_v53 = vpop.f32.mrb[105].mxu0  ;;  %v2395_v7 = vpop.xlane.xlu1 %2394 }
 0x496   : > { %v2686_v61 = vmul.f32 %v3472_v1, %v2540_v53  ;;  %v2542_v60 = vpop.f32.mrb[106].mxu0  ;;  %v3494_v1 = vpop.eup %3493 }
 0x497   : > { %2749 = vst [vmem:[%s4804_s25 + $0x40] sm:$0xff] %v2685_v48  ;;  %v2687_v37 = vmul.f32 %v3474_v63, %v2542_v60  ;;  %v2544_v32 = vpop.f32.mrb[107].mxu0  ;;  %v2380_v53 = vpop.xlane.xlu0 %2379 }
 0x498   : > { %2750 = vst [vmem:[%s4804_s25 + $0x48] sm:$0xff] %v2686_v61  ;;  %v2688_v46 = vmul.f32 %v3474_v63, %v2544_v32  ;;  %3499 = vrcp.f32 %v2380_v53 }
 0x499   : > { %2751 = vst [vmem:[%s4804_s25 + $0x50] sm:$0xff] %v2687_v37  ;;  %3501 = vrcp.f32 %v2383_v39 }
 0x49a   : > { %2752 = vst [vmem:[%s4804_s25 + $0x58] sm:$0xff] %v2688_v46  ;;  %v3496_v37 = vpop.eup %3495 }
 0x49c   : > { %v2548_v35 = vpop.f32.mrb[108].mxu0 }
 0x49d   : > { %v2689_v22 = vmul.f32 %v3476_v54, %v2548_v35  ;;  %v2550_v11 = vpop.f32.mrb[109].mxu0  ;;  %v2401_v40 = vpop.xlane.xlu1 %2400 }
 0x49e   : > { %v2690_v23 = vmul.f32 %v3476_v54, %v2550_v11  ;;  %v2552_v58 = vpop.f32.mrb[110].mxu0  ;;  %v3498_v54 = vpop.eup %3497 }
 0x49f   : > { %2753 = vst [vmem:[%s4804_s25 + $0x60] sm:$0xff] %v2689_v22  ;;  %v2691_v25 = vmul.f32 %v3478_v18, %v2552_v58  ;;  %v2554_v10 = vpop.f32.mrb[111].mxu0  ;;  %v2386_v11 = vpop.xlane.xlu0 %2385 }
 0x4a0   : > { %2754 = vst [vmem:[%s4804_s25 + $0x68] sm:$0xff] %v2690_v23  ;;  %v2692_v36 = vmul.f32 %v3478_v18, %v2554_v10  ;;  %3503 = vrcp.f32 %v2386_v11 }
 0x4a1   : > { %2755 = vst [vmem:[%s4804_s25 + $0x70] sm:$0xff] %v2691_v25  ;;  %3505 = vrcp.f32 %v2389_v49 }
 0x4a2   : > { %2756 = vst [vmem:[%s4804_s25 + $0x78] sm:$0xff] %v2692_v36  ;;  %v3500_v25 = vpop.eup %3499 }
 0x4a4   : > { %v2558_v30 = vpop.f32.mrb[112].mxu0 }
 0x4a5   : > { %v2693_v52 = vmul.f32 %v3480_v41, %v2558_v30  ;;  %v2560_v2 = vpop.f32.mrb[113].mxu0  ;;  %v2407_v4 = vpop.xlane.xlu1 %2406 }
 0x4a6   : > { %v2694_v29 = vmul.f32 %v3480_v41, %v2560_v2  ;;  %v2562_v43 = vpop.f32.mrb[114].mxu0  ;;  %v3502_v41 = vpop.eup %3501 }
 0x4a7   : > { %2757 = vst [vmem:[%s4804_s25 + $0x80] sm:$0xff] %v2693_v52  ;;  %v2695_v51 = vmul.f32 %v3482_v26, %v2562_v43  ;;  %v2564_v50 = vpop.f32.mrb[115].mxu0  ;;  %v2392_v2 = vpop.xlane.xlu0 %2391 }
 0x4a8   : > { %2758 = vst [vmem:[%s4804_s25 + $0x88] sm:$0xff] %v2694_v29  ;;  %v2696_v8 = vmul.f32 %v3482_v26, %v2564_v50  ;;  %3507 = vrcp.f32 %v2392_v2 }
 0x4a9   : > { %2759 = vst [vmem:[%s4804_s25 + $0x90] sm:$0xff] %v2695_v51  ;;  %3509 = vrcp.f32 %v2395_v7 }
 0x4aa   : > { %2760 = vst [vmem:[%s4804_s25 + $0x98] sm:$0xff] %v2696_v8  ;;  %v3504_v51 = vpop.eup %3503 }
 0x4ac   : > { %v2568_v47 = vpop.f32.mrb[116].mxu0  ;;  %v2413_v53 = vpop.xlane.xlu1 %2412 }
 0x4ad   : > { %v2697_v16 = vmul.f32 %v3484_v0, %v2568_v47  ;;  %v2570_v56 = vpop.f32.mrb[117].mxu0 }
 0x4ae   : > { %v2698_v59 = vmul.f32 %v3484_v0, %v2570_v56  ;;  %v2572_v24 = vpop.f32.mrb[118].mxu0  ;;  %v3506_v0 = vpop.eup %3505 }
 0x4af   : > { %2761 = vst [vmem:[%s4804_s25 + $0xa0] sm:$0xff] %v2697_v16  ;;  %v2699_v15 = vmul.f32 %v3486_v13, %v2572_v24  ;;  %v2574_v55 = vpop.f32.mrb[119].mxu0  ;;  %v2398_v56 = vpop.xlane.xlu0 %2397 }
 0x4b0   : > { %2762 = vst [vmem:[%s4804_s25 + $0xa8] sm:$0xff] %v2698_v59  ;;  %v2700_v44 = vmul.f32 %v3486_v13, %v2574_v55  ;;  %3511 = vrcp.f32 %v2398_v56 }
 0x4b1   : > { %2763 = vst [vmem:[%s4804_s25 + $0xb0] sm:$0xff] %v2699_v15  ;;  %3513 = vrcp.f32 %v2401_v40 }
 0x4b2   : > { %2764 = vst [vmem:[%s4804_s25 + $0xb8] sm:$0xff] %v2700_v44  ;;  %v3508_v15 = vpop.eup %3507 }
 0x4b4   : > { %v2578_v3 = vpop.f32.mrb[120].mxu0  ;;  %v2419_v11 = vpop.xlane.xlu1 %2418 }
 0x4b5   : > { %v2701_v42 = vmul.f32 %v3488_v31, %v2578_v3  ;;  %v2580_v14 = vpop.f32.mrb[121].mxu0 }
 0x4b6   : > { %v2702_v57 = vmul.f32 %v3488_v31, %v2580_v14  ;;  %v2582_v9 = vpop.f32.mrb[122].mxu0  ;;  %v3510_v31 = vpop.eup %3509 }
 0x4b7   : > { %2765 = vst [vmem:[%s4804_s25 + $0xc0] sm:$0xff] %v2701_v42  ;;  %v2703_v33 = vmul.f32 %v3490_v38, %v2582_v9  ;;  %v2584_v21 = vpop.f32.mrb[123].mxu0  ;;  %v2404_v14 = vpop.xlane.xlu0 %2403 }
 0x4b8   : > { %2766 = vst [vmem:[%s4804_s25 + $0xc8] sm:$0xff] %v2702_v57  ;;  %v2704_v17 = vmul.f32 %v3490_v38, %v2584_v21  ;;  %3515 = vrcp.f32 %v2404_v14 }
 0x4b9   : > { %2767 = vst [vmem:[%s4804_s25 + $0xd0] sm:$0xff] %v2703_v33  ;;  %3517 = vrcp.f32 %v2407_v4 }
 0x4ba   : > { %2768 = vst [vmem:[%s4804_s25 + $0xd8] sm:$0xff] %v2704_v17  ;;  %v3512_v33 = vpop.eup %3511 }
 0x4bc   : > { %v2588_v27 = vpop.f32.mrb[124].mxu0 }
 0x4bd   : > { %v2705_v12 = vmul.f32 %v3492_v20, %v2588_v27  ;;  %v2590_v6 = vpop.f32.mrb[125].mxu0 }
 0x4be   : > { %v2706_v5 = vmul.f32 %v3492_v20, %v2590_v6  ;;  %v2592_v48 = vpop.f32.mrb[126].mxu0  ;;  %v3514_v20 = vpop.eup %3513 }
 0x4bf   : > { %2769 = vst [vmem:[%s4804_s25 + $0xe0] sm:$0xff] %v2705_v12  ;;  %v2707_v63 = vmul.f32 %v3494_v1, %v2592_v48  ;;  %v2594_v61 = vpop.f32.mrb[127].mxu0  ;;  %v2410_v6 = vpop.xlane.xlu0 %2409 }
 0x4c0   : > { %2770 = vst [vmem:[%s4804_s25 + $0xe8] sm:$0xff] %v2706_v5  ;;  %v2708_v60 = vmul.f32 %v3494_v1, %v2594_v61  ;;  %3519 = vrcp.f32 %v2410_v6 }
 0x4c1   : > { %2771 = vst [vmem:[%s4804_s25 + $0xf0] sm:$0xff] %v2707_v63  ;;  %3521 = vrcp.f32 %v2413_v53 }
 0x4c2   : > { %2772 = vst [vmem:[%s4804_s25 + $0xf8] sm:$0xff] %v2708_v60  ;;  %v3516_v63 = vpop.eup %3515 }
 0x4c4   : > { %v2598_v32 = vpop.f32.mrb[128].mxu0 }
 0x4c5   : > { %v2709_v46 = vmul.f32 %v3496_v37, %v2598_v32  ;;  %v2600_v45 = vpop.f32.mrb[129].mxu0 }
 0x4c6   : > { %v2710_v35 = vmul.f32 %v3496_v37, %v2600_v45  ;;  %v2602_v22 = vpop.f32.mrb[130].mxu0  ;;  %v3518_v37 = vpop.eup %3517 }
 0x4c7   : > { %2773 = vst [vmem:[%s4804_s25 + $0x100] sm:$0xff] %v2709_v46  ;;  %v2711_v18 = vmul.f32 %v3498_v54, %v2602_v22  ;;  %v2604_v23 = vpop.f32.mrb[131].mxu0  ;;  %v2416_v45 = vpop.xlane.xlu0 %2415 }
 0x4c8   : > { %2774 = vst [vmem:[%s4804_s25 + $0x108] sm:$0xff] %v2710_v35  ;;  %v2712_v58 = vmul.f32 %v3498_v54, %v2604_v23  ;;  %3523 = vrcp.f32 %v2416_v45 }
 0x4c9   : > { %2775 = vst [vmem:[%s4804_s25 + $0x110] sm:$0xff] %v2711_v18  ;;  %3525 = vrcp.f32 %v2419_v11 }
 0x4ca   : > { %2776 = vst [vmem:[%s4804_s25 + $0x118] sm:$0xff] %v2712_v58  ;;  %v3520_v18 = vpop.eup %3519 }
 0x4cc   : > { %v2608_v10 = vpop.f32.mrb[132].mxu0 }
 0x4cd   : > { %v2713_v36 = vmul.f32 %v3500_v25, %v2608_v10  ;;  %v2610_v34 = vpop.f32.mrb[133].mxu0 }
 0x4ce   : > { %v2714_v30 = vmul.f32 %v3500_v25, %v2610_v34  ;;  %v2612_v52 = vpop.f32.mrb[134].mxu0  ;;  %v3522_v25 = vpop.eup %3521 }
 0x4cf   : > { %2777 = vst [vmem:[%s4804_s25 + $0x120] sm:$0xff] %v2713_v36  ;;  %v2715_v26 = vmul.f32 %v3502_v41, %v2612_v52  ;;  %v2614_v29 = vpop.f32.mrb[135].mxu0 }
 0x4d0   : > { %2778 = vst [vmem:[%s4804_s25 + $0x128] sm:$0xff] %v2714_v30  ;;  %v2716_v43 = vmul.f32 %v3502_v41, %v2614_v29 }
 0x4d1   : > { %2779 = vst [vmem:[%s4804_s25 + $0x130] sm:$0xff] %v2715_v26 }
 0x4d2   : > { %2780 = vst [vmem:[%s4804_s25 + $0x138] sm:$0xff] %v2716_v43  ;;  %v3524_v52 = vpop.eup %3523 }
 0x4d3   : > { %v3526_v43 = vpop.eup %3525 }
 0x4d4   : > { %v2618_v50 = vpop.f32.mrb[136].mxu0 }
 0x4d5   : > { %v2717_v8 = vmul.f32 %v3504_v51, %v2618_v50  ;;  %v2620_v28 = vpop.f32.mrb[137].mxu0 }
 0x4d6   : > { %v2718_v47 = vmul.f32 %v3504_v51, %v2620_v28  ;;  %v2622_v16 = vpop.f32.mrb[138].mxu0 }
 0x4d7   : > { %2781 = vst [vmem:[%s4804_s25 + $0x140] sm:$0xff] %v2717_v8  ;;  %v2719_v13 = vmul.f32 %v3506_v0, %v2622_v16  ;;  %v2624_v59 = vpop.f32.mrb[139].mxu0 }
 0x4d8   : > { %2782 = vst [vmem:[%s4804_s25 + $0x148] sm:$0xff] %v2718_v47  ;;  %v2720_v24 = vmul.f32 %v3506_v0, %v2624_v59 }
 0x4d9   : > { %2783 = vst [vmem:[%s4804_s25 + $0x150] sm:$0xff] %v2719_v13 }
 0x4da   : > { %2784 = vst [vmem:[%s4804_s25 + $0x158] sm:$0xff] %v2720_v24 }
 0x4dc   : > { %v2628_v55 = vpop.f32.mrb[140].mxu0 }
 0x4dd   : > { %v2721_v44 = vmul.f32 %v3508_v15, %v2628_v55  ;;  %v2630_v62 = vpop.f32.mrb[141].mxu0 }
 0x4de   : > { %v2722_v3 = vmul.f32 %v3508_v15, %v2630_v62  ;;  %v2632_v42 = vpop.f32.mrb[142].mxu0 }
 0x4df   : > { %2785 = vst [vmem:[%s4804_s25 + $0x160] sm:$0xff] %v2721_v44  ;;  %v2723_v38 = vmul.f32 %v3510_v31, %v2632_v42  ;;  %v2634_v57 = vpop.f32.mrb[143].mxu0 }
 0x4e0   : > { %2786 = vst [vmem:[%s4804_s25 + $0x168] sm:$0xff] %v2722_v3  ;;  %v2724_v9 = vmul.f32 %v3510_v31, %v2634_v57 }
 0x4e1   : > { %2787 = vst [vmem:[%s4804_s25 + $0x170] sm:$0xff] %v2723_v38 }
 0x4e2   : > { %2788 = vst [vmem:[%s4804_s25 + $0x178] sm:$0xff] %v2724_v9 }
 0x4e4   : > { %v2638_v21 = vpop.f32.mrb[144].mxu0 }
 0x4e5   : > { %v2725_v17 = vmul.f32 %v3512_v33, %v2638_v21  ;;  %v2640_v19 = vpop.f32.mrb[145].mxu0 }
 0x4e6   : > { %v2726_v27 = vmul.f32 %v3512_v33, %v2640_v19  ;;  %v2642_v12 = vpop.f32.mrb[146].mxu0 }
 0x4e7   : > { %2789 = vst [vmem:[%s4804_s25 + $0x180] sm:$0xff] %v2725_v17  ;;  %v2727_v1 = vmul.f32 %v3514_v20, %v2642_v12  ;;  %v2644_v5 = vpop.f32.mrb[147].mxu0 }
 0x4e8   : > { %2790 = vst [vmem:[%s4804_s25 + $0x188] sm:$0xff] %v2726_v27  ;;  %v2728_v48 = vmul.f32 %v3514_v20, %v2644_v5 }
 0x4e9   : > { %2791 = vst [vmem:[%s4804_s25 + $0x190] sm:$0xff] %v2727_v1 }
 0x4ea   : > { %2792 = vst [vmem:[%s4804_s25 + $0x198] sm:$0xff] %v2728_v48 }
 0x4ec   : > { %v2648_v61 = vpop.f32.mrb[148].mxu0 }
 0x4ed   : > { %v2729_v60 = vmul.f32 %v3516_v63, %v2648_v61  ;;  %v2650_v39 = vpop.f32.mrb[149].mxu0 }
 0x4ee   : > { %v2730_v32 = vmul.f32 %v3516_v63, %v2650_v39  ;;  %v2652_v46 = vpop.f32.mrb[150].mxu0 }
 0x4ef   : > { %2793 = vst [vmem:[%s4804_s25 + $0x1a0] sm:$0xff] %v2729_v60  ;;  %v2731_v54 = vmul.f32 %v3518_v37, %v2652_v46  ;;  %v2654_v35 = vpop.f32.mrb[151].mxu0 }
 0x4f0   : > { %2794 = vst [vmem:[%s4804_s25 + $0x1a8] sm:$0xff] %v2730_v32  ;;  %v2732_v22 = vmul.f32 %v3518_v37, %v2654_v35 }
 0x4f1   : > { %2795 = vst [vmem:[%s4804_s25 + $0x1b0] sm:$0xff] %v2731_v54 }
 0x4f2   : > { %2796 = vst [vmem:[%s4804_s25 + $0x1b8] sm:$0xff] %v2732_v22 }
 0x4f4   : > { %v2658_v23 = vpop.f32.mrb[152].mxu0 }
 0x4f5   : > { %v2733_v58 = vmul.f32 %v3520_v18, %v2658_v23  ;;  %v2660_v49 = vpop.f32.mrb[153].mxu0 }
 0x4f6   : > { %v2734_v10 = vmul.f32 %v3520_v18, %v2660_v49  ;;  %v2662_v36 = vpop.f32.mrb[154].mxu0 }
 0x4f7   : > { %2797 = vst [vmem:[%s4804_s25 + $0x1c0] sm:$0xff] %v2733_v58  ;;  %v2735_v34 = vmul.f32 %v3522_v25, %v2662_v36  ;;  %v2664_v41 = vpop.f32.mrb[155].mxu0 }
 0x4f8   : > { %2798 = vst [vmem:[%s4804_s25 + $0x1c8] sm:$0xff] %v2734_v10  ;;  %v2736_v30 = vmul.f32 %v3522_v25, %v2664_v41 }
 0x4f9   : > { %2799 = vst [vmem:[%s4804_s25 + $0x1d0] sm:$0xff] %v2735_v34 }
 0x4fa   : > { %2800 = vst [vmem:[%s4804_s25 + $0x1d8] sm:$0xff] %v2736_v30 }
 0x4fc   : > { %v2668_v2 = vpop.f32.mrb[156].mxu0 }
 0x4fd   : > { %v2737_v26 = vmul.f32 %v3524_v52, %v2668_v2  ;;  %v2670_v29 = vpop.f32.mrb[157].mxu0 }
 0x4fe   : > { %v2738_v7 = vmul.f32 %v3524_v52, %v2670_v29  ;;  %v2672_v51 = vpop.f32.mrb[158].mxu0 }
 0x4ff   : > { %2801 = vst [vmem:[%s4804_s25 + $0x1e0] sm:$0xff] %v2737_v26  ;;  %v2739_v50 = vmul.f32 %v3526_v43, %v2672_v51  ;;  %v2674_v8 = vpop.f32.mrb[159].mxu0 }
 0x500   : > { %2802 = vst [vmem:[%s4804_s25 + $0x1e8] sm:$0xff] %v2738_v7  ;;  %v2740_v28 = vmul.f32 %v3526_v43, %v2674_v8 }
 0x501   : > { %2803 = vst [vmem:[%s4804_s25 + $0x1f0] sm:$0xff] %v2739_v50 }
 0x502   : > { %2804 = vst [vmem:[%s4804_s25 + $0x1f8] sm:$0xff] %v2740_v28 }
 0x503   : > { %3613 = shalt.err (!%p3610_p7)
}
 0x504   : > { %s3614_s22 = scalar_lea.hbm %s4872_s27, 8192  ;;  %s3618_s9 = scalar_lea.hbm %s4924_s3, 16384 }
 0x505   : > { %p3615_p9 = scmp.ne.s32.totalorder %s4872_s27, %s3614_s22  ;;  %p3619_p5 = scmp.lt.u32.totalorder %s4872_s27, %s4924_s3 }
 0x506   : > { %p3620_p11 = scmp.lt.u32.totalorder %s3618_s9, %s3614_s22  ;;  %p3622_p4 = scmp.lt.u32.totalorder %s3614_s22, %s4872_s27 }
 0x507   : > { %p3616_p2 = pnand %p3615_p9, %p3792_p12 }
 0x508   : > { %p3621_p1 = por %p3620_p11, %p3619_p5 }
 0x509   : > { %p3617_p0 = pneg %p3616_p2 }
 0x50a   : > { %p3623_p6 = por %p3622_p4, %p3621_p1 }
 0x50c   : > { %p3624_p8 = pnand %p3623_p6, %p3617_p0 }
 0x50e   : > { %3627 = shalt.err (!%p3624_p8)
}
 0x50f   : > { %s3679_s4 = smov 256   ;;  %s3680_s25 = smov 16  }
 0x510   : > { %3086 = dma.vmem_to_hbm [thread:$0]  (%p3792_p12), %s4874_s5, 8192, %s4872_s27, %s2806_s16, %s3679_s4, %s3679_s4, %s3680_s25  }
 0x511 PF: > { %s2834_s26 = sand.u32 1, %s3658_s12   ;;  %p5059_p10 = scmp.ne.s32.totalorder %s4961_s19, 0 }
 0x512   : > { %p5060_p13 = scmp.ge.s32.totalorder %s3670_s15, 2  ;;  %s2835_s10 = scalar_lea.sflag [#allocation4], %s2834_s26 }
 0x514   : > { %p3097_p3 = pnand %p5060_p13, %p5059_p10 }
 0x516   : > { %3653 = dma.done.wait (!%p3097_p3), %s2835_s10, 8192  }
 0x517   : > { %3655 = vsyncadd (!%p3097_p3), %s2835_s10, 4294959104  ;;  %p17_p7 = scmp.ge.s32.totalorder %s3757_s24, 4   ;;  %s5061_s12 = smov %s3662_s13 }
 0x518   : > { %s5062_s13 = smov %s3666_s14  ;;  %s5063_s14 = smov %s3788_s17 }
 0x519   : > { %s5064_s15 = smov %s3757_s24  ;;  %19 = sbr.rel (!%p17_p7) target bundleno = 6 (0x6), region = 81 }
 0x520   :  { %2840 = vsyncpa [#allocation3], 1 }
 0x521   :  { %2842 = vsyncpa [#allocation3 + $0x1], 1 }
 0x522   :  { %2843 = vsyncpa [#allocation6], 1 }
 0x523   :  { %2844 = vsyncpa [#allocation4], 1 }
 0x524   :  { %2846 = vsyncpa [#allocation4 + $0x1], 1 }

</bundles_post_ra>
